<compile_context>
chip_gen: v7x
topology: tpu7x:2x2x1
jax: 0.10.0
libtpu: 0.0.40
codegen_flags: <defaults>
</compile_context>

<pallas_src>
import numpy as np
import jax
import jax.numpy as jnp
from jax import lax
from jax.experimental import pallas as pl
from jax.experimental.pallas import tpu as pltpu


def _round_up(x, m):
    return (x + m - 1) // m * m


# ----------------------------------------------------------------------------
# Fused forward kernel (one grid step == one sample)
# ----------------------------------------------------------------------------
def _make_qnet_kernel(H, W, num_act):
    # Architecture constants fixed by the PyTorch module:
    #   conv 7x7/pad3 -> 32ch, conv 5x5/pad2 -> 64ch, conv 3x3/pad1 -> 64ch,
    #   2x2 max-pool after each conv, fc(features->64), fc(64->num_act).
    H2, W2 = H // 2, W // 2          # conv2 input spatial (after pool1)
    H3, W3 = H // 4, W // 4          # conv3 input spatial (after pool2)
    H4, W4 = H // 8, W // 8          # after pool3
    R = H4 * W4                      # spatial positions feeding fc1
    LEFT = 8                         # left zero halo, sublane-tile aligned

    def pool2x2(y, h, w):
        # y: (h*w, c) with rows ordered (h, w)  ->  (h//2, w//2, c)
        c = y.shape[-1]
        y = y.reshape(h // 2, 2, w // 2, 2, c)
        return jnp.max(jnp.max(y, axis=3), axis=1)

    def tap_matmuls(read_tap, w_ref, n_taps, rows, cout):
        # Two interleaved f32 accumulators: keeps register pressure low while
        # breaking the serial accumulation dependency chain.
        acc = [jnp.zeros((rows, cout), jnp.float32) for _ in range(2)]
        for t in range(n_taps):
            acc[t % 2] = acc[t % 2] + jnp.dot(
                read_tap(t), w_ref[t], preferred_element_type=jnp.float32)
        return acc[0] + acc[1]

    def kernel(p_ref, w1_ref, b1_ref, w2_ref, b2_ref, w3_ref, b3_ref,
               v1_ref, fb1_ref, wo_ref, bo_ref, o_ref, scr2, scr3, fcin):
        f32, bf16 = jnp.float32, jnp.bfloat16

        # ---- Conv1: single im2col matmul (K = 49*Cin) + bias + ReLU + pool
        y1 = jnp.dot(p_ref[0], w1_ref[...], preferred_element_type=f32)
        y1 = jnp.maximum(y1 + b1_ref[...], 0.0)            # (H*W, 32)
        p1 = pool2x2(y1, H, W)                             # (H2, W2, 32)

        # ---- stage-2 zero-padded activation lives in VMEM scratch ----------
        scr2[...] = jnp.zeros_like(scr2)
        scr2[pl.ds(2, H2), pl.ds(LEFT, W2), :] = p1        # interior, aligned

        # ---- Conv2: 5x5 (pad 2), per-tap K=32 matmuls ----------------------
        def tap2(t):
            dy, dx = t // 5, t % 5
            tap = scr2[pl.ds(dy, H2), pl.ds(LEFT - 2 + dx, W2), :]
            return tap.reshape(H2 * W2, 32).astype(bf16)
        y2 = tap_matmuls(tap2, w2_ref, 25, H2 * W2, 64)
        y2 = jnp.maximum(y2 + b2_ref[...], 0.0)            # (H2*W2, 64)
        p2 = pool2x2(y2, H2, W2)                           # (H3, W3, 64)

        # ---- stage-3 zero-padded activation --------------------------------
        scr3[...] = jnp.zeros_like(scr3)
        scr3[pl.ds(1, H3), pl.ds(LEFT, W3), :] = p2

        # ---- Conv3: 3x3 (pad 1), per-tap K=64 matmuls ----------------------
        def tap3(t):
            dy, dx = t // 3, t % 3
            tap = scr3[pl.ds(dy, H3), pl.ds(LEFT - 1 + dx, W3), :]
            return tap.reshape(H3 * W3, 64).astype(bf16)
        y3 = tap_matmuls(tap3, w3_ref, 9, H3 * W3, 64)
        y3 = jnp.maximum(y3 + b3_ref[...], 0.0)            # (H3*W3, 64)
        p3 = pool2x2(y3, H3, W3)                           # (H4, W4, 64)

        # ---- FC head: fc1 (NCHW-flatten permutation folded into v1) --------
        fcin[...] = p3.reshape(R, 64)
        h = jnp.zeros((1, 64), f32)
        for r in range(R):
            row = fcin[pl.ds(r, 1), :].astype(bf16)        # (1, 64)
            h = h + jnp.dot(row, v1_ref[r], preferred_element_type=f32)
        h = jnp.maximum(h + fb1_ref[...], 0.0)
        q = jnp.dot(h.astype(bf16), wo_ref[...],
                    preferred_element_type=f32) + bo_ref[...]
        o_ref[...] = q.reshape(1, 1, num_act)

    return kernel


# ----------------------------------------------------------------------------
# One-time parameter re-layout (outside the forward path)
# ----------------------------------------------------------------------------
def prepare_params(params, num_obs):
    H, W, _ = num_obs
    H4, W4 = H // 8, W // 8
    R = H4 * W4
    f32, bf16 = jnp.float32, jnp.bfloat16

    def conv_taps(w):   # torch (Cout, Cin, KH, KW) -> (KH*KW, Cin, Cout) bf16
        co, ci, kh, kw = w.shape
        return jnp.transpose(w, (2, 3, 1, 0)).reshape(kh * kw, ci, co).astype(bf16)

    co1, ci1, kh1, kw1 = params["w1"].shape
    w1m = jnp.transpose(params["w1"], (2, 3, 1, 0)).reshape(kh1 * kw1 * ci1, co1)

    # fc1: fold torch's NCHW flatten order (c, h, w) into the weights so the
    # kernel consumes rows ordered (h, w) with channels on the lane axis.
    fc1 = params["fc1_w"].reshape(64, 64, H4, W4)          # (j, c, h, w)
    v1 = jnp.transpose(fc1, (2, 3, 1, 0)).reshape(R, 64, 64)

    return {
        "w1m": w1m.astype(bf16),
        "b1": params["b1"].reshape(1, -1).astype(f32),
        "w2t": conv_taps(params["w2"]),
        "b2": params["b2"].reshape(1, -1).astype(f32),
        "w3t": conv_taps(params["w3"]),
        "b3": params["b3"].reshape(1, -1).astype(f32),
        "v1": v1.astype(bf16),
        "fb1": params["fc1_b"].reshape(1, -1).astype(f32),
        "wo": jnp.transpose(params["fc2_w"]).astype(bf16),   # (64, num_act)
        "bo": params["fc2_b"].reshape(1, -1).astype(f32),
    }


# ----------------------------------------------------------------------------
# Forward (single pallas_call; only input-side layout glue stays in XLA)
# ----------------------------------------------------------------------------
def q_network_forward(prep, x_nchw):
    N, C, H, W = x_nchw.shape
    num_act = prep["bo"].shape[-1]
    H2, W2 = H // 2, W // 2
    H3, W3 = H // 4, W // 4
    R = (H // 8) * (W // 8)

    # Input-side glue on the raw (tiny) input only: NCHW->NHWC, zero-pad, and
    # conv1 im2col patches (rows ordered (h, w); columns ordered (dy, dx, cin)).
    x = jnp.transpose(x_nchw, (0, 2, 3, 1)).astype(jnp.float32)
    xp = jnp.pad(x, ((0, 0), (3, 3), (3, 3), (0, 0)))
    taps = [xp[:, dy:dy + H, dx:dx + W, :] for dy in range(7) for dx in range(7)]
    patches = jnp.stack(taps, axis=3).reshape(N, H * W, 49 * C).astype(jnp.bfloat16)

    scr2_cols = _round_up(8 + W2 + 2, 8)
    scr3_cols = _round_up(8 + W3 + 1, 8)
    kernel = _make_qnet_kernel(H, W, num_act)

    out = pl.pallas_call(
        kernel,
        out_shape=jax.ShapeDtypeStruct((N, 1, num_act), jnp.float32),
        grid_spec=pltpu.PrefetchScalarGridSpec(
            num_scalar_prefetch=0,
            grid=(N,),
            in_specs=[
                pl.BlockSpec((1, H * W, 49 * C), lambda n: (n, 0, 0)),   # patches
                pl.BlockSpec((49 * C, 32), lambda n: (0, 0)),            # w1 (im2col)
                pl.BlockSpec((1, 32), lambda n: (0, 0)),                 # b1
                pl.BlockSpec((25, 32, 64), lambda n: (0, 0, 0)),         # w2 taps
                pl.BlockSpec((1, 64), lambda n: (0, 0)),                 # b2
                pl.BlockSpec((9, 64, 64), lambda n: (0, 0, 0)),          # w3 taps
                pl.BlockSpec((1, 64), lambda n: (0, 0)),                 # b3
                pl.BlockSpec((R, 64, 64), lambda n: (0, 0, 0)),          # fc1 (permuted)
                pl.BlockSpec((1, 64), lambda n: (0, 0)),                 # fc1 bias
                pl.BlockSpec((64, num_act), lambda n: (0, 0)),           # fc2
                pl.BlockSpec((1, num_act), lambda n: (0, 0)),            # fc2 bias
            ],
            out_specs=pl.BlockSpec((1, 1, num_act), lambda n: (n, 0, 0)),
            scratch_shapes=[
                pltpu.VMEM((H2 + 4, scr2_cols, 32), jnp.float32),  # padded act 2
                pltpu.VMEM((H3 + 2, scr3_cols, 64), jnp.float32),  # padded act 3
                pltpu.VMEM((R, 64), jnp.float32),                  # fc input rows
            ],
        ),
        compiler_params=pltpu.CompilerParams(
            dimension_semantics=("parallel",)),
    )(patches, prep["w1m"], prep["b1"], prep["w2t"], prep["b2"],
      prep["w3t"], prep["b3"], prep["v1"], prep["fb1"],
      prep["wo"], prep["bo"])
    return out.reshape(N, num_act)


# ----------------------------------------------------------------------------
# Deterministic parameter init (PyTorch-style U(-1/sqrt(fan_in), 1/sqrt(fan_in)))
# ----------------------------------------------------------------------------
def init_params(key, num_obs, num_act):
    H, W, C = num_obs
    features = (H // 8) * (W // 8) * 64

    def u(k, shape, fan_in):
        bound = 1.0 / np.sqrt(fan_in)
        return jax.random.uniform(k, shape, jnp.float32, -bound, bound)

    ks = jax.random.split(key, 10)
    return {
        "w1": u(ks[0], (32, C, 7, 7), C * 49),   "b1": u(ks[1], (32,), C * 49),
        "w2": u(ks[2], (64, 32, 5, 5), 32 * 25), "b2": u(ks[3], (64,), 32 * 25),
        "w3": u(ks[4], (64, 64, 3, 3), 64 * 9),  "b3": u(ks[5], (64,), 64 * 9),
        "fc1_w": u(ks[6], (64, features), features), "fc1_b": u(ks[7], (64,), features),
        "fc2_w": u(ks[8], (num_act, 64), 64),        "fc2_b": u(ks[9], (num_act,), 64),
    }


# ----------------------------------------------------------------------------
# Pure-JAX reference (mirrors the PyTorch module in NCHW, f32) for verification
# ----------------------------------------------------------------------------
def q_network_reference(params, x_nchw):
    def conv(x, w, b, pad):
        y = lax.conv_general_dilated(x, w, (1, 1), [(pad, pad), (pad, pad)],
                                     dimension_numbers=("NCHW", "OIHW", "NCHW"))
        return jax.nn.relu(y + b.reshape(1, -1, 1, 1))

    def pool(x):
        return lax.reduce_window(x, -jnp.inf, lax.max,
                                 (1, 1, 2, 2), (1, 1, 2, 2), "VALID")

    x = pool(conv(x_nchw, params["w1"], params["b1"], 3))
    x = pool(conv(x, params["w2"], params["b2"], 2))
    x = pool(conv(x, params["w3"], params["b3"], 1))
    x = x.reshape(x.shape[0], -1)
    h = jax.nn.relu(x @ params["fc1_w"].T + params["fc1_b"])
    return h @ params["fc2_w"].T + params["fc2_b"]


if __name__ == "__main__":
    num_obs = (16, 16, 4)   # (H, W, C) as in the PyTorch module's num_obs
    num_act = 6             # Pong action space
    batch = 2

    root = jax.random.PRNGKey(0)
    k_params, k_x = jax.random.split(root)
    params = init_params(k_params, num_obs, num_act)
    # Input is NCHW, like the PyTorch forward expects.
    x = jax.random.normal(k_x, (batch, num_obs[2], num_obs[0], num_obs[1]),
                          dtype=jnp.float32)

    prep = prepare_params(params, num_obs)   # one-time kernel-layout weights
    fwd = jax.jit(q_network_forward)
    out = jax.block_until_ready(fwd(prep, x))

    ref = jax.block_until_ready(q_network_reference(params, x))
    # bf16 MXU operands (intentional) => compare with a correspondingly
    # loosened tolerance against the f32 reference.
    np.testing.assert_allclose(np.asarray(out), np.asarray(ref),
                               rtol=2e-2, atol=2e-2)
    assert out.shape == (batch, num_act)
    print("KERNEL_OK")
</pallas_src>

<mosaic_0001>
module attributes {stable_mosaic.version = 11 : i64} {
  func.func @kernel(%arg0: i32, %arg1: memref<1x256x196xbf16, #tpu.memory_space<vmem>>, %arg2: memref<196x32xbf16, #tpu.memory_space<vmem>>, %arg3: memref<1x32xf32, #tpu.memory_space<vmem>>, %arg4: memref<25x32x64xbf16, #tpu.memory_space<vmem>>, %arg5: memref<1x64xf32, #tpu.memory_space<vmem>>, %arg6: memref<9x64x64xbf16, #tpu.memory_space<vmem>>, %arg7: memref<1x64xf32, #tpu.memory_space<vmem>>, %arg8: memref<4x64x64xbf16, #tpu.memory_space<vmem>>, %arg9: memref<1x64xf32, #tpu.memory_space<vmem>>, %arg10: memref<64x6xbf16, #tpu.memory_space<vmem>>, %arg11: memref<1x6xf32, #tpu.memory_space<vmem>>, %arg12: memref<1x1x6xf32, #tpu.memory_space<vmem>>, %arg13: memref<12x24x32xf32, #tpu.memory_space<vmem>>, %arg14: memref<6x16x64xf32, #tpu.memory_space<vmem>>, %arg15: memref<4x64xf32, #tpu.memory_space<vmem>>) attributes {dimension_semantics = [#tpu.dimension_semantics<parallel>], iteration_bounds = array<i64: 2>, scalar_prefetch = 0 : i64, scratch_operands = 3 : i64, tpu.core_type = #tpu.core_type<tc>, window_params = [{transform_indices = @transform_0, window_bounds = array<i64: 1, 256, 196>}, {pipeline_mode = #tpu.pipeline_mode<synchronous>, transform_indices = @transform_1, window_bounds = array<i64: 196, 32>}, {pipeline_mode = #tpu.pipeline_mode<synchronous>, transform_indices = @transform_2, window_bounds = array<i64: 1, 32>}, {pipeline_mode = #tpu.pipeline_mode<synchronous>, transform_indices = @transform_3, window_bounds = array<i64: 25, 32, 64>}, {pipeline_mode = #tpu.pipeline_mode<synchronous>, transform_indices = @transform_4, window_bounds = array<i64: 1, 64>}, {pipeline_mode = #tpu.pipeline_mode<synchronous>, transform_indices = @transform_5, window_bounds = array<i64: 9, 64, 64>}, {pipeline_mode = #tpu.pipeline_mode<synchronous>, transform_indices = @transform_6, window_bounds = array<i64: 1, 64>}, {pipeline_mode = #tpu.pipeline_mode<synchronous>, transform_indices = @transform_7, window_bounds = array<i64: 4, 64, 64>}, {pipeline_mode = #tpu.pipeline_mode<synchronous>, transform_indices = @transform_8, window_bounds = array<i64: 1, 64>}, {pipeline_mode = #tpu.pipeline_mode<synchronous>, transform_indices = @transform_9, window_bounds = array<i64: 64, 6>}, {pipeline_mode = #tpu.pipeline_mode<synchronous>, transform_indices = @transform_10, window_bounds = array<i64: 1, 6>}, {transform_indices = @transform_11, window_bounds = array<i64: 1, 1, 6>}]} {
    %c0 = arith.constant 0 : index
    %c0_0 = arith.constant 0 : index
    %c0_1 = arith.constant 0 : index
    %0 = vector.load %arg1[%c0, %c0_0, %c0_1] : memref<1x256x196xbf16, #tpu.memory_space<vmem>>, vector<1x256x196xbf16>
    %1 = vector.shape_cast %0 : vector<1x256x196xbf16> to vector<256x196xbf16>
    %c0_2 = arith.constant 0 : index
    %c0_3 = arith.constant 0 : index
    %2 = vector.load %arg2[%c0_2, %c0_3] : memref<196x32xbf16, #tpu.memory_space<vmem>>, vector<196x32xbf16>
    %cst = arith.constant dense<0.000000e+00> : vector<256x32xf32>
    %3 = tpu.matmul %1, %2, %cst {dimension_numbers = #tpu.dot_dimension_numbers<[1], [0], [0], [1], [0, 0, 1, 1], [], []>} : vector<256x196xbf16>, vector<196x32xbf16>, vector<256x32xf32> -> vector<256x32xf32>
    %c0_4 = arith.constant 0 : index
    %c0_5 = arith.constant 0 : index
    %4 = vector.load %arg3[%c0_4, %c0_5] : memref<1x32xf32, #tpu.memory_space<vmem>>, vector<1x32xf32>
    %5 = vector.broadcast %4 : vector<1x32xf32> to vector<256x32xf32>
    %6 = arith.addf %3, %5 : vector<256x32xf32>
    %cst_6 = arith.constant 0.000000e+00 : f32
    %7 = vector.broadcast %cst_6 : f32 to vector<256x32xf32>
    %8 = arith.maximumf %6, %7 : vector<256x32xf32>
    %9 = vector.shape_cast %8 : vector<256x32xf32> to vector<8x2x8x2x32xf32>
    %cst_7 = arith.constant dense<0xFF800000> : vector<8x2x8x32xf32>
    %10 = vector.multi_reduction <maximumf>, %9, %cst_7 [3] : vector<8x2x8x2x32xf32> to vector<8x2x8x32xf32>
    %cst_8 = arith.constant dense<0xFF800000> : vector<8x8x32xf32>
    %11 = vector.multi_reduction <maximumf>, %10, %cst_8 [1] : vector<8x2x8x32xf32> to vector<8x8x32xf32>
    %cst_9 = arith.constant 0.000000e+00 : f32
    %12 = vector.broadcast %cst_9 : f32 to vector<12x24x32xf32>
    %c0_10 = arith.constant 0 : index
    %c0_11 = arith.constant 0 : index
    %c0_12 = arith.constant 0 : index
    %13 = vector.load %arg13[%c0_10, %c0_11, %c0_12] : memref<12x24x32xf32, #tpu.memory_space<vmem>>, vector<12x24x32xf32>
    tpu.vector_store %arg13[%c0_10, %c0_11, %c0_12], %12 {strides = array<i32>} : memref<12x24x32xf32, #tpu.memory_space<vmem>>, vector<12x24x32xf32>,
    %c2 = arith.constant 2 : index
    %c8 = arith.constant 8 : index
    %c0_13 = arith.constant 0 : index
    %14 = vector.load %arg13[%c2, %c8, %c0_13] : memref<12x24x32xf32, #tpu.memory_space<vmem>>, vector<8x8x32xf32>
    tpu.vector_store %arg13[%c2, %c8, %c0_13], %11 {strides = array<i32>} : memref<12x24x32xf32, #tpu.memory_space<vmem>>, vector<8x8x32xf32>,
    %cst_14 = arith.constant 0.000000e+00 : f32
    %15 = vector.broadcast %cst_14 : f32 to vector<64x64xf32>
    %cst_15 = arith.constant 0.000000e+00 : f32
    %16 = vector.broadcast %cst_15 : f32 to vector<64x64xf32>
    %c0_16 = arith.constant 0 : index
    %c6 = arith.constant 6 : index
    %c0_17 = arith.constant 0 : index
    %17 = vector.load %arg13[%c0_16, %c6, %c0_17] : memref<12x24x32xf32, #tpu.memory_space<vmem>>, vector<8x8x32xf32>
    %18 = vector.shape_cast %17 : vector<8x8x32xf32> to vector<64x32xf32>
    %19 = arith.truncf %18 : vector<64x32xf32> to vector<64x32xbf16>
    %c0_18 = arith.constant 0 : index
    %c0_19 = arith.constant 0 : index
    %c0_20 = arith.constant 0 : index
    %20 = vector.load %arg4[%c0_18, %c0_19, %c0_20] : memref<25x32x64xbf16, #tpu.memory_space<vmem>>, vector<1x32x64xbf16>
    %21 = vector.shape_cast %20 : vector<1x32x64xbf16> to vector<32x64xbf16>
    %cst_21 = arith.constant dense<0.000000e+00> : vector<64x64xf32>
    %22 = tpu.matmul %19, %21, %cst_21 {dimension_numbers = #tpu.dot_dimension_numbers<[1], [0], [0], [1], [0, 0, 1, 1], [], []>} : vector<64x32xbf16>, vector<32x64xbf16>, vector<64x64xf32> -> vector<64x64xf32>
    %23 = arith.addf %15, %22 : vector<64x64xf32>
    %c0_22 = arith.constant 0 : index
    %c7 = arith.constant 7 : index
    %c0_23 = arith.constant 0 : index
    %24 = vector.load %arg13[%c0_22, %c7, %c0_23] : memref<12x24x32xf32, #tpu.memory_space<vmem>>, vector<8x8x32xf32>
    %25 = vector.shape_cast %24 : vector<8x8x32xf32> to vector<64x32xf32>
    %26 = arith.truncf %25 : vector<64x32xf32> to vector<64x32xbf16>
    %c1 = arith.constant 1 : index
    %c0_24 = arith.constant 0 : index
    %c0_25 = arith.constant 0 : index
    %27 = vector.load %arg4[%c1, %c0_24, %c0_25] : memref<25x32x64xbf16, #tpu.memory_space<vmem>>, vector<1x32x64xbf16>
    %28 = vector.shape_cast %27 : vector<1x32x64xbf16> to vector<32x64xbf16>
    %cst_26 = arith.constant dense<0.000000e+00> : vector<64x64xf32>
    %29 = tpu.matmul %26, %28, %cst_26 {dimension_numbers = #tpu.dot_dimension_numbers<[1], [0], [0], [1], [0, 0, 1, 1], [], []>} : vector<64x32xbf16>, vector<32x64xbf16>, vector<64x64xf32> -> vector<64x64xf32>
    %30 = arith.addf %16, %29 : vector<64x64xf32>
    %c0_27 = arith.constant 0 : index
    %c8_28 = arith.constant 8 : index
    %c0_29 = arith.constant 0 : index
    %31 = vector.load %arg13[%c0_27, %c8_28, %c0_29] : memref<12x24x32xf32, #tpu.memory_space<vmem>>, vector<8x8x32xf32>
    %32 = vector.shape_cast %31 : vector<8x8x32xf32> to vector<64x32xf32>
    %33 = arith.truncf %32 : vector<64x32xf32> to vector<64x32xbf16>
    %c2_30 = arith.constant 2 : index
    %c0_31 = arith.constant 0 : index
    %c0_32 = arith.constant 0 : index
    %34 = vector.load %arg4[%c2_30, %c0_31, %c0_32] : memref<25x32x64xbf16, #tpu.memory_space<vmem>>, vector<1x32x64xbf16>
    %35 = vector.shape_cast %34 : vector<1x32x64xbf16> to vector<32x64xbf16>
    %cst_33 = arith.constant dense<0.000000e+00> : vector<64x64xf32>
    %36 = tpu.matmul %33, %35, %cst_33 {dimension_numbers = #tpu.dot_dimension_numbers<[1], [0], [0], [1], [0, 0, 1, 1], [], []>} : vector<64x32xbf16>, vector<32x64xbf16>, vector<64x64xf32> -> vector<64x64xf32>
    %37 = arith.addf %23, %36 : vector<64x64xf32>
    %c0_34 = arith.constant 0 : index
    %c9 = arith.constant 9 : index
    %c0_35 = arith.constant 0 : index
    %38 = vector.load %arg13[%c0_34, %c9, %c0_35] : memref<12x24x32xf32, #tpu.memory_space<vmem>>, vector<8x8x32xf32>
    %39 = vector.shape_cast %38 : vector<8x8x32xf32> to vector<64x32xf32>
    %40 = arith.truncf %39 : vector<64x32xf32> to vector<64x32xbf16>
    %c3 = arith.constant 3 : index
    %c0_36 = arith.constant 0 : index
    %c0_37 = arith.constant 0 : index
    %41 = vector.load %arg4[%c3, %c0_36, %c0_37] : memref<25x32x64xbf16, #tpu.memory_space<vmem>>, vector<1x32x64xbf16>
    %42 = vector.shape_cast %41 : vector<1x32x64xbf16> to vector<32x64xbf16>
    %cst_38 = arith.constant dense<0.000000e+00> : vector<64x64xf32>
    %43 = tpu.matmul %40, %42, %cst_38 {dimension_numbers = #tpu.dot_dimension_numbers<[1], [0], [0], [1], [0, 0, 1, 1], [], []>} : vector<64x32xbf16>, vector<32x64xbf16>, vector<64x64xf32> -> vector<64x64xf32>
    %44 = arith.addf %30, %43 : vector<64x64xf32>
    %c0_39 = arith.constant 0 : index
    %c10 = arith.constant 10 : index
    %c0_40 = arith.constant 0 : index
    %45 = vector.load %arg13[%c0_39, %c10, %c0_40] : memref<12x24x32xf32, #tpu.memory_space<vmem>>, vector<8x8x32xf32>
    %46 = vector.shape_cast %45 : vector<8x8x32xf32> to vector<64x32xf32>
    %47 = arith.truncf %46 : vector<64x32xf32> to vector<64x32xbf16>
    %c4 = arith.constant 4 : index
    %c0_41 = arith.constant 0 : index
    %c0_42 = arith.constant 0 : index
    %48 = vector.load %arg4[%c4, %c0_41, %c0_42] : memref<25x32x64xbf16, #tpu.memory_space<vmem>>, vector<1x32x64xbf16>
    %49 = vector.shape_cast %48 : vector<1x32x64xbf16> to vector<32x64xbf16>
    %cst_43 = arith.constant dense<0.000000e+00> : vector<64x64xf32>
    %50 = tpu.matmul %47, %49, %cst_43 {dimension_numbers = #tpu.dot_dimension_numbers<[1], [0], [0], [1], [0, 0, 1, 1], [], []>} : vector<64x32xbf16>, vector<32x64xbf16>, vector<64x64xf32> -> vector<64x64xf32>
    %51 = arith.addf %37, %50 : vector<64x64xf32>
    %c1_44 = arith.constant 1 : index
    %c6_45 = arith.constant 6 : index
    %c0_46 = arith.constant 0 : index
    %52 = vector.load %arg13[%c1_44, %c6_45, %c0_46] : memref<12x24x32xf32, #tpu.memory_space<vmem>>, vector<8x8x32xf32>
    %53 = vector.shape_cast %52 : vector<8x8x32xf32> to vector<64x32xf32>
    %54 = arith.truncf %53 : vector<64x32xf32> to vector<64x32xbf16>
    %c5 = arith.constant 5 : index
    %c0_47 = arith.constant 0 : index
    %c0_48 = arith.constant 0 : index
    %55 = vector.load %arg4[%c5, %c0_47, %c0_48] : memref<25x32x64xbf16, #tpu.memory_space<vmem>>, vector<1x32x64xbf16>
    %56 = vector.shape_cast %55 : vector<1x32x64xbf16> to vector<32x64xbf16>
    %cst_49 = arith.constant dense<0.000000e+00> : vector<64x64xf32>
    %57 = tpu.matmul %54, %56, %cst_49 {dimension_numbers = #tpu.dot_dimension_numbers<[1], [0], [0], [1], [0, 0, 1, 1], [], []>} : vector<64x32xbf16>, vector<32x64xbf16>, vector<64x64xf32> -> vector<64x64xf32>
    %58 = arith.addf %44, %57 : vector<64x64xf32>
    %c1_50 = arith.constant 1 : index
    %c7_51 = arith.constant 7 : index
    %c0_52 = arith.constant 0 : index
    %59 = vector.load %arg13[%c1_50, %c7_51, %c0_52] : memref<12x24x32xf32, #tpu.memory_space<vmem>>, vector<8x8x32xf32>
    %60 = vector.shape_cast %59 : vector<8x8x32xf32> to vector<64x32xf32>
    %61 = arith.truncf %60 : vector<64x32xf32> to vector<64x32xbf16>
    %c6_53 = arith.constant 6 : index
    %c0_54 = arith.constant 0 : index
    %c0_55 = arith.constant 0 : index
    %62 = vector.load %arg4[%c6_53, %c0_54, %c0_55] : memref<25x32x64xbf16, #tpu.memory_space<vmem>>, vector<1x32x64xbf16>
    %63 = vector.shape_cast %62 : vector<1x32x64xbf16> to vector<32x64xbf16>
    %cst_56 = arith.constant dense<0.000000e+00> : vector<64x64xf32>
    %64 = tpu.matmul %61, %63, %cst_56 {dimension_numbers = #tpu.dot_dimension_numbers<[1], [0], [0], [1], [0, 0, 1, 1], [], []>} : vector<64x32xbf16>, vector<32x64xbf16>, vector<64x64xf32> -> vector<64x64xf32>
    %65 = arith.addf %51, %64 : vector<64x64xf32>
    %c1_57 = arith.constant 1 : index
    %c8_58 = arith.constant 8 : index
    %c0_59 = arith.constant 0 : index
    %66 = vector.load %arg13[%c1_57, %c8_58, %c0_59] : memref<12x24x32xf32, #tpu.memory_space<vmem>>, vector<8x8x32xf32>
    %67 = vector.shape_cast %66 : vector<8x8x32xf32> to vector<64x32xf32>
    %68 = arith.truncf %67 : vector<64x32xf32> to vector<64x32xbf16>
    %c7_60 = arith.constant 7 : index
    %c0_61 = arith.constant 0 : index
    %c0_62 = arith.constant 0 : index
    %69 = vector.load %arg4[%c7_60, %c0_61, %c0_62] : memref<25x32x64xbf16, #tpu.memory_space<vmem>>, vector<1x32x64xbf16>
    %70 = vector.shape_cast %69 : vector<1x32x64xbf16> to vector<32x64xbf16>
    %cst_63 = arith.constant dense<0.000000e+00> : vector<64x64xf32>
    %71 = tpu.matmul %68, %70, %cst_63 {dimension_numbers = #tpu.dot_dimension_numbers<[1], [0], [0], [1], [0, 0, 1, 1], [], []>} : vector<64x32xbf16>, vector<32x64xbf16>, vector<64x64xf32> -> vector<64x64xf32>
    %72 = arith.addf %58, %71 : vector<64x64xf32>
    %c1_64 = arith.constant 1 : index
    %c9_65 = arith.constant 9 : index
    %c0_66 = arith.constant 0 : index
    %73 = vector.load %arg13[%c1_64, %c9_65, %c0_66] : memref<12x24x32xf32, #tpu.memory_space<vmem>>, vector<8x8x32xf32>
    %74 = vector.shape_cast %73 : vector<8x8x32xf32> to vector<64x32xf32>
    %75 = arith.truncf %74 : vector<64x32xf32> to vector<64x32xbf16>
    %c8_67 = arith.constant 8 : index
    %c0_68 = arith.constant 0 : index
    %c0_69 = arith.constant 0 : index
    %76 = vector.load %arg4[%c8_67, %c0_68, %c0_69] : memref<25x32x64xbf16, #tpu.memory_space<vmem>>, vector<1x32x64xbf16>
    %77 = vector.shape_cast %76 : vector<1x32x64xbf16> to vector<32x64xbf16>
    %cst_70 = arith.constant dense<0.000000e+00> : vector<64x64xf32>
    %78 = tpu.matmul %75, %77, %cst_70 {dimension_numbers = #tpu.dot_dimension_numbers<[1], [0], [0], [1], [0, 0, 1, 1], [], []>} : vector<64x32xbf16>, vector<32x64xbf16>, vector<64x64xf32> -> vector<64x64xf32>
    %79 = arith.addf %65, %78 : vector<64x64xf32>
    %c1_71 = arith.constant 1 : index
    %c10_72 = arith.constant 10 : index
    %c0_73 = arith.constant 0 : index
    %80 = vector.load %arg13[%c1_71, %c10_72, %c0_73] : memref<12x24x32xf32, #tpu.memory_space<vmem>>, vector<8x8x32xf32>
    %81 = vector.shape_cast %80 : vector<8x8x32xf32> to vector<64x32xf32>
    %82 = arith.truncf %81 : vector<64x32xf32> to vector<64x32xbf16>
    %c9_74 = arith.constant 9 : index
    %c0_75 = arith.constant 0 : index
    %c0_76 = arith.constant 0 : index
    %83 = vector.load %arg4[%c9_74, %c0_75, %c0_76] : memref<25x32x64xbf16, #tpu.memory_space<vmem>>, vector<1x32x64xbf16>
    %84 = vector.shape_cast %83 : vector<1x32x64xbf16> to vector<32x64xbf16>
    %cst_77 = arith.constant dense<0.000000e+00> : vector<64x64xf32>
    %85 = tpu.matmul %82, %84, %cst_77 {dimension_numbers = #tpu.dot_dimension_numbers<[1], [0], [0], [1], [0, 0, 1, 1], [], []>} : vector<64x32xbf16>, vector<32x64xbf16>, vector<64x64xf32> -> vector<64x64xf32>
    %86 = arith.addf %72, %85 : vector<64x64xf32>
    %c2_78 = arith.constant 2 : index
    %c6_79 = arith.constant 6 : index
    %c0_80 = arith.constant 0 : index
    %87 = vector.load %arg13[%c2_78, %c6_79, %c0_80] : memref<12x24x32xf32, #tpu.memory_space<vmem>>, vector<8x8x32xf32>
    %88 = vector.shape_cast %87 : vector<8x8x32xf32> to vector<64x32xf32>
    %89 = arith.truncf %88 : vector<64x32xf32> to vector<64x32xbf16>
    %c10_81 = arith.constant 10 : index
    %c0_82 = arith.constant 0 : index
    %c0_83 = arith.constant 0 : index
    %90 = vector.load %arg4[%c10_81, %c0_82, %c0_83] : memref<25x32x64xbf16, #tpu.memory_space<vmem>>, vector<1x32x64xbf16>
    %91 = vector.shape_cast %90 : vector<1x32x64xbf16> to vector<32x64xbf16>
    %cst_84 = arith.constant dense<0.000000e+00> : vector<64x64xf32>
    %92 = tpu.matmul %89, %91, %cst_84 {dimension_numbers = #tpu.dot_dimension_numbers<[1], [0], [0], [1], [0, 0, 1, 1], [], []>} : vector<64x32xbf16>, vector<32x64xbf16>, vector<64x64xf32> -> vector<64x64xf32>
    %93 = arith.addf %79, %92 : vector<64x64xf32>
    %c2_85 = arith.constant 2 : index
    %c7_86 = arith.constant 7 : index
    %c0_87 = arith.constant 0 : index
    %94 = vector.load %arg13[%c2_85, %c7_86, %c0_87] : memref<12x24x32xf32, #tpu.memory_space<vmem>>, vector<8x8x32xf32>
    %95 = vector.shape_cast %94 : vector<8x8x32xf32> to vector<64x32xf32>
    %96 = arith.truncf %95 : vector<64x32xf32> to vector<64x32xbf16>
    %c11 = arith.constant 11 : index
    %c0_88 = arith.constant 0 : index
    %c0_89 = arith.constant 0 : index
    %97 = vector.load %arg4[%c11, %c0_88, %c0_89] : memref<25x32x64xbf16, #tpu.memory_space<vmem>>, vector<1x32x64xbf16>
    %98 = vector.shape_cast %97 : vector<1x32x64xbf16> to vector<32x64xbf16>
    %cst_90 = arith.constant dense<0.000000e+00> : vector<64x64xf32>
    %99 = tpu.matmul %96, %98, %cst_90 {dimension_numbers = #tpu.dot_dimension_numbers<[1], [0], [0], [1], [0, 0, 1, 1], [], []>} : vector<64x32xbf16>, vector<32x64xbf16>, vector<64x64xf32> -> vector<64x64xf32>
    %100 = arith.addf %86, %99 : vector<64x64xf32>
    %c2_91 = arith.constant 2 : index
    %c8_92 = arith.constant 8 : index
    %c0_93 = arith.constant 0 : index
    %101 = vector.load %arg13[%c2_91, %c8_92, %c0_93] : memref<12x24x32xf32, #tpu.memory_space<vmem>>, vector<8x8x32xf32>
    %102 = vector.shape_cast %101 : vector<8x8x32xf32> to vector<64x32xf32>
    %103 = arith.truncf %102 : vector<64x32xf32> to vector<64x32xbf16>
    %c12 = arith.constant 12 : index
    %c0_94 = arith.constant 0 : index
    %c0_95 = arith.constant 0 : index
    %104 = vector.load %arg4[%c12, %c0_94, %c0_95] : memref<25x32x64xbf16, #tpu.memory_space<vmem>>, vector<1x32x64xbf16>
    %105 = vector.shape_cast %104 : vector<1x32x64xbf16> to vector<32x64xbf16>
    %cst_96 = arith.constant dense<0.000000e+00> : vector<64x64xf32>
    %106 = tpu.matmul %103, %105, %cst_96 {dimension_numbers = #tpu.dot_dimension_numbers<[1], [0], [0], [1], [0, 0, 1, 1], [], []>} : vector<64x32xbf16>, vector<32x64xbf16>, vector<64x64xf32> -> vector<64x64xf32>
    %107 = arith.addf %93, %106 : vector<64x64xf32>
    %c2_97 = arith.constant 2 : index
    %c9_98 = arith.constant 9 : index
    %c0_99 = arith.constant 0 : index
    %108 = vector.load %arg13[%c2_97, %c9_98, %c0_99] : memref<12x24x32xf32, #tpu.memory_space<vmem>>, vector<8x8x32xf32>
    %109 = vector.shape_cast %108 : vector<8x8x32xf32> to vector<64x32xf32>
    %110 = arith.truncf %109 : vector<64x32xf32> to vector<64x32xbf16>
    %c13 = arith.constant 13 : index
    %c0_100 = arith.constant 0 : index
    %c0_101 = arith.constant 0 : index
    %111 = vector.load %arg4[%c13, %c0_100, %c0_101] : memref<25x32x64xbf16, #tpu.memory_space<vmem>>, vector<1x32x64xbf16>
    %112 = vector.shape_cast %111 : vector<1x32x64xbf16> to vector<32x64xbf16>
    %cst_102 = arith.constant dense<0.000000e+00> : vector<64x64xf32>
    %113 = tpu.matmul %110, %112, %cst_102 {dimension_numbers = #tpu.dot_dimension_numbers<[1], [0], [0], [1], [0, 0, 1, 1], [], []>} : vector<64x32xbf16>, vector<32x64xbf16>, vector<64x64xf32> -> vector<64x64xf32>
    %114 = arith.addf %100, %113 : vector<64x64xf32>
    %c2_103 = arith.constant 2 : index
    %c10_104 = arith.constant 10 : index
    %c0_105 = arith.constant 0 : index
    %115 = vector.load %arg13[%c2_103, %c10_104, %c0_105] : memref<12x24x32xf32, #tpu.memory_space<vmem>>, vector<8x8x32xf32>
    %116 = vector.shape_cast %115 : vector<8x8x32xf32> to vector<64x32xf32>
    %117 = arith.truncf %116 : vector<64x32xf32> to vector<64x32xbf16>
    %c14 = arith.constant 14 : index
    %c0_106 = arith.constant 0 : index
    %c0_107 = arith.constant 0 : index
    %118 = vector.load %arg4[%c14, %c0_106, %c0_107] : memref<25x32x64xbf16, #tpu.memory_space<vmem>>, vector<1x32x64xbf16>
    %119 = vector.shape_cast %118 : vector<1x32x64xbf16> to vector<32x64xbf16>
    %cst_108 = arith.constant dense<0.000000e+00> : vector<64x64xf32>
    %120 = tpu.matmul %117, %119, %cst_108 {dimension_numbers = #tpu.dot_dimension_numbers<[1], [0], [0], [1], [0, 0, 1, 1], [], []>} : vector<64x32xbf16>, vector<32x64xbf16>, vector<64x64xf32> -> vector<64x64xf32>
    %121 = arith.addf %107, %120 : vector<64x64xf32>
    %c3_109 = arith.constant 3 : index
    %c6_110 = arith.constant 6 : index
    %c0_111 = arith.constant 0 : index
    %122 = vector.load %arg13[%c3_109, %c6_110, %c0_111] : memref<12x24x32xf32, #tpu.memory_space<vmem>>, vector<8x8x32xf32>
    %123 = vector.shape_cast %122 : vector<8x8x32xf32> to vector<64x32xf32>
    %124 = arith.truncf %123 : vector<64x32xf32> to vector<64x32xbf16>
    %c15 = arith.constant 15 : index
    %c0_112 = arith.constant 0 : index
    %c0_113 = arith.constant 0 : index
    %125 = vector.load %arg4[%c15, %c0_112, %c0_113] : memref<25x32x64xbf16, #tpu.memory_space<vmem>>, vector<1x32x64xbf16>
    %126 = vector.shape_cast %125 : vector<1x32x64xbf16> to vector<32x64xbf16>
    %cst_114 = arith.constant dense<0.000000e+00> : vector<64x64xf32>
    %127 = tpu.matmul %124, %126, %cst_114 {dimension_numbers = #tpu.dot_dimension_numbers<[1], [0], [0], [1], [0, 0, 1, 1], [], []>} : vector<64x32xbf16>, vector<32x64xbf16>, vector<64x64xf32> -> vector<64x64xf32>
    %128 = arith.addf %114, %127 : vector<64x64xf32>
    %c3_115 = arith.constant 3 : index
    %c7_116 = arith.constant 7 : index
    %c0_117 = arith.constant 0 : index
    %129 = vector.load %arg13[%c3_115, %c7_116, %c0_117] : memref<12x24x32xf32, #tpu.memory_space<vmem>>, vector<8x8x32xf32>
    %130 = vector.shape_cast %129 : vector<8x8x32xf32> to vector<64x32xf32>
    %131 = arith.truncf %130 : vector<64x32xf32> to vector<64x32xbf16>
    %c16 = arith.constant 16 : index
    %c0_118 = arith.constant 0 : index
    %c0_119 = arith.constant 0 : index
    %132 = vector.load %arg4[%c16, %c0_118, %c0_119] : memref<25x32x64xbf16, #tpu.memory_space<vmem>>, vector<1x32x64xbf16>
    %133 = vector.shape_cast %132 : vector<1x32x64xbf16> to vector<32x64xbf16>
    %cst_120 = arith.constant dense<0.000000e+00> : vector<64x64xf32>
    %134 = tpu.matmul %131, %133, %cst_120 {dimension_numbers = #tpu.dot_dimension_numbers<[1], [0], [0], [1], [0, 0, 1, 1], [], []>} : vector<64x32xbf16>, vector<32x64xbf16>, vector<64x64xf32> -> vector<64x64xf32>
    %135 = arith.addf %121, %134 : vector<64x64xf32>
    %c3_121 = arith.constant 3 : index
    %c8_122 = arith.constant 8 : index
    %c0_123 = arith.constant 0 : index
    %136 = vector.load %arg13[%c3_121, %c8_122, %c0_123] : memref<12x24x32xf32, #tpu.memory_space<vmem>>, vector<8x8x32xf32>
    %137 = vector.shape_cast %136 : vector<8x8x32xf32> to vector<64x32xf32>
    %138 = arith.truncf %137 : vector<64x32xf32> to vector<64x32xbf16>
    %c17 = arith.constant 17 : index
    %c0_124 = arith.constant 0 : index
    %c0_125 = arith.constant 0 : index
    %139 = vector.load %arg4[%c17, %c0_124, %c0_125] : memref<25x32x64xbf16, #tpu.memory_space<vmem>>, vector<1x32x64xbf16>
    %140 = vector.shape_cast %139 : vector<1x32x64xbf16> to vector<32x64xbf16>
    %cst_126 = arith.constant dense<0.000000e+00> : vector<64x64xf32>
    %141 = tpu.matmul %138, %140, %cst_126 {dimension_numbers = #tpu.dot_dimension_numbers<[1], [0], [0], [1], [0, 0, 1, 1], [], []>} : vector<64x32xbf16>, vector<32x64xbf16>, vector<64x64xf32> -> vector<64x64xf32>
    %142 = arith.addf %128, %141 : vector<64x64xf32>
    %c3_127 = arith.constant 3 : index
    %c9_128 = arith.constant 9 : index
    %c0_129 = arith.constant 0 : index
    %143 = vector.load %arg13[%c3_127, %c9_128, %c0_129] : memref<12x24x32xf32, #tpu.memory_space<vmem>>, vector<8x8x32xf32>
    %144 = vector.shape_cast %143 : vector<8x8x32xf32> to vector<64x32xf32>
    %145 = arith.truncf %144 : vector<64x32xf32> to vector<64x32xbf16>
    %c18 = arith.constant 18 : index
    %c0_130 = arith.constant 0 : index
    %c0_131 = arith.constant 0 : index
    %146 = vector.load %arg4[%c18, %c0_130, %c0_131] : memref<25x32x64xbf16, #tpu.memory_space<vmem>>, vector<1x32x64xbf16>
    %147 = vector.shape_cast %146 : vector<1x32x64xbf16> to vector<32x64xbf16>
    %cst_132 = arith.constant dense<0.000000e+00> : vector<64x64xf32>
    %148 = tpu.matmul %145, %147, %cst_132 {dimension_numbers = #tpu.dot_dimension_numbers<[1], [0], [0], [1], [0, 0, 1, 1], [], []>} : vector<64x32xbf16>, vector<32x64xbf16>, vector<64x64xf32> -> vector<64x64xf32>
    %149 = arith.addf %135, %148 : vector<64x64xf32>
    %c3_133 = arith.constant 3 : index
    %c10_134 = arith.constant 10 : index
    %c0_135 = arith.constant 0 : index
    %150 = vector.load %arg13[%c3_133, %c10_134, %c0_135] : memref<12x24x32xf32, #tpu.memory_space<vmem>>, vector<8x8x32xf32>
    %151 = vector.shape_cast %150 : vector<8x8x32xf32> to vector<64x32xf32>
    %152 = arith.truncf %151 : vector<64x32xf32> to vector<64x32xbf16>
    %c19 = arith.constant 19 : index
    %c0_136 = arith.constant 0 : index
    %c0_137 = arith.constant 0 : index
    %153 = vector.load %arg4[%c19, %c0_136, %c0_137] : memref<25x32x64xbf16, #tpu.memory_space<vmem>>, vector<1x32x64xbf16>
    %154 = vector.shape_cast %153 : vector<1x32x64xbf16> to vector<32x64xbf16>
    %cst_138 = arith.constant dense<0.000000e+00> : vector<64x64xf32>
    %155 = tpu.matmul %152, %154, %cst_138 {dimension_numbers = #tpu.dot_dimension_numbers<[1], [0], [0], [1], [0, 0, 1, 1], [], []>} : vector<64x32xbf16>, vector<32x64xbf16>, vector<64x64xf32> -> vector<64x64xf32>
    %156 = arith.addf %142, %155 : vector<64x64xf32>
    %c4_139 = arith.constant 4 : index
    %c6_140 = arith.constant 6 : index
    %c0_141 = arith.constant 0 : index
    %157 = vector.load %arg13[%c4_139, %c6_140, %c0_141] : memref<12x24x32xf32, #tpu.memory_space<vmem>>, vector<8x8x32xf32>
    %158 = vector.shape_cast %157 : vector<8x8x32xf32> to vector<64x32xf32>
    %159 = arith.truncf %158 : vector<64x32xf32> to vector<64x32xbf16>
    %c20 = arith.constant 20 : index
    %c0_142 = arith.constant 0 : index
    %c0_143 = arith.constant 0 : index
    %160 = vector.load %arg4[%c20, %c0_142, %c0_143] : memref<25x32x64xbf16, #tpu.memory_space<vmem>>, vector<1x32x64xbf16>
    %161 = vector.shape_cast %160 : vector<1x32x64xbf16> to vector<32x64xbf16>
    %cst_144 = arith.constant dense<0.000000e+00> : vector<64x64xf32>
    %162 = tpu.matmul %159, %161, %cst_144 {dimension_numbers = #tpu.dot_dimension_numbers<[1], [0], [0], [1], [0, 0, 1, 1], [], []>} : vector<64x32xbf16>, vector<32x64xbf16>, vector<64x64xf32> -> vector<64x64xf32>
    %163 = arith.addf %149, %162 : vector<64x64xf32>
    %c4_145 = arith.constant 4 : index
    %c7_146 = arith.constant 7 : index
    %c0_147 = arith.constant 0 : index
    %164 = vector.load %arg13[%c4_145, %c7_146, %c0_147] : memref<12x24x32xf32, #tpu.memory_space<vmem>>, vector<8x8x32xf32>
    %165 = vector.shape_cast %164 : vector<8x8x32xf32> to vector<64x32xf32>
    %166 = arith.truncf %165 : vector<64x32xf32> to vector<64x32xbf16>
    %c21 = arith.constant 21 : index
    %c0_148 = arith.constant 0 : index
    %c0_149 = arith.constant 0 : index
    %167 = vector.load %arg4[%c21, %c0_148, %c0_149] : memref<25x32x64xbf16, #tpu.memory_space<vmem>>, vector<1x32x64xbf16>
    %168 = vector.shape_cast %167 : vector<1x32x64xbf16> to vector<32x64xbf16>
    %cst_150 = arith.constant dense<0.000000e+00> : vector<64x64xf32>
    %169 = tpu.matmul %166, %168, %cst_150 {dimension_numbers = #tpu.dot_dimension_numbers<[1], [0], [0], [1], [0, 0, 1, 1], [], []>} : vector<64x32xbf16>, vector<32x64xbf16>, vector<64x64xf32> -> vector<64x64xf32>
    %170 = arith.addf %156, %169 : vector<64x64xf32>
    %c4_151 = arith.constant 4 : index
    %c8_152 = arith.constant 8 : index
    %c0_153 = arith.constant 0 : index
    %171 = vector.load %arg13[%c4_151, %c8_152, %c0_153] : memref<12x24x32xf32, #tpu.memory_space<vmem>>, vector<8x8x32xf32>
    %172 = vector.shape_cast %171 : vector<8x8x32xf32> to vector<64x32xf32>
    %173 = arith.truncf %172 : vector<64x32xf32> to vector<64x32xbf16>
    %c22 = arith.constant 22 : index
    %c0_154 = arith.constant 0 : index
    %c0_155 = arith.constant 0 : index
    %174 = vector.load %arg4[%c22, %c0_154, %c0_155] : memref<25x32x64xbf16, #tpu.memory_space<vmem>>, vector<1x32x64xbf16>
    %175 = vector.shape_cast %174 : vector<1x32x64xbf16> to vector<32x64xbf16>
    %cst_156 = arith.constant dense<0.000000e+00> : vector<64x64xf32>
    %176 = tpu.matmul %173, %175, %cst_156 {dimension_numbers = #tpu.dot_dimension_numbers<[1], [0], [0], [1], [0, 0, 1, 1], [], []>} : vector<64x32xbf16>, vector<32x64xbf16>, vector<64x64xf32> -> vector<64x64xf32>
    %177 = arith.addf %163, %176 : vector<64x64xf32>
    %c4_157 = arith.constant 4 : index
    %c9_158 = arith.constant 9 : index
    %c0_159 = arith.constant 0 : index
    %178 = vector.load %arg13[%c4_157, %c9_158, %c0_159] : memref<12x24x32xf32, #tpu.memory_space<vmem>>, vector<8x8x32xf32>
    %179 = vector.shape_cast %178 : vector<8x8x32xf32> to vector<64x32xf32>
    %180 = arith.truncf %179 : vector<64x32xf32> to vector<64x32xbf16>
    %c23 = arith.constant 23 : index
    %c0_160 = arith.constant 0 : index
    %c0_161 = arith.constant 0 : index
    %181 = vector.load %arg4[%c23, %c0_160, %c0_161] : memref<25x32x64xbf16, #tpu.memory_space<vmem>>, vector<1x32x64xbf16>
    %182 = vector.shape_cast %181 : vector<1x32x64xbf16> to vector<32x64xbf16>
    %cst_162 = arith.constant dense<0.000000e+00> : vector<64x64xf32>
    %183 = tpu.matmul %180, %182, %cst_162 {dimension_numbers = #tpu.dot_dimension_numbers<[1], [0], [0], [1], [0, 0, 1, 1], [], []>} : vector<64x32xbf16>, vector<32x64xbf16>, vector<64x64xf32> -> vector<64x64xf32>
    %184 = arith.addf %170, %183 : vector<64x64xf32>
    %c4_163 = arith.constant 4 : index
    %c10_164 = arith.constant 10 : index
    %c0_165 = arith.constant 0 : index
    %185 = vector.load %arg13[%c4_163, %c10_164, %c0_165] : memref<12x24x32xf32, #tpu.memory_space<vmem>>, vector<8x8x32xf32>
    %186 = vector.shape_cast %185 : vector<8x8x32xf32> to vector<64x32xf32>
    %187 = arith.truncf %186 : vector<64x32xf32> to vector<64x32xbf16>
    %c24 = arith.constant 24 : index
    %c0_166 = arith.constant 0 : index
    %c0_167 = arith.constant 0 : index
    %188 = vector.load %arg4[%c24, %c0_166, %c0_167] : memref<25x32x64xbf16, #tpu.memory_space<vmem>>, vector<1x32x64xbf16>
    %189 = vector.shape_cast %188 : vector<1x32x64xbf16> to vector<32x64xbf16>
    %cst_168 = arith.constant dense<0.000000e+00> : vector<64x64xf32>
    %190 = tpu.matmul %187, %189, %cst_168 {dimension_numbers = #tpu.dot_dimension_numbers<[1], [0], [0], [1], [0, 0, 1, 1], [], []>} : vector<64x32xbf16>, vector<32x64xbf16>, vector<64x64xf32> -> vector<64x64xf32>
    %191 = arith.addf %177, %190 : vector<64x64xf32>
    %192 = arith.addf %191, %184 : vector<64x64xf32>
    %c0_169 = arith.constant 0 : index
    %c0_170 = arith.constant 0 : index
    %193 = vector.load %arg5[%c0_169, %c0_170] : memref<1x64xf32, #tpu.memory_space<vmem>>, vector<1x64xf32>
    %194 = vector.broadcast %193 : vector<1x64xf32> to vector<64x64xf32>
    %195 = arith.addf %192, %194 : vector<64x64xf32>
    %cst_171 = arith.constant 0.000000e+00 : f32
    %196 = vector.broadcast %cst_171 : f32 to vector<64x64xf32>
    %197 = arith.maximumf %195, %196 : vector<64x64xf32>
    %198 = vector.shape_cast %197 : vector<64x64xf32> to vector<4x2x4x2x64xf32>
    %cst_172 = arith.constant dense<0xFF800000> : vector<4x2x4x64xf32>
    %199 = vector.multi_reduction <maximumf>, %198, %cst_172 [3] : vector<4x2x4x2x64xf32> to vector<4x2x4x64xf32>
    %cst_173 = arith.constant dense<0xFF800000> : vector<4x4x64xf32>
    %200 = vector.multi_reduction <maximumf>, %199, %cst_173 [1] : vector<4x2x4x64xf32> to vector<4x4x64xf32>
    %cst_174 = arith.constant 0.000000e+00 : f32
    %201 = vector.broadcast %cst_174 : f32 to vector<6x16x64xf32>
    %c0_175 = arith.constant 0 : index
    %c0_176 = arith.constant 0 : index
    %c0_177 = arith.constant 0 : index
    %202 = vector.load %arg14[%c0_175, %c0_176, %c0_177] : memref<6x16x64xf32, #tpu.memory_space<vmem>>, vector<6x16x64xf32>
    tpu.vector_store %arg14[%c0_175, %c0_176, %c0_177], %201 {strides = array<i32>} : memref<6x16x64xf32, #tpu.memory_space<vmem>>, vector<6x16x64xf32>,
    %c1_178 = arith.constant 1 : index
    %c8_179 = arith.constant 8 : index
    %c0_180 = arith.constant 0 : index
    %203 = vector.load %arg14[%c1_178, %c8_179, %c0_180] : memref<6x16x64xf32, #tpu.memory_space<vmem>>, vector<4x4x64xf32>
    tpu.vector_store %arg14[%c1_178, %c8_179, %c0_180], %200 {strides = array<i32>} : memref<6x16x64xf32, #tpu.memory_space<vmem>>, vector<4x4x64xf32>,
    %cst_181 = arith.constant 0.000000e+00 : f32
    %204 = vector.broadcast %cst_181 : f32 to vector<16x64xf32>
    %cst_182 = arith.constant 0.000000e+00 : f32
    %205 = vector.broadcast %cst_182 : f32 to vector<16x64xf32>
    %c0_183 = arith.constant 0 : index
    %c7_184 = arith.constant 7 : index
    %c0_185 = arith.constant 0 : index
    %206 = vector.load %arg14[%c0_183, %c7_184, %c0_185] : memref<6x16x64xf32, #tpu.memory_space<vmem>>, vector<4x4x64xf32>
    %207 = vector.shape_cast %206 : vector<4x4x64xf32> to vector<16x64xf32>
    %208 = arith.truncf %207 : vector<16x64xf32> to vector<16x64xbf16>
    %c0_186 = arith.constant 0 : index
    %c0_187 = arith.constant 0 : index
    %c0_188 = arith.constant 0 : index
    %209 = vector.load %arg6[%c0_186, %c0_187, %c0_188] : memref<9x64x64xbf16, #tpu.memory_space<vmem>>, vector<1x64x64xbf16>
    %210 = vector.shape_cast %209 : vector<1x64x64xbf16> to vector<64x64xbf16>
    %cst_189 = arith.constant dense<0.000000e+00> : vector<16x64xf32>
    %211 = tpu.matmul %208, %210, %cst_189 {dimension_numbers = #tpu.dot_dimension_numbers<[1], [0], [0], [1], [0, 0, 1, 1], [], []>} : vector<16x64xbf16>, vector<64x64xbf16>, vector<16x64xf32> -> vector<16x64xf32>
    %212 = arith.addf %204, %211 : vector<16x64xf32>
    %c0_190 = arith.constant 0 : index
    %c8_191 = arith.constant 8 : index
    %c0_192 = arith.constant 0 : index
    %213 = vector.load %arg14[%c0_190, %c8_191, %c0_192] : memref<6x16x64xf32, #tpu.memory_space<vmem>>, vector<4x4x64xf32>
    %214 = vector.shape_cast %213 : vector<4x4x64xf32> to vector<16x64xf32>
    %215 = arith.truncf %214 : vector<16x64xf32> to vector<16x64xbf16>
    %c1_193 = arith.constant 1 : index
    %c0_194 = arith.constant 0 : index
    %c0_195 = arith.constant 0 : index
    %216 = vector.load %arg6[%c1_193, %c0_194, %c0_195] : memref<9x64x64xbf16, #tpu.memory_space<vmem>>, vector<1x64x64xbf16>
    %217 = vector.shape_cast %216 : vector<1x64x64xbf16> to vector<64x64xbf16>
    %cst_196 = arith.constant dense<0.000000e+00> : vector<16x64xf32>
    %218 = tpu.matmul %215, %217, %cst_196 {dimension_numbers = #tpu.dot_dimension_numbers<[1], [0], [0], [1], [0, 0, 1, 1], [], []>} : vector<16x64xbf16>, vector<64x64xbf16>, vector<16x64xf32> -> vector<16x64xf32>
    %219 = arith.addf %205, %218 : vector<16x64xf32>
    %c0_197 = arith.constant 0 : index
    %c9_198 = arith.constant 9 : index
    %c0_199 = arith.constant 0 : index
    %220 = vector.load %arg14[%c0_197, %c9_198, %c0_199] : memref<6x16x64xf32, #tpu.memory_space<vmem>>, vector<4x4x64xf32>
    %221 = vector.shape_cast %220 : vector<4x4x64xf32> to vector<16x64xf32>
    %222 = arith.truncf %221 : vector<16x64xf32> to vector<16x64xbf16>
    %c2_200 = arith.constant 2 : index
    %c0_201 = arith.constant 0 : index
    %c0_202 = arith.constant 0 : index
    %223 = vector.load %arg6[%c2_200, %c0_201, %c0_202] : memref<9x64x64xbf16, #tpu.memory_space<vmem>>, vector<1x64x64xbf16>
    %224 = vector.shape_cast %223 : vector<1x64x64xbf16> to vector<64x64xbf16>
    %cst_203 = arith.constant dense<0.000000e+00> : vector<16x64xf32>
    %225 = tpu.matmul %222, %224, %cst_203 {dimension_numbers = #tpu.dot_dimension_numbers<[1], [0], [0], [1], [0, 0, 1, 1], [], []>} : vector<16x64xbf16>, vector<64x64xbf16>, vector<16x64xf32> -> vector<16x64xf32>
    %226 = arith.addf %212, %225 : vector<16x64xf32>
    %c1_204 = arith.constant 1 : index
    %c7_205 = arith.constant 7 : index
    %c0_206 = arith.constant 0 : index
    %227 = vector.load %arg14[%c1_204, %c7_205, %c0_206] : memref<6x16x64xf32, #tpu.memory_space<vmem>>, vector<4x4x64xf32>
    %228 = vector.shape_cast %227 : vector<4x4x64xf32> to vector<16x64xf32>
    %229 = arith.truncf %228 : vector<16x64xf32> to vector<16x64xbf16>
    %c3_207 = arith.constant 3 : index
    %c0_208 = arith.constant 0 : index
    %c0_209 = arith.constant 0 : index
    %230 = vector.load %arg6[%c3_207, %c0_208, %c0_209] : memref<9x64x64xbf16, #tpu.memory_space<vmem>>, vector<1x64x64xbf16>
    %231 = vector.shape_cast %230 : vector<1x64x64xbf16> to vector<64x64xbf16>
    %cst_210 = arith.constant dense<0.000000e+00> : vector<16x64xf32>
    %232 = tpu.matmul %229, %231, %cst_210 {dimension_numbers = #tpu.dot_dimension_numbers<[1], [0], [0], [1], [0, 0, 1, 1], [], []>} : vector<16x64xbf16>, vector<64x64xbf16>, vector<16x64xf32> -> vector<16x64xf32>
    %233 = arith.addf %219, %232 : vector<16x64xf32>
    %c1_211 = arith.constant 1 : index
    %c8_212 = arith.constant 8 : index
    %c0_213 = arith.constant 0 : index
    %234 = vector.load %arg14[%c1_211, %c8_212, %c0_213] : memref<6x16x64xf32, #tpu.memory_space<vmem>>, vector<4x4x64xf32>
    %235 = vector.shape_cast %234 : vector<4x4x64xf32> to vector<16x64xf32>
    %236 = arith.truncf %235 : vector<16x64xf32> to vector<16x64xbf16>
    %c4_214 = arith.constant 4 : index
    %c0_215 = arith.constant 0 : index
    %c0_216 = arith.constant 0 : index
    %237 = vector.load %arg6[%c4_214, %c0_215, %c0_216] : memref<9x64x64xbf16, #tpu.memory_space<vmem>>, vector<1x64x64xbf16>
    %238 = vector.shape_cast %237 : vector<1x64x64xbf16> to vector<64x64xbf16>
    %cst_217 = arith.constant dense<0.000000e+00> : vector<16x64xf32>
    %239 = tpu.matmul %236, %238, %cst_217 {dimension_numbers = #tpu.dot_dimension_numbers<[1], [0], [0], [1], [0, 0, 1, 1], [], []>} : vector<16x64xbf16>, vector<64x64xbf16>, vector<16x64xf32> -> vector<16x64xf32>
    %240 = arith.addf %226, %239 : vector<16x64xf32>
    %c1_218 = arith.constant 1 : index
    %c9_219 = arith.constant 9 : index
    %c0_220 = arith.constant 0 : index
    %241 = vector.load %arg14[%c1_218, %c9_219, %c0_220] : memref<6x16x64xf32, #tpu.memory_space<vmem>>, vector<4x4x64xf32>
    %242 = vector.shape_cast %241 : vector<4x4x64xf32> to vector<16x64xf32>
    %243 = arith.truncf %242 : vector<16x64xf32> to vector<16x64xbf16>
    %c5_221 = arith.constant 5 : index
    %c0_222 = arith.constant 0 : index
    %c0_223 = arith.constant 0 : index
    %244 = vector.load %arg6[%c5_221, %c0_222, %c0_223] : memref<9x64x64xbf16, #tpu.memory_space<vmem>>, vector<1x64x64xbf16>
    %245 = vector.shape_cast %244 : vector<1x64x64xbf16> to vector<64x64xbf16>
    %cst_224 = arith.constant dense<0.000000e+00> : vector<16x64xf32>
    %246 = tpu.matmul %243, %245, %cst_224 {dimension_numbers = #tpu.dot_dimension_numbers<[1], [0], [0], [1], [0, 0, 1, 1], [], []>} : vector<16x64xbf16>, vector<64x64xbf16>, vector<16x64xf32> -> vector<16x64xf32>
    %247 = arith.addf %233, %246 : vector<16x64xf32>
    %c2_225 = arith.constant 2 : index
    %c7_226 = arith.constant 7 : index
    %c0_227 = arith.constant 0 : index
    %248 = vector.load %arg14[%c2_225, %c7_226, %c0_227] : memref<6x16x64xf32, #tpu.memory_space<vmem>>, vector<4x4x64xf32>
    %249 = vector.shape_cast %248 : vector<4x4x64xf32> to vector<16x64xf32>
    %250 = arith.truncf %249 : vector<16x64xf32> to vector<16x64xbf16>
    %c6_228 = arith.constant 6 : index
    %c0_229 = arith.constant 0 : index
    %c0_230 = arith.constant 0 : index
    %251 = vector.load %arg6[%c6_228, %c0_229, %c0_230] : memref<9x64x64xbf16, #tpu.memory_space<vmem>>, vector<1x64x64xbf16>
    %252 = vector.shape_cast %251 : vector<1x64x64xbf16> to vector<64x64xbf16>
    %cst_231 = arith.constant dense<0.000000e+00> : vector<16x64xf32>
    %253 = tpu.matmul %250, %252, %cst_231 {dimension_numbers = #tpu.dot_dimension_numbers<[1], [0], [0], [1], [0, 0, 1, 1], [], []>} : vector<16x64xbf16>, vector<64x64xbf16>, vector<16x64xf32> -> vector<16x64xf32>
    %254 = arith.addf %240, %253 : vector<16x64xf32>
    %c2_232 = arith.constant 2 : index
    %c8_233 = arith.constant 8 : index
    %c0_234 = arith.constant 0 : index
    %255 = vector.load %arg14[%c2_232, %c8_233, %c0_234] : memref<6x16x64xf32, #tpu.memory_space<vmem>>, vector<4x4x64xf32>
    %256 = vector.shape_cast %255 : vector<4x4x64xf32> to vector<16x64xf32>
    %257 = arith.truncf %256 : vector<16x64xf32> to vector<16x64xbf16>
    %c7_235 = arith.constant 7 : index
    %c0_236 = arith.constant 0 : index
    %c0_237 = arith.constant 0 : index
    %258 = vector.load %arg6[%c7_235, %c0_236, %c0_237] : memref<9x64x64xbf16, #tpu.memory_space<vmem>>, vector<1x64x64xbf16>
    %259 = vector.shape_cast %258 : vector<1x64x64xbf16> to vector<64x64xbf16>
    %cst_238 = arith.constant dense<0.000000e+00> : vector<16x64xf32>
    %260 = tpu.matmul %257, %259, %cst_238 {dimension_numbers = #tpu.dot_dimension_numbers<[1], [0], [0], [1], [0, 0, 1, 1], [], []>} : vector<16x64xbf16>, vector<64x64xbf16>, vector<16x64xf32> -> vector<16x64xf32>
    %261 = arith.addf %247, %260 : vector<16x64xf32>
    %c2_239 = arith.constant 2 : index
    %c9_240 = arith.constant 9 : index
    %c0_241 = arith.constant 0 : index
    %262 = vector.load %arg14[%c2_239, %c9_240, %c0_241] : memref<6x16x64xf32, #tpu.memory_space<vmem>>, vector<4x4x64xf32>
    %263 = vector.shape_cast %262 : vector<4x4x64xf32> to vector<16x64xf32>
    %264 = arith.truncf %263 : vector<16x64xf32> to vector<16x64xbf16>
    %c8_242 = arith.constant 8 : index
    %c0_243 = arith.constant 0 : index
    %c0_244 = arith.constant 0 : index
    %265 = vector.load %arg6[%c8_242, %c0_243, %c0_244] : memref<9x64x64xbf16, #tpu.memory_space<vmem>>, vector<1x64x64xbf16>
    %266 = vector.shape_cast %265 : vector<1x64x64xbf16> to vector<64x64xbf16>
    %cst_245 = arith.constant dense<0.000000e+00> : vector<16x64xf32>
    %267 = tpu.matmul %264, %266, %cst_245 {dimension_numbers = #tpu.dot_dimension_numbers<[1], [0], [0], [1], [0, 0, 1, 1], [], []>} : vector<16x64xbf16>, vector<64x64xbf16>, vector<16x64xf32> -> vector<16x64xf32>
    %268 = arith.addf %254, %267 : vector<16x64xf32>
    %269 = arith.addf %268, %261 : vector<16x64xf32>
    %c0_246 = arith.constant 0 : index
    %c0_247 = arith.constant 0 : index
    %270 = vector.load %arg7[%c0_246, %c0_247] : memref<1x64xf32, #tpu.memory_space<vmem>>, vector<1x64xf32>
    %271 = vector.broadcast %270 : vector<1x64xf32> to vector<16x64xf32>
    %272 = arith.addf %269, %271 : vector<16x64xf32>
    %cst_248 = arith.constant 0.000000e+00 : f32
    %273 = vector.broadcast %cst_248 : f32 to vector<16x64xf32>
    %274 = arith.maximumf %272, %273 : vector<16x64xf32>
    %275 = vector.shape_cast %274 : vector<16x64xf32> to vector<2x2x2x2x64xf32>
    %cst_249 = arith.constant dense<0xFF800000> : vector<2x2x2x64xf32>
    %276 = vector.multi_reduction <maximumf>, %275, %cst_249 [3] : vector<2x2x2x2x64xf32> to vector<2x2x2x64xf32>
    %cst_250 = arith.constant dense<0xFF800000> : vector<2x2x64xf32>
    %277 = vector.multi_reduction <maximumf>, %276, %cst_250 [1] : vector<2x2x2x64xf32> to vector<2x2x64xf32>
    %278 = vector.shape_cast %277 : vector<2x2x64xf32> to vector<4x64xf32>
    %c0_251 = arith.constant 0 : index
    %c0_252 = arith.constant 0 : index
    %279 = vector.load %arg15[%c0_251, %c0_252] : memref<4x64xf32, #tpu.memory_space<vmem>>, vector<4x64xf32>
    tpu.vector_store %arg15[%c0_251, %c0_252], %278 {strides = array<i32>} : memref<4x64xf32, #tpu.memory_space<vmem>>, vector<4x64xf32>,
    %cst_253 = arith.constant 0.000000e+00 : f32
    %280 = vector.broadcast %cst_253 : f32 to vector<1x64xf32>
    %c0_254 = arith.constant 0 : index
    %c0_255 = arith.constant 0 : index
    %281 = vector.load %arg15[%c0_254, %c0_255] : memref<4x64xf32, #tpu.memory_space<vmem>>, vector<1x64xf32>
    %282 = arith.truncf %281 : vector<1x64xf32> to vector<1x64xbf16>
    %c0_256 = arith.constant 0 : index
    %c0_257 = arith.constant 0 : index
    %c0_258 = arith.constant 0 : index
    %283 = vector.load %arg8[%c0_256, %c0_257, %c0_258] : memref<4x64x64xbf16, #tpu.memory_space<vmem>>, vector<1x64x64xbf16>
    %284 = vector.shape_cast %283 : vector<1x64x64xbf16> to vector<64x64xbf16>
    %cst_259 = arith.constant dense<0.000000e+00> : vector<1x64xf32>
    %285 = tpu.matmul %282, %284, %cst_259 {dimension_numbers = #tpu.dot_dimension_numbers<[1], [0], [0], [1], [0, 0, 1, 1], [], []>} : vector<1x64xbf16>, vector<64x64xbf16>, vector<1x64xf32> -> vector<1x64xf32>
    %286 = arith.addf %280, %285 : vector<1x64xf32>
    %c1_260 = arith.constant 1 : index
    %c0_261 = arith.constant 0 : index
    %287 = vector.load %arg15[%c1_260, %c0_261] : memref<4x64xf32, #tpu.memory_space<vmem>>, vector<1x64xf32>
    %288 = arith.truncf %287 : vector<1x64xf32> to vector<1x64xbf16>
    %c1_262 = arith.constant 1 : index
    %c0_263 = arith.constant 0 : index
    %c0_264 = arith.constant 0 : index
    %289 = vector.load %arg8[%c1_262, %c0_263, %c0_264] : memref<4x64x64xbf16, #tpu.memory_space<vmem>>, vector<1x64x64xbf16>
    %290 = vector.shape_cast %289 : vector<1x64x64xbf16> to vector<64x64xbf16>
    %cst_265 = arith.constant dense<0.000000e+00> : vector<1x64xf32>
    %291 = tpu.matmul %288, %290, %cst_265 {dimension_numbers = #tpu.dot_dimension_numbers<[1], [0], [0], [1], [0, 0, 1, 1], [], []>} : vector<1x64xbf16>, vector<64x64xbf16>, vector<1x64xf32> -> vector<1x64xf32>
    %292 = arith.addf %286, %291 : vector<1x64xf32>
    %c2_266 = arith.constant 2 : index
    %c0_267 = arith.constant 0 : index
    %293 = vector.load %arg15[%c2_266, %c0_267] : memref<4x64xf32, #tpu.memory_space<vmem>>, vector<1x64xf32>
    %294 = arith.truncf %293 : vector<1x64xf32> to vector<1x64xbf16>
    %c2_268 = arith.constant 2 : index
    %c0_269 = arith.constant 0 : index
    %c0_270 = arith.constant 0 : index
    %295 = vector.load %arg8[%c2_268, %c0_269, %c0_270] : memref<4x64x64xbf16, #tpu.memory_space<vmem>>, vector<1x64x64xbf16>
    %296 = vector.shape_cast %295 : vector<1x64x64xbf16> to vector<64x64xbf16>
    %cst_271 = arith.constant dense<0.000000e+00> : vector<1x64xf32>
    %297 = tpu.matmul %294, %296, %cst_271 {dimension_numbers = #tpu.dot_dimension_numbers<[1], [0], [0], [1], [0, 0, 1, 1], [], []>} : vector<1x64xbf16>, vector<64x64xbf16>, vector<1x64xf32> -> vector<1x64xf32>
    %298 = arith.addf %292, %297 : vector<1x64xf32>
    %c3_272 = arith.constant 3 : index
    %c0_273 = arith.constant 0 : index
    %299 = vector.load %arg15[%c3_272, %c0_273] : memref<4x64xf32, #tpu.memory_space<vmem>>, vector<1x64xf32>
    %300 = arith.truncf %299 : vector<1x64xf32> to vector<1x64xbf16>
    %c3_274 = arith.constant 3 : index
    %c0_275 = arith.constant 0 : index
    %c0_276 = arith.constant 0 : index
    %301 = vector.load %arg8[%c3_274, %c0_275, %c0_276] : memref<4x64x64xbf16, #tpu.memory_space<vmem>>, vector<1x64x64xbf16>
    %302 = vector.shape_cast %301 : vector<1x64x64xbf16> to vector<64x64xbf16>
    %cst_277 = arith.constant dense<0.000000e+00> : vector<1x64xf32>
    %303 = tpu.matmul %300, %302, %cst_277 {dimension_numbers = #tpu.dot_dimension_numbers<[1], [0], [0], [1], [0, 0, 1, 1], [], []>} : vector<1x64xbf16>, vector<64x64xbf16>, vector<1x64xf32> -> vector<1x64xf32>
    %304 = arith.addf %298, %303 : vector<1x64xf32>
    %c0_278 = arith.constant 0 : index
    %c0_279 = arith.constant 0 : index
    %305 = vector.load %arg9[%c0_278, %c0_279] : memref<1x64xf32, #tpu.memory_space<vmem>>, vector<1x64xf32>
    %306 = arith.addf %304, %305 : vector<1x64xf32>
    %cst_280 = arith.constant 0.000000e+00 : f32
    %307 = vector.broadcast %cst_280 : f32 to vector<1x64xf32>
    %308 = arith.maximumf %306, %307 : vector<1x64xf32>
    %309 = arith.truncf %308 : vector<1x64xf32> to vector<1x64xbf16>
    %c0_281 = arith.constant 0 : index
    %c0_282 = arith.constant 0 : index
    %310 = vector.load %arg10[%c0_281, %c0_282] : memref<64x6xbf16, #tpu.memory_space<vmem>>, vector<64x6xbf16>
    %cst_283 = arith.constant dense<0.000000e+00> : vector<1x6xf32>
    %311 = tpu.matmul %309, %310, %cst_283 {dimension_numbers = #tpu.dot_dimension_numbers<[1], [0], [0], [1], [0, 0, 1, 1], [], []>} : vector<1x64xbf16>, vector<64x6xbf16>, vector<1x6xf32> -> vector<1x6xf32>
    %c0_284 = arith.constant 0 : index
    %c0_285 = arith.constant 0 : index
    %312 = vector.load %arg11[%c0_284, %c0_285] : memref<1x6xf32, #tpu.memory_space<vmem>>, vector<1x6xf32>
    %313 = arith.addf %311, %312 : vector<1x6xf32>
    %314 = vector.shape_cast %313 : vector<1x6xf32> to vector<1x1x6xf32>
    %c0_286 = arith.constant 0 : index
    %c0_287 = arith.constant 0 : index
    %c0_288 = arith.constant 0 : index
    %315 = vector.load %arg12[%c0_286, %c0_287, %c0_288] : memref<1x1x6xf32, #tpu.memory_space<vmem>>, vector<1x1x6xf32>
    tpu.vector_store %arg12[%c0_286, %c0_287, %c0_288], %314 {strides = array<i32>} : memref<1x1x6xf32, #tpu.memory_space<vmem>>, vector<1x1x6xf32>,
    return
  }
  func.func @transform_0(%arg0: i32) -> (i32, i32, i32) {
    %c0_i32 = arith.constant 0 : i32
    %c0_i32_0 = arith.constant 0 : i32
    %c0_i32_1 = arith.constant 0 : i32
    return %arg0, %c0_i32, %c0_i32_0 : i32, i32, i32
  }
  func.func @transform_1(%arg0: i32) -> (i32, i32) {
    %c0_i32 = arith.constant 0 : i32
    %c0_i32_0 = arith.constant 0 : i32
    %c0_i32_1 = arith.constant 0 : i32
    return %c0_i32, %c0_i32_0 : i32, i32
  }
  func.func @transform_2(%arg0: i32) -> (i32, i32) {
    %c0_i32 = arith.constant 0 : i32
    %c0_i32_0 = arith.constant 0 : i32
    %c0_i32_1 = arith.constant 0 : i32
    return %c0_i32, %c0_i32_0 : i32, i32
  }
  func.func @transform_3(%arg0: i32) -> (i32, i32, i32) {
    %c0_i32 = arith.constant 0 : i32
    %c0_i32_0 = arith.constant 0 : i32
    %c0_i32_1 = arith.constant 0 : i32
    %c0_i32_2 = arith.constant 0 : i32
    return %c0_i32, %c0_i32_0, %c0_i32_1 : i32, i32, i32
  }
  func.func @transform_4(%arg0: i32) -> (i32, i32) {
    %c0_i32 = arith.constant 0 : i32
    %c0_i32_0 = arith.constant 0 : i32
    %c0_i32_1 = arith.constant 0 : i32
    return %c0_i32, %c0_i32_0 : i32, i32
  }
  func.func @transform_5(%arg0: i32) -> (i32, i32, i32) {
    %c0_i32 = arith.constant 0 : i32
    %c0_i32_0 = arith.constant 0 : i32
    %c0_i32_1 = arith.constant 0 : i32
    %c0_i32_2 = arith.constant 0 : i32
    return %c0_i32, %c0_i32_0, %c0_i32_1 : i32, i32, i32
  }
  func.func @transform_6(%arg0: i32) -> (i32, i32) {
    %c0_i32 = arith.constant 0 : i32
    %c0_i32_0 = arith.constant 0 : i32
    %c0_i32_1 = arith.constant 0 : i32
    return %c0_i32, %c0_i32_0 : i32, i32
  }
  func.func @transform_7(%arg0: i32) -> (i32, i32, i32) {
    %c0_i32 = arith.constant 0 : i32
    %c0_i32_0 = arith.constant 0 : i32
    %c0_i32_1 = arith.constant 0 : i32
    %c0_i32_2 = arith.constant 0 : i32
    return %c0_i32, %c0_i32_0, %c0_i32_1 : i32, i32, i32
  }
  func.func @transform_8(%arg0: i32) -> (i32, i32) {
    %c0_i32 = arith.constant 0 : i32
    %c0_i32_0 = arith.constant 0 : i32
    %c0_i32_1 = arith.constant 0 : i32
    return %c0_i32, %c0_i32_0 : i32, i32
  }
  func.func @transform_9(%arg0: i32) -> (i32, i32) {
    %c0_i32 = arith.constant 0 : i32
    %c0_i32_0 = arith.constant 0 : i32
    %c0_i32_1 = arith.constant 0 : i32
    return %c0_i32, %c0_i32_0 : i32, i32
  }
  func.func @transform_10(%arg0: i32) -> (i32, i32) {
    %c0_i32 = arith.constant 0 : i32
    %c0_i32_0 = arith.constant 0 : i32
    %c0_i32_1 = arith.constant 0 : i32
    return %c0_i32, %c0_i32_0 : i32, i32
  }
  func.func @transform_11(%arg0: i32) -> (i32, i32, i32) {
    %c0_i32 = arith.constant 0 : i32
    %c0_i32_0 = arith.constant 0 : i32
    %c0_i32_1 = arith.constant 0 : i32
    return %arg0, %c0_i32, %c0_i32_0 : i32, i32, i32
  }
}

</mosaic_0001>

<bundles_post_ra>
// kernel: q_network_forward.1
= control target key start
LH: loop header
LB: loop body
LE: loop exit
PB: predicated region body
PF: predicated region fallthrough
CT: control target
= control target key end

     0   :  { %16 = vsyncpa [#allocation6], 0  ;;  %s11471_s0 = inlined_call_operand.vmem [shape: bf16[2,256,196], index: 0, kind: input, shape index: {}]   ;;  %s11472_s1 = inlined_call_operand.vmem [shape: bf16[196,32], index: 1, kind: input, shape index: {}]   ;;  %s11473_s2 = inlined_call_operand.vmem [shape: f32[1,32], index: 2, kind: input, shape index: {}]   ;;  %s11474_s3 = inlined_call_operand.vmem [shape: bf16[25,32,64], index: 3, kind: input, shape index: {}]   ;;  %s11475_s4 = inlined_call_operand.vmem [shape: f32[1,64], index: 4, kind: input, shape index: {}]   ;;  %s11476_s5 = inlined_call_operand.vmem [shape: bf16[9,64,64], index: 5, kind: input, shape index: {}]   ;;  %s11477_s6 = inlined_call_operand.vmem [shape: f32[1,64], index: 6, kind: input, shape index: {}]   ;;  %s11478_s7 = inlined_call_operand.vmem [shape: bf16[4,64,64], index: 7, kind: input, shape index: {}]   ;;  %s11479_s8 = inlined_call_operand.vmem [shape: f32[1,64], index: 8, kind: input, shape index: {}]   ;;  %s11480_s9 = inlined_call_operand.vmem [shape: bf16[64,6], index: 9, kind: input, shape index: {}]   ;;  %s11481_s10 = inlined_call_operand.vmem [shape: f32[1,6], index: 10, kind: input, shape index: {}]   ;;  %s11482_s11 = inlined_call_operand.hbm [shape: f32[2,1,6], index: 11, kind: output, shape index: {}]  }
   0x1   :  { %18 = vsyncpa [#allocation6 + $0x1], 0  ;;  %s9374_s17 = smov 0   ;;  %s9376_s18 = smov 0  }
   0x2   :  { %s9378_s19 = smov 0   ;;  %s9380_s20 = smov 0  }
   0x3 LB: > { %s9395_s21 = sadd.s32 4294967295, %s9307_s20   ;;  %s7656_s22 = sadd.s32 4294967294, %s9307_s20   ;;  %s9307_s20 = sphi %s9380_s20, %s11488_s20   ;;  %s9303_s19 = sphi %s9378_s19, %s11487_s19   ;;  %s9299_s18 = sphi %s9376_s18, %s11486_s18   ;;  %s9295_s17 = sphi %s9374_s17, %s11485_s17  }
   0x4   : > { %s9399_s23 = sadd.s32 1, %s9307_s20   ;;  %s267_s24 = sadd.s32 1, %s9303_s19 }
   0x5   : > { %s264_s25 = ssub.s32 %s9307_s20, %s9399_s23  ;;  %p277_p0 = scmp.ne.s32.totalorder %s9303_s19, %s9299_s18 }
   0x6   : > { %p265_p1 = scmp.eq.s32.totalorder %s264_s25, 0  ;;  %p278_p2 = scmp.eq.s32.totalorder %s9395_s21, 1 }
   0x7   : > { %p283_p3 = scmp.ne.s32.totalorder %s9299_s18, %s9295_s17  ;;  %p284_p4 = scmp.eq.s32.totalorder %s7656_s22, 1 }
   0x8   : > { %s9410_s26 = scalar_select %p265_p1, %s9303_s19, %s267_s24  }
   0x9   : > { %p9412_p5 = por %p278_p2, %p277_p0  ;;  %p9416_p6 = por %p284_p4, %p283_p3 }
   0xa   : > { %p7659_p7 = scmp.ge.s32.totalorder %s9307_s20, 1  ;;  %p340_p8 = scmp.lt.s32.totalorder %s9307_s20, 3 }
   0xc   : > { %p341_p9 = pnand %p7659_p7, %p340_p8 }
   0xd   : > { %v9057_v0 = vld [vmem:[%s11472_s1] sm:$0xff] (!%p341_p9)   ;;  %v9309_v1 = vmov (!%p341_p9), 0   ;;  %v9058_v2 = vld [vmem:[%s11472_s1 + $0x8] sm:$0xff] (!%p341_p9)   ;;  %p379_p10 = scmp.lt.s32.totalorder (!%p341_p9), %s9395_s21, 1  ;;  %v9059_v3 = vld [vmem:[%s11472_s1 + $0x10] sm:$0xff] (!%p341_p9)   ;;  %vm668_vm0 = vcmask (!%p341_p9), 556032   ;;  %v950_v50 = vlaneseq (!%p341_p9) }
   0xe   : > { %344 = sbr.rel (%p341_p9) target bundleno = 2154 (0x86a), region = 64  ;;  %721 = vmatprep.subr.bf16.mxu0 (!%p341_p9), %v9309_v1  ;;  %v9060_v4 = vld [vmem:[%s11472_s1 + $0x18] sm:$0xff] (!%p341_p9)   ;;  %v9061_v6 = vld [vmem:[%s11472_s1 + $0x20] sm:$0xff] (!%p341_p9)   ;;  %v9062_v7 = vld [vmem:[%s11472_s1 + $0x28] sm:$0xff] (!%p341_p9)   ;;  %vm717_vm1 = vcmask (!%p341_p9), 1041408   ;;  %vm2515_vm2 = vcmask (!%p341_p9), 261120  }
   0xf   : > { %722 = vmatpush1.bf16.msra.mxu0 (!%p341_p9), %v9057_v0  ;;  %v9063_v8 = vld [vmem:[%s11472_s1 + $0x30] sm:$0xff] (!%p341_p9)   ;;  %v9064_v9 = vld [vmem:[%s11472_s1 + $0x38] sm:$0xff] (!%p341_p9)   ;;  %v9065_v10 = vld [vmem:[%s11472_s1 + $0x40] sm:$0xff] (!%p341_p9)   ;;  %v9310_v47 = vmov (!%p341_p9), 0.0   ;;  %v9311_v48 = vmov (!%p341_p9), 1983009808  }
  0x10   : > { %723 = vmatprep.subr.bf16.mxu0 (!%p341_p9), %v9309_v1  ;;  %v9066_v11 = vld [vmem:[%s11472_s1 + $0x48] sm:$0xff] (!%p341_p9)   ;;  %v9067_v12 = vld [vmem:[%s11472_s1 + $0x50] sm:$0xff] (!%p341_p9)   ;;  %v9069_v13 = vld [vmem:[%s11472_s1 + $0x60] ss:$0 sps:$4 sm:$0x33] (!%p341_p9)   ;;  %2715 = vst.msk [vmem:[#allocation2 + $0x38] sm:$0xff] (!%p341_p9), %vm2515_vm2, %v9310_v47  ;;  %v948_v49 = vunpack.c.l.s4 (!%p341_p9), %v9311_v48 }
  0x11   : > { %v9068_v14 = vld [vmem:[%s11472_s1 + $0x58] sm:$0xff] (!%p341_p9)   ;;  %v719_v15 = vsel (!%p341_p9), %vm717_vm1, %v9069_v13, 0  ;;  %2708 = vst.msk [vmem:[#allocation2] sm:$0xff] (!%p341_p9), %vm2515_vm2, %v9310_v47  ;;  %2709 = vst.msk [vmem:[#allocation2 + $0x8] sm:$0xff] (!%p341_p9), %vm2515_vm2, %v9310_v47  ;;  %v951_v52 = vshrl.u32 (!%p341_p9), %v950_v50, 7  ;;  %vm1618_vm3 = vcmask (!%p341_p9), 254976  }
  0x12   : > { %2710 = vst.msk [vmem:[#allocation2 + $0x10] sm:$0xff] (!%p341_p9), %vm2515_vm2, %v9310_v47  ;;  %2711 = vst.msk [vmem:[#allocation2 + $0x18] sm:$0xff] (!%p341_p9), %vm2515_vm2, %v9310_v47  ;;  %v949_v51 = vunpack.c.0.s8 (!%p341_p9), %v948_v49  ;;  %v9592_v53 = vld [vmem:[%s11473_s2] ss:$0 sm:$0xff] (!%p341_p9)  ;;  %vm2808_vm4 = vcmask (!%p341_p9), 1041409   ;;  %vm2810_vm5 = vcmask (!%p341_p9), 1042434  }
  0x13   : > { %724 = vmatpush1.bf16.msra.mxu0 (!%p341_p9), %v9058_v2  ;;  %2712 = vst.msk [vmem:[#allocation2 + $0x20] sm:$0xff] (!%p341_p9), %vm2515_vm2, %v9310_v47  ;;  %2713 = vst.msk [vmem:[#allocation2 + $0x28] sm:$0xff] (!%p341_p9), %vm2515_vm2, %v9310_v47  ;;  %vm2812_vm6 = vcmask (!%p341_p9), 1043459   ;;  %vm2814_vm7 = vcmask (!%p341_p9), 1044484   ;;  %vm2816_vm8 = vcmask (!%p341_p9), 1045509   ;;  %vm2818_vm9 = vcmask (!%p341_p9), 1046534  }
  0x14   : > { %725 = vmatprep.subr.bf16.mxu0 (!%p341_p9), %v9309_v1  ;;  %2714 = vst.msk [vmem:[#allocation2 + $0x30] sm:$0xff] (!%p341_p9), %vm2515_vm2, %v9310_v47  ;;  %2716 = vst.msk [vmem:[#allocation2 + $0x40] sm:$0xff] (!%p341_p9), %vm2515_vm2, %v9310_v47  ;;  %v9595_v56 = vsub.s32 (!%p341_p9), %v949_v51, %v951_v52  ;;  %vm2820_vm10 = vcmask (!%p341_p9), 1047559   ;;  %vm6140_vm11 = vcmask (!%p341_p9), 523264   ;;  %vm9312_vm12 = vmmov (!%p341_p9), 0   ;;  %s377_s24 = sand.u32 (!%p341_p9), 1, %s9299_s18  }
  0x15   : > { %s380_s14 = scalar_select %p379_p10, %s9395_s21, 1  ;;  %2717 = vst.msk [vmem:[#allocation2 + $0x48] sm:$0xff] %vm2515_vm2, %v9310_v47  ;;  %2718 = vst.msk [vmem:[#allocation2 + $0x50] sm:$0xff] %vm2515_vm2, %v9310_v47  ;;  %vm5915_vm13 = vcmask 517120   ;;  %vm6234_vm14 = vcmask 519168   ;;  %vm7586_vm15 = vcmask 40960  }
  0x16   : > { %2719 = vst.msk [vmem:[#allocation2 + $0x58] sm:$0xff] %vm2515_vm2, %v9310_v47  ;;  %2720 = vst.msk [vmem:[#allocation2 + $0x60] sm:$0xff] %vm2515_vm2, %v9310_v47  ;;  %s8130_s30 = sshll.u32 %s9395_s21, 4  ;;  %s7589_s21 = scalar_lea.sflag [#allocation6], %s377_s24 }
  0x17   : > { %s8133_s22 = sshll.u32 %s380_s14, 8  ;;  %726 = vmatpush1.bf16.msra.mxu0 %v9059_v3  ;;  %2721 = vst.msk [vmem:[#allocation2 + $0x68] sm:$0xff] %vm2515_vm2, %v9310_v47  ;;  %2722 = vst.msk [vmem:[#allocation2 + $0x70] sm:$0xff] %vm2515_vm2, %v9310_v47  ;;  %s11429_s16 = scalar_lea.hbm %s11482_s11, %s8130_s30 }
  0x18   : > { %s9439_s12 = scalar_lea.vmem %s11471_s0, %s8133_s22  ;;  %727 = vmatprep.subr.bf16.mxu0 %v9309_v1  ;;  %2723 = vst.msk [vmem:[#allocation2 + $0x78] sm:$0xff] %vm2515_vm2, %v9310_v47  ;;  %2724 = vst.msk [vmem:[#allocation2 + $0x80] sm:$0xff] %vm2515_vm2, %v9310_v47  ;;  %s9313_s25 = smov [#allocation5]  }
  0x19   : > { %v9072_v5 = vld [vmem:[%s9439_s12 + $0x4] ss:$8 sps:$4 sm:$0xff]   ;;  %v9070_v16 = vld [vmem:[%s9439_s12] ss:$8 sps:$4 sm:$0xff]   ;;  %v9073_v17 = vld [vmem:[%s9439_s12 + $0x14] ss:$8 sps:$4 sm:$0xff]  }
  0x1a   : > { %7708 = vmatprep.mubr.msk.bf16.mxu0 %vm668_vm0, %v9072_v5  ;;  %v9075_v18 = vld [vmem:[%s9439_s12 + $0x10] ss:$8 sps:$4 sm:$0xff]   ;;  %v9076_v19 = vld [vmem:[%s9439_s12 + $0x24] ss:$8 sps:$4 sm:$0xff]   ;;  %v9078_v20 = vld [vmem:[%s9439_s12 + $0x20] ss:$8 sps:$4 sm:$0xff]  }
  0x1b   : > { %728 = vmatpush1.bf16.msra.mxu0 %v9060_v4  ;;  %v9079_v21 = vld [vmem:[%s9439_s12 + $0x34] ss:$8 sps:$4 sm:$0xff]   ;;  %v9081_v22 = vld [vmem:[%s9439_s12 + $0x30] ss:$8 sps:$4 sm:$0xff]   ;;  %v9082_v23 = vld [vmem:[%s9439_s12 + $0x44] ss:$8 sps:$4 sm:$0xff]  }
  0x1c   : > { %729 = vmatprep.subr.bf16.mxu0 %v9309_v1  ;;  %v9084_v24 = vld [vmem:[%s9439_s12 + $0x40] ss:$8 sps:$4 sm:$0xff]   ;;  %v9085_v25 = vld [vmem:[%s9439_s12 + $0x54] ss:$8 sps:$4 sm:$0xff]   ;;  %v9087_v26 = vld [vmem:[%s9439_s12 + $0x50] ss:$8 sps:$4 sm:$0xff]  }
  0x1d   : > { %v9088_v27 = vld [vmem:[%s9439_s12 + $0x64] ss:$8 sps:$4 sm:$0xff]   ;;  %v9090_v28 = vld [vmem:[%s9439_s12 + $0x60] ss:$8 sps:$4 sm:$0xff]   ;;  %v9091_v29 = vld [vmem:[%s9439_s12 + $0x74] ss:$8 sps:$4 sm:$0xff]  }
  0x1e   : > { %v9093_v30 = vld [vmem:[%s9439_s12 + $0x70] ss:$8 sps:$4 sm:$0xff]   ;;  %v9094_v31 = vld [vmem:[%s9439_s12 + $0x84] ss:$8 sps:$4 sm:$0xff]   ;;  %v9096_v32 = vld [vmem:[%s9439_s12 + $0x80] ss:$8 sps:$4 sm:$0xff]  }
  0x1f   : > { %730 = vmatpush1.bf16.msra.mxu0 %v9061_v6  ;;  %v9097_v33 = vld [vmem:[%s9439_s12 + $0x94] ss:$8 sps:$4 sm:$0xff]   ;;  %v9099_v34 = vld [vmem:[%s9439_s12 + $0x90] ss:$8 sps:$4 sm:$0xff]   ;;  %v9100_v35 = vld [vmem:[%s9439_s12 + $0xa4] ss:$8 sps:$4 sm:$0xff]  }
  0x20   : > { %731 = vmatprep.subr.bf16.mxu0 %v9309_v1  ;;  %v9102_v36 = vld [vmem:[%s9439_s12 + $0xa0] ss:$8 sps:$4 sm:$0xff]   ;;  %v9103_v37 = vld [vmem:[%s9439_s12 + $0xb4] ss:$8 sps:$4 sm:$0xff]   ;;  %v9105_v38 = vld [vmem:[%s9439_s12 + $0xb0] ss:$8 sps:$4 sm:$0xff]  }
  0x21   : > { %v9106_v39 = vld [vmem:[%s9439_s12 + $0xc4] ss:$8 sps:$4 sm:$0xff]   ;;  %v9108_v40 = vld [vmem:[%s9439_s12 + $0xc0] ss:$8 sps:$4 sm:$0xff]   ;;  %v9109_v41 = vld [vmem:[%s9439_s12 + $0xd4] ss:$8 sps:$4 sm:$0xff]  }
  0x22   : > { %v9111_v42 = vld [vmem:[%s9439_s12 + $0xd0] ss:$8 sps:$4 sm:$0xff]   ;;  %v9112_v43 = vld [vmem:[%s9439_s12 + $0xe4] ss:$8 sps:$4 sm:$0xff]   ;;  %v9114_v44 = vld [vmem:[%s9439_s12 + $0xe0] ss:$8 sps:$4 sm:$0xff]  }
  0x23   : > { %732 = vmatpush1.bf16.msra.mxu0 %v9062_v7  ;;  %v9115_v45 = vld [vmem:[%s9439_s12 + $0xf4] ss:$8 sps:$4 sm:$0xff]   ;;  %v9117_v46 = vld [vmem:[%s9439_s12 + $0xf0] ss:$8 sps:$4 sm:$0xff]   ;;  %2725 = vst.msk [vmem:[#allocation2 + $0x88] sm:$0xff] %vm2515_vm2, %v9310_v47  ;;  %2726 = vst.msk [vmem:[#allocation2 + $0x90] sm:$0xff] %vm2515_vm2, %v9310_v47 }
  0x24   : > { %733 = vmatprep.subr.bf16.mxu0 %v9309_v1  ;;  %2727 = vst.msk [vmem:[#allocation2 + $0x98] sm:$0xff] %vm2515_vm2, %v9310_v47  ;;  %2728 = vst.msk [vmem:[#allocation2 + $0xa0] sm:$0xff] %vm2515_vm2, %v9310_v47  ;;  %s378_s12 = scalar_lea.vmem [#allocation5], %s377_s24  ;;  %s9249_s29 = sshll.u32 %s9313_s25, 4  ;;  %s9250_s29 = int_to_ptr.vmem [resolvable:$false] %s9249_s29 }
  0x25   : > { %2729 = vst.msk [vmem:[#allocation2 + $0xa8] sm:$0xff] %vm2515_vm2, %v9310_v47  ;;  %2730 = vst.msk [vmem:[#allocation2 + $0xb0] sm:$0xff] %vm2515_vm2, %v9310_v47  ;;  %s7601_s13 = sshll.u32 %s378_s12, 4  ;;  %s9251_s15 = scalar_lea.vmem %s9250_s29, 32  ;;  %s11431_s13 = int_to_ptr.vmem [resolvable:$true] %s7601_s13 }
  0x26   : > { %2731 = vst.msk [vmem:[#allocation2 + $0xb8] sm:$0xff] %vm2515_vm2, %v9310_v47  ;;  %2732 = vst.msk [vmem:[#allocation2 + $0xc0] sm:$0xff] %vm2515_vm2, %v9310_v47  ;;  %s9245_s22 = scalar_lea.vmem %s11431_s13, 16  ;;  %p9252_p0 = scmp.lt.s32.totalorder %s11431_s13, %s9250_s29 }
  0x27   : > { %734 = vmatpush1.bf16.msra.mxu0 %v9063_v8  ;;  %2733 = vst.msk [vmem:[#allocation2 + $0xc8] sm:$0xff] %vm2515_vm2, %v9310_v47  ;;  %2734 = vst.msk [vmem:[#allocation2 + $0xd0] sm:$0xff] %vm2515_vm2, %v9310_v47  ;;  %p9246_p11 = scmp.ne.s32.totalorder %s11431_s13, %s9245_s22  ;;  %p9253_p1 = scmp.lt.s32.totalorder %s9251_s15, %s9245_s22 }
  0x28   : > { %735 = vmatprep.subr.bf16.mxu0 %v9309_v1  ;;  %2735 = vst.msk [vmem:[#allocation2 + $0xd8] sm:$0xff] %vm2515_vm2, %v9310_v47  ;;  %2736 = vst.msk [vmem:[#allocation2 + $0xe0] sm:$0xff] %vm2515_vm2, %v9310_v47 }
  0x29   : > { %2737 = vst.msk [vmem:[#allocation2 + $0xe8] sm:$0xff] %vm2515_vm2, %v9310_v47  ;;  %2738 = vst.msk [vmem:[#allocation2 + $0xf0] sm:$0xff] %vm2515_vm2, %v9310_v47  ;;  %p9247_p12 = pnand %p9246_p11, %p9412_p5  ;;  %p9254_p2 = por %p9253_p1, %p9252_p0 }
  0x2a   : > { %2739 = vst.msk [vmem:[#allocation2 + $0xf8] sm:$0xff] %vm2515_vm2, %v9310_v47  ;;  %2740 = vst.msk [vmem:[#allocation2 + $0x100] sm:$0xff] %vm2515_vm2, %v9310_v47 }
  0x2b   : > { %736 = vmatpush1.bf16.msra.mxu0 %v9064_v9  ;;  %2741 = vst.msk [vmem:[#allocation2 + $0x108] sm:$0xff] %vm2515_vm2, %v9310_v47  ;;  %2742 = vst.msk [vmem:[#allocation2 + $0x110] sm:$0xff] %vm2515_vm2, %v9310_v47  ;;  %p9248_p13 = pneg %p9247_p12 }
  0x2c   : > { %737 = vmatprep.subr.bf16.mxu0 %v9309_v1  ;;  %2743 = vst.msk [vmem:[#allocation2 + $0x118] sm:$0xff] %vm2515_vm2, %v9310_v47 }
  0x2d   : > { %6189 = vst.msk [vmem:[#allocation3] sm:$0xff] %vm6140_vm11, %v9310_v47  ;;  %6190 = vst.msk [vmem:[#allocation3 + $0x8] sm:$0xff] %vm6140_vm11, %v9310_v47  ;;  %p9255_p3 = pnand %p9254_p2, %p9248_p13 }
  0x2e   : > { %6191 = vst.msk [vmem:[#allocation3 + $0x10] sm:$0xff] %vm6140_vm11, %v9310_v47  ;;  %6192 = vst.msk [vmem:[#allocation3 + $0x18] sm:$0xff] %vm6140_vm11, %v9310_v47 }
  0x2f   : > { %738 = vmatpush1.bf16.msra.mxu0 %v9065_v10  ;;  %6193 = vst.msk [vmem:[#allocation3 + $0x20] sm:$0xff] %vm6140_vm11, %v9310_v47  ;;  %6194 = vst.msk [vmem:[#allocation3 + $0x28] sm:$0xff] %vm6140_vm11, %v9310_v47 }
  0x30   : > { %739 = vmatprep.subr.bf16.mxu0 %v9309_v1  ;;  %6195 = vst.msk [vmem:[#allocation3 + $0x30] sm:$0xff] %vm6140_vm11, %v9310_v47  ;;  %6196 = vst.msk [vmem:[#allocation3 + $0x38] sm:$0xff] %vm6140_vm11, %v9310_v47 }
  0x31   : > { %6197 = vst.msk [vmem:[#allocation3 + $0x40] sm:$0xff] %vm6140_vm11, %v9310_v47  ;;  %6198 = vst.msk [vmem:[#allocation3 + $0x48] sm:$0xff] %vm6140_vm11, %v9310_v47 }
  0x32   : > { %6199 = vst.msk [vmem:[#allocation3 + $0x50] sm:$0xff] %vm6140_vm11, %v9310_v47  ;;  %6200 = vst.msk [vmem:[#allocation3 + $0x58] sm:$0xff] %vm6140_vm11, %v9310_v47 }
  0x33   : > { %740 = vmatpush1.bf16.msra.mxu0 %v9066_v11 }
  0x34   : > { %741 = vmatprep.subr.bf16.mxu0 %v9309_v1 }
  0x37   : > { %742 = vmatpush1.bf16.msra.mxu0 %v9067_v12 }
  0x38   : > { %743 = vmatprep.subr.bf16.mxu0 %v9309_v1 }
  0x3b   : > { %744 = vmatpush1.bf16.msra.mxu0 %v9068_v14 }
  0x3c   : > { %745 = vmatprep.subr.bf16.mxu0 %v9309_v1 }
  0x3f   : > { %746 = vmatpush1.bf16.msra.mxu0 %v719_v15 }
  0x40   : > { %8654 = vmatprep.subr.bf16.mxu0 %v9310_v47 }
  0x42   : > { %754 = vmatmul.mubr.bf16.vlgmr.msra.gmra.mrb[0].mxu0 %v9070_v16 }
  0x43   : > { %7709 = vmatprep.mubr.msk.bf16.mxu0 %vm668_vm0, %v9073_v17 }
  0x4a   : > { %762 = vmatmul.mubr.bf16.gmra.mrb[4].mxu0 %v9075_v18 }
  0x4b   : > { %7710 = vmatprep.mubr.msk.bf16.mxu0 %vm668_vm0, %v9076_v19 }
  0x52   : > { %770 = vmatmul.mubr.bf16.gmra.mrb[8].mxu0 %v9078_v20 }
  0x53   : > { %7711 = vmatprep.mubr.msk.bf16.mxu0 %vm668_vm0, %v9079_v21 }
  0x5a   : > { %778 = vmatmul.mubr.bf16.gmra.mrb[12].mxu0 %v9081_v22 }
  0x5b   : > { %7712 = vmatprep.mubr.msk.bf16.mxu0 %vm668_vm0, %v9082_v23 }
  0x62   : > { %786 = vmatmul.mubr.bf16.gmra.mrb[16].mxu0 %v9084_v24 }
  0x63   : > { %7713 = vmatprep.mubr.msk.bf16.mxu0 %vm668_vm0, %v9085_v25 }
  0x6a   : > { %794 = vmatmul.mubr.bf16.gmra.mrb[20].mxu0 %v9087_v26 }
  0x6b   : > { %7714 = vmatprep.mubr.msk.bf16.mxu0 %vm668_vm0, %v9088_v27 }
  0x72   : > { %802 = vmatmul.mubr.bf16.gmra.mrb[24].mxu0 %v9090_v28 }
  0x73   : > { %7715 = vmatprep.mubr.msk.bf16.mxu0 %vm668_vm0, %v9091_v29 }
  0x7a   : > { %810 = vmatmul.mubr.bf16.gmra.mrb[28].mxu0 %v9093_v30 }
  0x7b   : > { %7716 = vmatprep.mubr.msk.bf16.mxu0 %vm668_vm0, %v9094_v31 }
  0x82   : > { %818 = vmatmul.mubr.bf16.gmra.mrb[32].mxu0 %v9096_v32 }
  0x83   : > { %7717 = vmatprep.mubr.msk.bf16.mxu0 %vm668_vm0, %v9097_v33 }
  0x8a   : > { %826 = vmatmul.mubr.bf16.gmra.mrb[36].mxu0 %v9099_v34 }
  0x8b   : > { %7718 = vmatprep.mubr.msk.bf16.mxu0 %vm668_vm0, %v9100_v35 }
  0x92   : > { %834 = vmatmul.mubr.bf16.gmra.mrb[40].mxu0 %v9102_v36 }
  0x93   : > { %7719 = vmatprep.mubr.msk.bf16.mxu0 %vm668_vm0, %v9103_v37 }
  0x9a   : > { %842 = vmatmul.mubr.bf16.gmra.mrb[44].mxu0 %v9105_v38 }
  0x9b   : > { %7720 = vmatprep.mubr.msk.bf16.mxu0 %vm668_vm0, %v9106_v39 }
  0xa2   : > { %850 = vmatmul.mubr.bf16.gmra.mrb[48].mxu0 %v9108_v40 }
  0xa3   : > { %7721 = vmatprep.mubr.msk.bf16.mxu0 %vm668_vm0, %v9109_v41 }
  0xaa   : > { %858 = vmatmul.mubr.bf16.gmra.mrb[52].mxu0 %v9111_v42 }
  0xab   : > { %7722 = vmatprep.mubr.msk.bf16.mxu0 %vm668_vm0, %v9112_v43 }
  0xb2   : > { %866 = vmatmul.mubr.bf16.gmra.mrb[56].mxu0 %v9114_v44 }
  0xb3   : > { %7723 = vmatprep.mubr.msk.bf16.mxu0 %vm668_vm0, %v9115_v45 }
  0xba   : > { %874 = vmatmul.mubr.bf16.gmra.mrb[60].mxu0 %v9117_v46 }
  0xbb   : > { %8662 = vmatprep.mubr.msk.bf16.mxu0 %vm9312_vm12, %v9310_v47 }
 0x115   : > { %v755_v54 = vpop.f32.mrb[0].mxu0 }
 0x116   : > { %v756_v55 = vadd.f32 %v9592_v53, %v755_v54  ;;  %v757_v57 = vpop.f32.mrb[1].mxu0 }
 0x117   : > { %v758_v58 = vpop.f32.mrb[2].mxu0 }
 0x118   : > { %v882_v59 = vmax.f32 %v756_v55, 0.0  ;;  %v759_v60 = vadd.f32 %v9592_v53, %v758_v58  ;;  %v760_v61 = vpop.f32.mrb[3].mxu0 }
 0x11a   : > { %v946_v62 = vcombine.high %v882_v59, %v882_v59  ;;  %v953_v63 = vrot.slane %v882_v59, %v9595_v56  ;;  %v883_v0 = vmax.f32 %v759_v60, 0.0 }
 0x11c   : > { %v960_v1 = vrot.slane %v946_v62, %v9595_v56  ;;  %v961_v2 = vcombine.high %v953_v63, %v953_v63  ;;  %v1619_v3 = vsel %vm1618_vm3, %v953_v63, -inf  ;;  %v963_v4 = vcombine.high %v883_v0, %v883_v0 }
 0x11d   : > { %v1620_v5 = vrot.slane %v1619_v3, 4  ;;  %v970_v6 = vrot.slane %v883_v0, %v9595_v56  ;;  %v9602_v7 = vpop.f32.mrb[4].mxu0 }
 0x11e   : > { %v962_v8 = vcombine.high %v960_v1, %v960_v1  ;;  %v1626_v9 = vsel %vm1618_vm3, %v961_v2, -inf  ;;  %v1633_v10 = vsel %vm1618_vm3, %v960_v1, -inf  ;;  %v977_v11 = vrot.slane %v963_v4, %v9595_v56  ;;  %v765_v12 = vpop.f32.mrb[5].mxu0 }
 0x11f   : > { %v1621_v13 = vmax.f32 %v1619_v3, %v1620_v5  ;;  %v1627_v14 = vrot.slane %v1626_v9, 4  ;;  %v1634_v15 = vrot.slane %v1633_v10, 4  ;;  %v978_v16 = vcombine.high %v970_v6, %v970_v6  ;;  %v766_v17 = vpop.f32.mrb[6].mxu0 }
 0x120   : > { %v1640_v18 = vsel %vm1618_vm3, %v962_v8, -inf  ;;  %v979_v19 = vcombine.high %v977_v11, %v977_v11  ;;  %v1647_v20 = vsel %vm1618_vm3, %v970_v6, -inf  ;;  %v1661_v21 = vsel %vm1618_vm3, %v977_v11, -inf  ;;  %v768_v22 = vpop.f32.mrb[7].mxu0 }
 0x121   : > { %v1622_v23 = vrot.slane %v1621_v13, 2  ;;  %v1628_v24 = vmax.f32 %v1626_v9, %v1627_v14  ;;  %v1635_v25 = vmax.f32 %v1633_v10, %v1634_v15  ;;  %v1641_v26 = vrot.slane %v1640_v18, 4 }
 0x122   : > { %v1648_v27 = vrot.slane %v1647_v20, 4  ;;  %v1654_v28 = vsel %vm1618_vm3, %v978_v16, -inf  ;;  %v1662_v29 = vrot.slane %v1661_v21, 4  ;;  %v1668_v30 = vsel %vm1618_vm3, %v979_v19, -inf }
 0x123   : > { %v1623_v31 = vmax.f32 %v1621_v13, %v1622_v23  ;;  %v1629_v32 = vrot.slane %v1628_v24, 2  ;;  %v1636_v33 = vrot.slane %v1635_v25, 2  ;;  %v1642_v34 = vmax.f32 %v1640_v18, %v1641_v26 }
 0x124   : > { %v1649_v35 = vmax.f32 %v1647_v20, %v1648_v27  ;;  %v1655_v36 = vrot.slane %v1654_v28, 4  ;;  %v1663_v37 = vmax.f32 %v1661_v21, %v1662_v29  ;;  %v1669_v38 = vrot.slane %v1668_v30, 4 }
 0x125   : > { %v1624_v39 = vrot.slane %v1623_v31, 1  ;;  %v1630_v40 = vmax.f32 %v1628_v24, %v1629_v32  ;;  %v1637_v41 = vmax.f32 %v1635_v25, %v1636_v33  ;;  %v1643_v42 = vrot.slane %v1642_v34, 2  ;;  %v771_v43 = vpop.f32.mrb[8].mxu0 }
 0x126   : > { %v1650_v44 = vrot.slane %v1649_v35, 2  ;;  %v1656_v45 = vmax.f32 %v1654_v28, %v1655_v36  ;;  %v1664_v46 = vrot.slane %v1663_v37, 2  ;;  %v1670_v48 = vmax.f32 %v1668_v30, %v1669_v38  ;;  %v773_v49 = vpop.f32.mrb[9].mxu0 }
 0x127   : > { %v1625_v50 = vmax.f32 %v1623_v31, %v1624_v39  ;;  %v1631_v51 = vrot.slane %v1630_v40, 1  ;;  %v1638_v52 = vrot.slane %v1637_v41, 1  ;;  %v1644_v54 = vmax.f32 %v1642_v34, %v1643_v42  ;;  %v774_v55 = vpop.f32.mrb[10].mxu0  ;;  %v9118_v34 = vld [vmem:[%s11474_s3 + $0x20] sm:$0xff]  }
 0x128   : > { %v1651_v57 = vmax.f32 %v1649_v35, %v1650_v44  ;;  %v1657_v58 = vrot.slane %v1656_v45, 2  ;;  %v1665_v59 = vmax.f32 %v1663_v37, %v1664_v46  ;;  %v1671_v60 = vrot.slane %v1670_v48, 2  ;;  %v776_v61 = vpop.f32.mrb[11].mxu0  ;;  %8354 = vmatprep.subr.bf16.mxu1 %v9118_v34 }
 0x129   : > { %v1632_v62 = vmax.f32 %v1630_v40, %v1631_v51  ;;  %v1639_v63 = vmax.f32 %v1637_v41, %v1638_v52  ;;  %v1645_v0 = vrot.slane %v1644_v54, 1  ;;  %v9613_v1 = vsel %vm2515_vm2, %v1625_v50, -inf  ;;  %8355 = vmatpush3.bf16.msra.mxu1 %v9118_v34  ;;  %v9119_v52 = vld [vmem:[%s11474_s3 + $0x28] sm:$0xff]  }
 0x12a   : > { %v1652_v2 = vrot.slane %v1651_v57, 1  ;;  %v1658_v3 = vmax.f32 %v1656_v45, %v1657_v58  ;;  %v1666_v4 = vrot.slane %v1665_v59, 1  ;;  %v1672_v5 = vmax.f32 %v1670_v48, %v1671_v60  ;;  %8356 = vmatprep.subr.bf16.mxu1 %v9119_v52 }
 0x12b   : > { %v1646_v6 = vmax.f32 %v1644_v54, %v1645_v0  ;;  %v9616_v8 = vsel %vm2515_vm2, %v1632_v62, -inf  ;;  %v9619_v9 = vsel %vm2515_vm2, %v1639_v63, -inf  ;;  %v764_v10 = vadd.f32 %v9592_v53, %v9602_v7 }
 0x12c   : > { %v1653_v11 = vmax.f32 %v1651_v57, %v1652_v2  ;;  %v1659_v12 = vrot.slane %v1658_v3, 1  ;;  %v1667_v13 = vmax.f32 %v1665_v59, %v1666_v4  ;;  %v1673_v14 = vrot.slane %v1672_v5, 1 }
 0x12d   : > { %v9624_v15 = vsel %vm2515_vm2, %v1646_v6, -inf  ;;  %v884_v16 = vmax.f32 %v764_v10, 0.0  ;;  %v767_v18 = vadd.f32 %v9592_v53, %v766_v17  ;;  %v772_v19 = vadd.f32 %v9592_v53, %v771_v43  ;;  %v779_v20 = vpop.f32.mrb[12].mxu0  ;;  %8357 = vmatpush3.bf16.msra.mxu1 %v9119_v52 }
 0x12e   : > { %v1660_v21 = vmax.f32 %v1658_v3, %v1659_v12  ;;  %v1674_v22 = vmax.f32 %v1672_v5, %v1673_v14  ;;  %v9629_v23 = vsel %vm2515_vm2, %v1653_v11, -inf  ;;  %v9632_v7 = vsel %vm2515_vm2, %v1667_v13, -inf  ;;  %v781_v24 = vpop.f32.mrb[13].mxu0 }
 0x12f   : > { %v980_v25 = vcombine.high %v884_v16, %v884_v16  ;;  %v987_v26 = vrot.slane %v884_v16, %v9595_v56  ;;  %v885_v27 = vmax.f32 %v767_v18, 0.0  ;;  %v9635_v28 = vmax.f32 %v772_v19, 0.0  ;;  %v9637_v29 = vpop.f32.mrb[14].mxu0 }
 0x130   : > { %v9640_v17 = vsel %vm2515_vm2, %v1660_v21, -inf  ;;  %v9643_v30 = vsel %vm2515_vm2, %v1674_v22, -inf  ;;  %v9646_v31 = vadd.f32 %v9592_v53, %v774_v55  ;;  %v9649_v32 = vadd.f32 %v9592_v53, %v779_v20  ;;  %v784_v33 = vpop.f32.mrb[15].mxu0 }
 0x131   : > { %v994_v35 = vrot.slane %v980_v25, %v9595_v56  ;;  %v995_v36 = vcombine.high %v987_v26, %v987_v26  ;;  %v1675_v37 = vsel %vm1618_vm3, %v987_v26, -inf  ;;  %v997_v38 = vcombine.high %v885_v27, %v885_v27 }
 0x132   : > { %v1676_v39 = vrot.slane %v1675_v37, 4  ;;  %v1004_v40 = vrot.slane %v885_v27, %v9595_v56  ;;  %v1014_v41 = vcombine.high %v9635_v28, %v9635_v28  ;;  %v9661_v42 = vrot.slane %v9635_v28, %v9595_v56 }
 0x133   : > { %v996_v43 = vcombine.high %v994_v35, %v994_v35  ;;  %v1682_v44 = vsel %vm1618_vm3, %v995_v36, -inf  ;;  %v1689_v45 = vsel %vm1618_vm3, %v994_v35, -inf  ;;  %v1011_v46 = vrot.slane %v997_v38, %v9595_v56 }
 0x134   : > { %v1677_v48 = vmax.f32 %v1675_v37, %v1676_v39  ;;  %v1683_v49 = vrot.slane %v1682_v44, 4  ;;  %v1690_v50 = vrot.slane %v1689_v45, 4  ;;  %v1012_v51 = vcombine.high %v1004_v40, %v1004_v40 }
 0x135   : > { %v1696_v54 = vsel %vm1618_vm3, %v996_v43, -inf  ;;  %v1013_v55 = vcombine.high %v1011_v46, %v1011_v46  ;;  %v1703_v57 = vsel %vm1618_vm3, %v1004_v40, -inf  ;;  %v1717_v58 = vsel %vm1618_vm3, %v1011_v46, -inf  ;;  %v9672_v59 = vpop.f32.mrb[16].mxu0 }
 0x136   : > { %v1678_v60 = vrot.slane %v1677_v48, 2  ;;  %v1684_v61 = vmax.f32 %v1682_v44, %v1683_v49  ;;  %v1691_v62 = vmax.f32 %v1689_v45, %v1690_v50  ;;  %v1697_v63 = vrot.slane %v1696_v54, 4  ;;  %v789_v0 = vpop.f32.mrb[17].mxu0 }
 0x137   : > { %v1704_v2 = vrot.slane %v1703_v57, 4  ;;  %v1710_v3 = vsel %vm1618_vm3, %v1012_v51, -inf  ;;  %v1718_v4 = vrot.slane %v1717_v58, 4  ;;  %v1724_v5 = vsel %vm1618_vm3, %v1013_v55, -inf  ;;  %v9676_v6 = vpop.f32.mrb[18].mxu0 }
 0x138   : > { %v1679_v10 = vmax.f32 %v1677_v48, %v1678_v60  ;;  %v1685_v11 = vrot.slane %v1684_v61, 2  ;;  %v1692_v12 = vrot.slane %v1691_v62, 2  ;;  %v1698_v13 = vmax.f32 %v1696_v54, %v1697_v63  ;;  %v792_v14 = vpop.f32.mrb[19].mxu0 }
 0x139   : > { %v1705_v16 = vmax.f32 %v1703_v57, %v1704_v2  ;;  %v1711_v18 = vrot.slane %v1710_v3, 4  ;;  %v1719_v19 = vmax.f32 %v1717_v58, %v1718_v4  ;;  %v1725_v20 = vrot.slane %v1724_v5, 4 }
 0x13a   : > { %v1680_v21 = vrot.slane %v1679_v10, 1  ;;  %v1686_v22 = vmax.f32 %v1684_v61, %v1685_v11  ;;  %v1693_v24 = vmax.f32 %v1691_v62, %v1692_v12  ;;  %v1699_v25 = vrot.slane %v1698_v13, 2 }
 0x13b   : > { %v1706_v26 = vrot.slane %v1705_v16, 2  ;;  %v1712_v27 = vmax.f32 %v1710_v3, %v1711_v18  ;;  %v1720_v33 = vrot.slane %v1719_v19, 2  ;;  %v1726_v34 = vmax.f32 %v1724_v5, %v1725_v20 }
 0x13c   : > { %v1681_v35 = vmax.f32 %v1679_v10, %v1680_v21  ;;  %v1687_v36 = vrot.slane %v1686_v22, 1  ;;  %v1694_v37 = vrot.slane %v1693_v24, 1  ;;  %v1700_v38 = vmax.f32 %v1698_v13, %v1699_v25 }
 0x13d   : > { %v1707_v39 = vmax.f32 %v1705_v16, %v1706_v26  ;;  %v1713_v40 = vrot.slane %v1712_v27, 2  ;;  %v1721_v43 = vmax.f32 %v1719_v19, %v1720_v33  ;;  %v1727_v44 = vrot.slane %v1726_v34, 2  ;;  %v9678_v45 = vpop.f32.mrb[20].mxu0 }
 0x13e   : > { %v1688_v46 = vmax.f32 %v1686_v22, %v1687_v36  ;;  %v1695_v48 = vmax.f32 %v1693_v24, %v1694_v37  ;;  %v1701_v49 = vrot.slane %v1700_v38, 1  ;;  %v2517_v50 = vsel %vm2515_vm2, %v1681_v35, -inf  ;;  %v797_v51 = vpop.f32.mrb[21].mxu0 }
 0x13f   : > { %v2518_v52 = vmax.f32 %v9613_v1, %v2517_v50  ;;  %v1708_v54 = vrot.slane %v1707_v39, 1  ;;  %v1714_v55 = vmax.f32 %v1712_v27, %v1713_v40  ;;  %v1722_v57 = vrot.slane %v1721_v43, 1  ;;  %v9682_v58 = vpop.f32.mrb[22].mxu0 }
 0x140   : > { %v1702_v60 = vmax.f32 %v1700_v38, %v1701_v49  ;;  %v2520_v61 = vsel %vm2515_vm2, %v1688_v46, -inf  ;;  %v2523_v62 = vsel %vm2515_vm2, %v1695_v48, -inf  ;;  %v1728_v63 = vmax.f32 %v1726_v34, %v1727_v44  ;;  %v800_v0 = vpop.f32.mrb[23].mxu0 }
 0x141   : > { %v2521_v2 = vmax.f32 %v9616_v8, %v2520_v61  ;;  %v2524_v3 = vmax.f32 %v9619_v9, %v2523_v62  ;;  %v1709_v4 = vmax.f32 %v1707_v39, %v1708_v54  ;;  %v1715_v5 = vrot.slane %v1714_v55, 1 }
 0x142   : > { %v2526_v1 = vsel %vm2515_vm2, %v1702_v60, -inf  ;;  %v1723_v10 = vmax.f32 %v1721_v43, %v1722_v57  ;;  %v1729_v11 = vrot.slane %v1728_v63, 1  ;;  %v1028_v12 = vrot.slane %v1014_v41, %v9595_v56 }
 0x143   : > { %v2527_v13 = vmax.f32 %v9624_v15, %v2526_v1  ;;  %v2809_v14 = vsel %vm2808_vm4, %v2521_v2, %v2518_v52  ;;  %v1716_v16 = vmax.f32 %v1714_v55, %v1715_v5  ;;  %v2529_v8 = vsel %vm2515_vm2, %v1709_v4, -inf }
 0x144   : > { %v2811_v9 = vsel %vm2810_vm5, %v2524_v3, %v2809_v14  ;;  %v1730_v18 = vmax.f32 %v1728_v63, %v1729_v11  ;;  %v2530_v19 = vmax.f32 %v9629_v23, %v2529_v8  ;;  %v2535_v20 = vsel %vm2515_vm2, %v1723_v10, -inf }
 0x145   : > { %v2532_v21 = vsel %vm2515_vm2, %v1716_v16, -inf  ;;  %v2536_v22 = vmax.f32 %v9632_v7, %v2535_v20  ;;  %v2813_v28 = vsel %vm2812_vm6, %v2527_v13, %v2811_v9  ;;  %v1029_v15 = vcombine.high %v9661_v42, %v9661_v42  ;;  %v9704_v41 = vpop.f32.mrb[24].mxu0 }
 0x146   : > { %v2533_v24 = vmax.f32 %v9640_v17, %v2532_v21  ;;  %v2538_v25 = vsel %vm2515_vm2, %v1730_v18, -inf  ;;  %v2815_v26 = vsel %vm2814_vm7, %v2530_v19, %v2813_v28  ;;  %v1030_v23 = vcombine.high %v1028_v12, %v1028_v12  ;;  %v805_v27 = vpop.f32.mrb[25].mxu0 }
 0x147   : > { %v2539_v33 = vmax.f32 %v9643_v30, %v2538_v25  ;;  %v1731_v7 = vsel %vm1618_vm3, %v9661_v42, -inf  ;;  %v1738_v34 = vsel %vm1618_vm3, %v1029_v15, -inf  ;;  %v1745_v35 = vsel %vm1618_vm3, %v1028_v12, -inf  ;;  %v9714_v36 = vpop.f32.mrb[26].mxu0 }
 0x148   : > { %v2817_v37 = vsel %vm2816_vm8, %v2533_v24, %v2815_v26  ;;  %v1732_v17 = vrot.slane %v1731_v7, 4  ;;  %v1739_v38 = vrot.slane %v1738_v34, 4  ;;  %v1746_v39 = vrot.slane %v1745_v35, 4  ;;  %v808_v40 = vpop.f32.mrb[27].mxu0 }
 0x149   : > { %v2819_v43 = vsel %vm2818_vm9, %v2536_v22, %v2817_v37  ;;  %v1752_v44 = vsel %vm1618_vm3, %v1030_v23, -inf  ;;  %v887_v30 = vmax.f32 %v9646_v31, 0.0  ;;  %v888_v42 = vmax.f32 %v9649_v32, 0.0 }
 0x14a   : > { %v2821_v46 = vsel %vm2820_vm10, %v2539_v33, %v2819_v43  ;;  %v1733_v48 = vmax.f32 %v1731_v7, %v1732_v17  ;;  %v1740_v49 = vmax.f32 %v1738_v34, %v1739_v38  ;;  %v1747_v50 = vmax.f32 %v1745_v35, %v1746_v39 }
 0x14b   : > { %2880 = vst.msk [vmem:[#allocation2 + $0x38] sm:$0xff] %vm2515_vm2, %v2821_v46  ;;  %v1753_v51 = vrot.slane %v1752_v44, 4  ;;  %v1031_v52 = vcombine.high %v887_v30, %v887_v30  ;;  %v1038_v54 = vrot.slane %v887_v30, %v9595_v56  ;;  %v1048_v55 = vcombine.high %v888_v42, %v888_v42 }
 0x14c   : > { %v1734_v57 = vrot.slane %v1733_v48, 2  ;;  %v1741_v60 = vrot.slane %v1740_v49, 2  ;;  %v1748_v61 = vrot.slane %v1747_v50, 2  ;;  %v1055_v62 = vrot.slane %v888_v42, %v9595_v56 }
 0x14d   : > { %v1754_v31 = vmax.f32 %v1752_v44, %v1753_v51  ;;  %v1045_v32 = vrot.slane %v1031_v52, %v9595_v56  ;;  %v1046_v63 = vcombine.high %v1038_v54, %v1038_v54  ;;  %v1759_v0 = vsel %vm1618_vm3, %v1038_v54, -inf  ;;  %v9727_v2 = vpop.f32.mrb[28].mxu0 }
 0x14e   : > { %v1735_v3 = vmax.f32 %v1733_v48, %v1734_v57  ;;  %v1742_v4 = vmax.f32 %v1740_v49, %v1741_v60  ;;  %v1749_v5 = vmax.f32 %v1747_v50, %v1748_v61  ;;  %v1760_v1 = vrot.slane %v1759_v0, 4  ;;  %v813_v10 = vpop.f32.mrb[29].mxu0 }
 0x14f   : > { %v1755_v11 = vrot.slane %v1754_v31, 2  ;;  %v1047_v12 = vcombine.high %v1045_v32, %v1045_v32  ;;  %v1766_v13 = vsel %vm1618_vm3, %v1046_v63, -inf  ;;  %v1773_v14 = vsel %vm1618_vm3, %v1045_v32, -inf  ;;  %v9731_v16 = vpop.f32.mrb[30].mxu0 }
 0x150   : > { %v1736_v8 = vrot.slane %v1735_v3, 1  ;;  %v1743_v9 = vrot.slane %v1742_v4, 1  ;;  %v1750_v18 = vrot.slane %v1749_v5, 1  ;;  %v1761_v19 = vmax.f32 %v1759_v0, %v1760_v1  ;;  %v816_v20 = vpop.f32.mrb[31].mxu0 }
 0x151   : > { %v1756_v21 = vmax.f32 %v1754_v31, %v1755_v11  ;;  %v1767_v22 = vrot.slane %v1766_v13, 4  ;;  %v1774_v28 = vrot.slane %v1773_v14, 4  ;;  %v1780_v15 = vsel %vm1618_vm3, %v1047_v12, -inf }
 0x152   : > { %v1737_v24 = vmax.f32 %v1735_v3, %v1736_v8  ;;  %v1744_v25 = vmax.f32 %v1742_v4, %v1743_v9  ;;  %v1751_v26 = vmax.f32 %v1749_v5, %v1750_v18  ;;  %v1762_v23 = vrot.slane %v1761_v19, 2 }
 0x153   : > { %v1757_v27 = vrot.slane %v1756_v21, 1  ;;  %v1768_v33 = vmax.f32 %v1766_v13, %v1767_v22  ;;  %v1775_v7 = vmax.f32 %v1773_v14, %v1774_v28  ;;  %v1781_v34 = vrot.slane %v1780_v15, 4 }
 0x154   : > { %v9735_v35 = vsel %vm2515_vm2, %v1737_v24, -inf  ;;  %v9738_v37 = vsel %vm2515_vm2, %v1744_v25, -inf  ;;  %v9741_v17 = vsel %vm2515_vm2, %v1751_v26, -inf  ;;  %v1763_v38 = vmax.f32 %v1761_v19, %v1762_v23 }
 0x155   : > { %v1758_v39 = vmax.f32 %v1756_v21, %v1757_v27  ;;  %v1769_v40 = vrot.slane %v1768_v33, 2  ;;  %v1776_v43 = vrot.slane %v1775_v7, 2  ;;  %v1782_v44 = vmax.f32 %v1780_v15, %v1781_v34  ;;  %v9743_v30 = vpop.f32.mrb[32].mxu0 }
 0x156   : > { %v1764_v42 = vrot.slane %v1763_v38, 1  ;;  %v1062_v46 = vrot.slane %v1048_v55, %v9595_v56  ;;  %v1063_v48 = vcombine.high %v1055_v62, %v1055_v62  ;;  %v1787_v49 = vsel %vm1618_vm3, %v1055_v62, -inf  ;;  %v821_v50 = vpop.f32.mrb[33].mxu0 }
 0x157   : > { %v9748_v51 = vsel %vm2515_vm2, %v1758_v39, -inf  ;;  %v1770_v52 = vmax.f32 %v1768_v33, %v1769_v40  ;;  %v1777_v54 = vmax.f32 %v1775_v7, %v1776_v43  ;;  %v1783_v57 = vrot.slane %v1782_v44, 2  ;;  %v9750_v60 = vpop.f32.mrb[34].mxu0 }
 0x158   : > { %v1765_v61 = vmax.f32 %v1763_v38, %v1764_v42  ;;  %v1064_v31 = vcombine.high %v1062_v46, %v1062_v46  ;;  %v1788_v32 = vrot.slane %v1787_v49, 4  ;;  %v1794_v63 = vsel %vm1618_vm3, %v1063_v48, -inf  ;;  %v824_v0 = vpop.f32.mrb[35].mxu0 }
 0x159   : > { %v1771_v3 = vrot.slane %v1770_v52, 1  ;;  %v1778_v55 = vrot.slane %v1777_v54, 1  ;;  %v1784_v4 = vmax.f32 %v1782_v44, %v1783_v57  ;;  %v1795_v5 = vrot.slane %v1794_v63, 4 }
 0x15a   : > { %v9754_v62 = vsel %vm2515_vm2, %v1765_v61, -inf  ;;  %v1789_v1 = vmax.f32 %v1787_v49, %v1788_v32  ;;  %v1801_v10 = vsel %vm1618_vm3, %v1062_v46, -inf  ;;  %v1808_v11 = vsel %vm1618_vm3, %v1064_v31, -inf }
 0x15b   : > { %v1772_v12 = vmax.f32 %v1770_v52, %v1771_v3  ;;  %v1779_v13 = vmax.f32 %v1777_v54, %v1778_v55  ;;  %v1785_v14 = vrot.slane %v1784_v4, 1  ;;  %v1796_v8 = vmax.f32 %v1794_v63, %v1795_v5 }
 0x15c   : > { %v1790_v9 = vrot.slane %v1789_v1, 2  ;;  %v1802_v18 = vrot.slane %v1801_v10, 4  ;;  %v1809_v19 = vrot.slane %v1808_v11, 4  ;;  %v783_v20 = vadd.f32 %v9592_v53, %v9637_v29 }
 0x15d   : > { %v1786_v21 = vmax.f32 %v1784_v4, %v1785_v14  ;;  %v9761_v22 = vsel %vm2515_vm2, %v1772_v12, -inf  ;;  %v9764_v28 = vsel %vm2515_vm2, %v1779_v13, -inf  ;;  %v1797_v15 = vrot.slane %v1796_v8, 2  ;;  %v9766_v24 = vpop.f32.mrb[36].mxu0 }
 0x15e   : > { %v1791_v25 = vmax.f32 %v1789_v1, %v1790_v9  ;;  %v1803_v26 = vmax.f32 %v1801_v10, %v1802_v18  ;;  %v1810_v23 = vmax.f32 %v1808_v11, %v1809_v19  ;;  %v889_v27 = vmax.f32 %v783_v20, 0.0  ;;  %v829_v33 = vpop.f32.mrb[37].mxu0 }
 0x15f   : > { %v9769_v7 = vsel %vm2515_vm2, %v1786_v21, -inf  ;;  %v1798_v34 = vmax.f32 %v1796_v8, %v1797_v15  ;;  %v788_v29 = vadd.f32 %v9592_v53, %v9672_v59  ;;  %v791_v38 = vadd.f32 %v9592_v53, %v9676_v6  ;;  %v9775_v39 = vpop.f32.mrb[38].mxu0 }
 0x160   : > { %v1792_v40 = vrot.slane %v1791_v25, 1  ;;  %v1804_v43 = vrot.slane %v1803_v26, 2  ;;  %v1811_v44 = vrot.slane %v1810_v23, 2  ;;  %v1065_v42 = vcombine.high %v889_v27, %v889_v27  ;;  %v832_v46 = vpop.f32.mrb[39].mxu0 }
 0x161   : > { %v1799_v48 = vrot.slane %v1798_v34, 1  ;;  %v1072_v49 = vrot.slane %v889_v27, %v9595_v56  ;;  %v890_v50 = vmax.f32 %v788_v29, 0.0  ;;  %v9778_v52 = vmax.f32 %v791_v38, 0.0 }
 0x162   : > { %v1793_v54 = vmax.f32 %v1791_v25, %v1792_v40  ;;  %v1805_v57 = vmax.f32 %v1803_v26, %v1804_v43  ;;  %v1812_v61 = vmax.f32 %v1810_v23, %v1811_v44  ;;  %v1079_v59 = vrot.slane %v1065_v42, %v9595_v56 }
 0x163   : > { %v1800_v31 = vmax.f32 %v1798_v34, %v1799_v48  ;;  %v1080_v6 = vcombine.high %v1072_v49, %v1072_v49  ;;  %v1815_v32 = vsel %vm1618_vm3, %v1072_v49, -inf  ;;  %v1082_v63 = vcombine.high %v890_v50, %v890_v50 }
 0x164   : > { %v1806_v0 = vrot.slane %v1805_v57, 1  ;;  %v1813_v3 = vrot.slane %v1812_v61, 1  ;;  %v2541_v55 = vsel %vm2515_vm2, %v1793_v54, -inf  ;;  %v1081_v4 = vcombine.high %v1079_v59, %v1079_v59 }
 0x165   : > { %v2542_v5 = vmax.f32 %v9735_v35, %v2541_v55  ;;  %v2544_v1 = vsel %vm2515_vm2, %v1800_v31, -inf  ;;  %v1816_v10 = vrot.slane %v1815_v32, 4  ;;  %v1822_v11 = vsel %vm1618_vm3, %v1080_v6, -inf  ;;  %v9786_v12 = vpop.f32.mrb[40].mxu0 }
 0x166   : > { %v1807_v13 = vmax.f32 %v1805_v57, %v1806_v0  ;;  %v1814_v14 = vmax.f32 %v1812_v61, %v1813_v3  ;;  %v2545_v8 = vmax.f32 %v9738_v37, %v2544_v1  ;;  %v1823_v9 = vrot.slane %v1822_v11, 4  ;;  %v837_v18 = vpop.f32.mrb[41].mxu0 }
 0x167   : > { %v1817_v19 = vmax.f32 %v1815_v32, %v1816_v10  ;;  %v1829_v20 = vsel %vm1618_vm3, %v1079_v59, -inf  ;;  %v1836_v21 = vsel %vm1618_vm3, %v1081_v4, -inf  ;;  %v1089_v35 = vrot.slane %v890_v50, %v9595_v56  ;;  %v9801_v57 = vpop.f32.mrb[42].mxu0 }
 0x168   : > { %v2547_v15 = vsel %vm2515_vm2, %v1807_v13, -inf  ;;  %v2550_v25 = vsel %vm2515_vm2, %v1814_v14, -inf  ;;  %v2822_v26 = vsel %vm2808_vm4, %v2545_v8, %v2542_v5  ;;  %v1824_v23 = vmax.f32 %v1822_v11, %v1823_v9  ;;  %v840_v6 = vpop.f32.mrb[43].mxu0 }
 0x169   : > { %v2548_v27 = vmax.f32 %v9741_v17, %v2547_v15  ;;  %v2551_v37 = vmax.f32 %v9748_v51, %v2550_v25  ;;  %v1818_v33 = vrot.slane %v1817_v19, 2  ;;  %v1830_v34 = vrot.slane %v1829_v20, 4 }
 0x16a   : > { %v1825_v29 = vrot.slane %v1824_v23, 2  ;;  %v1837_v38 = vrot.slane %v1836_v21, 4  ;;  %v1096_v40 = vrot.slane %v1082_v63, %v9595_v56  ;;  %v1097_v43 = vcombine.high %v1089_v35, %v1089_v35 }
 0x16b   : > { %v2823_v44 = vsel %vm2810_vm5, %v2548_v27, %v2822_v26  ;;  %v1819_v42 = vmax.f32 %v1817_v19, %v1818_v33  ;;  %v1831_v46 = vmax.f32 %v1829_v20, %v1830_v34  ;;  %v1843_v48 = vsel %vm1618_vm3, %v1089_v35, -inf }
 0x16c   : > { %v1826_v49 = vmax.f32 %v1824_v23, %v1825_v29  ;;  %v1838_v50 = vmax.f32 %v1836_v21, %v1837_v38  ;;  %v2824_v54 = vsel %vm2812_vm6, %v2551_v37, %v2823_v44  ;;  %v1098_v17 = vcombine.high %v1096_v40, %v1096_v40 }
 0x16d   : > { %v1820_v51 = vrot.slane %v1819_v42, 1  ;;  %v1832_v61 = vrot.slane %v1831_v46, 2  ;;  %v1844_v59 = vrot.slane %v1843_v48, 4  ;;  %v1850_v31 = vsel %vm1618_vm3, %v1097_v43, -inf }
 0x16e   : > { %v1827_v32 = vrot.slane %v1826_v49, 1  ;;  %v1839_v63 = vrot.slane %v1838_v50, 2  ;;  %v1851_v0 = vrot.slane %v1850_v31, 4  ;;  %v1857_v3 = vsel %vm1618_vm3, %v1096_v40, -inf }
 0x16f   : > { %v1821_v55 = vmax.f32 %v1819_v42, %v1820_v51  ;;  %v1833_v4 = vmax.f32 %v1831_v46, %v1832_v61  ;;  %v1845_v5 = vmax.f32 %v1843_v48, %v1844_v59  ;;  %v1858_v1 = vrot.slane %v1857_v3, 4 }
 0x170   : > { %v1828_v10 = vmax.f32 %v1826_v49, %v1827_v32  ;;  %v1840_v11 = vmax.f32 %v1838_v50, %v1839_v63  ;;  %v1852_v13 = vmax.f32 %v1850_v31, %v1851_v0  ;;  %v1864_v14 = vsel %vm1618_vm3, %v1098_v17, -inf  ;;  %v9818_v17 = vpop.f32.mrb[44].mxu0 }
 0x171   : > { %v1834_v8 = vrot.slane %v1833_v4, 1  ;;  %v2553_v9 = vsel %vm2515_vm2, %v1821_v55, -inf  ;;  %v1846_v18 = vrot.slane %v1845_v5, 2  ;;  %v1859_v19 = vmax.f32 %v1857_v3, %v1858_v1  ;;  %v845_v31 = vpop.f32.mrb[45].mxu0 }
 0x172   : > { %v1841_v20 = vrot.slane %v1840_v11, 1  ;;  %v2554_v21 = vmax.f32 %v9754_v62, %v2553_v9  ;;  %v2556_v35 = vsel %vm2515_vm2, %v1828_v10, -inf  ;;  %v1853_v15 = vrot.slane %v1852_v13, 2 }
 0x173   : > { %v1835_v25 = vmax.f32 %v1833_v4, %v1834_v8  ;;  %v2557_v26 = vmax.f32 %v9761_v22, %v2556_v35  ;;  %v1847_v23 = vmax.f32 %v1845_v5, %v1846_v18  ;;  %v1860_v27 = vrot.slane %v1859_v19, 2 }
 0x174   : > { %v1842_v37 = vmax.f32 %v1840_v11, %v1841_v20  ;;  %v2825_v33 = vsel %vm2814_vm7, %v2554_v21, %v2824_v54  ;;  %v1854_v34 = vmax.f32 %v1852_v13, %v1853_v15  ;;  %v1865_v29 = vrot.slane %v1864_v14, 4 }
 0x175   : > { %v2559_v38 = vsel %vm2515_vm2, %v1835_v25, -inf  ;;  %v2826_v40 = vsel %vm2816_vm8, %v2557_v26, %v2825_v33  ;;  %v1848_v43 = vrot.slane %v1847_v23, 1  ;;  %v1861_v44 = vmax.f32 %v1859_v19, %v1860_v27 }
 0x176   : > { %v2560_v62 = vmax.f32 %v9764_v28, %v2559_v38  ;;  %v2562_v42 = vsel %vm2515_vm2, %v1842_v37, -inf  ;;  %v1855_v46 = vrot.slane %v1854_v34, 1  ;;  %v1866_v48 = vmax.f32 %v1864_v14, %v1865_v29  ;;  %v9850_v38 = vpop.f32.mrb[46].mxu0 }
 0x177   : > { %v2563_v22 = vmax.f32 %v9769_v7, %v2562_v42  ;;  %v1849_v49 = vmax.f32 %v1847_v23, %v1848_v43  ;;  %v1862_v50 = vrot.slane %v1861_v44, 1  ;;  %v1099_v54 = vcombine.high %v9778_v52, %v9778_v52 }
 0x178   : > { %v2827_v51 = vsel %vm2818_vm9, %v2560_v62, %v2826_v40  ;;  %v1856_v61 = vmax.f32 %v1854_v34, %v1855_v46  ;;  %v1867_v59 = vrot.slane %v1866_v48, 2  ;;  %v1106_v28 = vrot.slane %v9778_v52, %v9595_v56  ;;  %v848_v62 = vpop.f32.mrb[47].mxu0 }
 0x179   : > { %v2828_v6 = vsel %vm2820_vm10, %v2563_v22, %v2827_v51  ;;  %v1863_v32 = vmax.f32 %v1861_v44, %v1862_v50  ;;  %v9825_v7 = vsel %vm2515_vm2, %v1849_v49, -inf  ;;  %v1113_v63 = vrot.slane %v1099_v54, %v9595_v56 }
 0x17a   : > { %2881 = vst.msk [vmem:[#allocation2 + $0x50] sm:$0xff] %vm2515_vm2, %v2828_v6  ;;  %v1868_v0 = vmax.f32 %v1866_v48, %v1867_v59  ;;  %v9830_v3 = vsel %vm2515_vm2, %v1856_v61, -inf  ;;  %v1114_v55 = vcombine.high %v1106_v28, %v1106_v28  ;;  %v1871_v4 = vsel %vm1618_vm3, %v1106_v28, -inf }
 0x17b   : > { %v9834_v52 = vsel %vm2515_vm2, %v1863_v32, -inf  ;;  %v1115_v5 = vcombine.high %v1113_v63, %v1113_v63  ;;  %v1872_v1 = vrot.slane %v1871_v4, 4  ;;  %v1885_v10 = vsel %vm1618_vm3, %v1113_v63, -inf }
 0x17c   : > { %v1869_v11 = vrot.slane %v1868_v0, 1  ;;  %v1878_v13 = vsel %vm1618_vm3, %v1114_v55, -inf  ;;  %v1886_v14 = vrot.slane %v1885_v10, 4  ;;  %v796_v8 = vadd.f32 %v9592_v53, %v9678_v45 }
 0x17d   : > { %v1873_v9 = vmax.f32 %v1871_v4, %v1872_v1  ;;  %v1879_v18 = vrot.slane %v1878_v13, 4  ;;  %v1892_v19 = vsel %vm1618_vm3, %v1115_v5, -inf  ;;  %v799_v20 = vadd.f32 %v9592_v53, %v9682_v58 }
 0x17e   : > { %v1870_v21 = vmax.f32 %v1868_v0, %v1869_v11  ;;  %v1887_v35 = vmax.f32 %v1885_v10, %v1886_v14  ;;  %v1893_v15 = vrot.slane %v1892_v19, 4  ;;  %v892_v25 = vmax.f32 %v796_v8, 0.0 }
 0x17f   : > { %v1874_v26 = vrot.slane %v1873_v9, 2  ;;  %v1880_v23 = vmax.f32 %v1878_v13, %v1879_v18  ;;  %v893_v27 = vmax.f32 %v799_v20, 0.0  ;;  %v9845_v37 = vadd.f32 %v9592_v53, %v9704_v41 }
 0x180   : > { %v9848_v45 = vsel %vm2515_vm2, %v1870_v21, -inf  ;;  %v1888_v33 = vrot.slane %v1887_v35, 2  ;;  %v1894_v34 = vmax.f32 %v1892_v19, %v1893_v15  ;;  %v1116_v29 = vcombine.high %v892_v25, %v892_v25 }
 0x181   : > { %v1875_v58 = vmax.f32 %v1873_v9, %v1874_v26  ;;  %v1881_v40 = vrot.slane %v1880_v23, 2  ;;  %v1123_v43 = vrot.slane %v892_v25, %v9595_v56  ;;  %v1133_v44 = vcombine.high %v893_v27, %v893_v27 }
 0x182   : > { %v1889_v42 = vmax.f32 %v1887_v35, %v1888_v33  ;;  %v1895_v46 = vrot.slane %v1894_v34, 2  ;;  %v1130_v48 = vrot.slane %v1116_v29, %v9595_v56  ;;  %v1140_v53 = vrot.slane %v893_v27, %v9595_v56 }
 0x183   : > { %v1876_v41 = vrot.slane %v1875_v58, 1  ;;  %v1882_v22 = vmax.f32 %v1880_v23, %v1881_v40  ;;  %v1131_v49 = vcombine.high %v1123_v43, %v1123_v43  ;;  %v1899_v50 = vsel %vm1618_vm3, %v1123_v43, -inf }
 0x184   : > { %v1890_v54 = vrot.slane %v1889_v42, 1  ;;  %v1896_v51 = vmax.f32 %v1894_v34, %v1895_v46  ;;  %v1132_v61 = vcombine.high %v1130_v48, %v1130_v48  ;;  %v1900_v59 = vrot.slane %v1899_v50, 4 }
 0x185   : > { %v1877_v28 = vmax.f32 %v1875_v58, %v1876_v41  ;;  %v1883_v31 = vrot.slane %v1882_v22, 1  ;;  %v1906_v6 = vsel %vm1618_vm3, %v1131_v49, -inf  ;;  %v1913_v32 = vsel %vm1618_vm3, %v1130_v48, -inf }
 0x186   : > { %v1891_v63 = vmax.f32 %v1889_v42, %v1890_v54  ;;  %v1897_v0 = vrot.slane %v1896_v51, 1  ;;  %v1901_v55 = vmax.f32 %v1899_v50, %v1900_v59  ;;  %v1907_v4 = vrot.slane %v1906_v6, 4 }
 0x187   : > { %v1884_v5 = vmax.f32 %v1882_v22, %v1883_v31  ;;  %v9859_v1 = vsel %vm2515_vm2, %v1877_v28, -inf  ;;  %v1914_v10 = vrot.slane %v1913_v32, 4  ;;  %v1920_v11 = vsel %vm1618_vm3, %v1132_v61, -inf }
 0x188   : > { %v1898_v13 = vmax.f32 %v1896_v51, %v1897_v0  ;;  %v9863_v14 = vsel %vm2515_vm2, %v1891_v63, -inf  ;;  %v1902_v8 = vrot.slane %v1901_v55, 2  ;;  %v1908_v9 = vmax.f32 %v1906_v6, %v1907_v4 }
 0x189   : > { %v9866_v18 = vsel %vm2515_vm2, %v1884_v5, -inf  ;;  %v1915_v19 = vmax.f32 %v1913_v32, %v1914_v10  ;;  %v1921_v20 = vrot.slane %v1920_v11, 4  ;;  %v1147_v21 = vrot.slane %v1133_v44, %v9595_v56 }
 0x18a   : > { %v9870_v35 = vsel %vm2515_vm2, %v1898_v13, -inf  ;;  %v1903_v15 = vmax.f32 %v1901_v55, %v1902_v8  ;;  %v1909_v25 = vrot.slane %v1908_v9, 2  ;;  %v1148_v26 = vcombine.high %v1140_v53, %v1140_v53  ;;  %v9878_v55 = vpop.f32.mrb[48].mxu0 }
 0x18b   : > { %v1916_v23 = vrot.slane %v1915_v19, 2  ;;  %v1922_v27 = vmax.f32 %v1920_v11, %v1921_v20  ;;  %v1149_v33 = vcombine.high %v1147_v21, %v1147_v21  ;;  %v1927_v34 = vsel %vm1618_vm3, %v1140_v53, -inf  ;;  %v853_v13 = vpop.f32.mrb[49].mxu0 }
 0x18c   : > { %v1904_v29 = vrot.slane %v1903_v15, 1  ;;  %v1910_v58 = vmax.f32 %v1908_v9, %v1909_v25  ;;  %v1928_v40 = vrot.slane %v1927_v34, 4  ;;  %v1934_v43 = vsel %vm1618_vm3, %v1148_v26, -inf }
 0x18d   : > { %v1917_v62 = vmax.f32 %v1915_v19, %v1916_v23  ;;  %v1923_v42 = vrot.slane %v1922_v27, 2  ;;  %v1935_v46 = vrot.slane %v1934_v43, 4  ;;  %v1941_v44 = vsel %vm1618_vm3, %v1147_v21, -inf }
 0x18e   : > { %v1905_v48 = vmax.f32 %v1903_v15, %v1904_v29  ;;  %v1911_v41 = vrot.slane %v1910_v58, 1  ;;  %v1929_v22 = vmax.f32 %v1927_v34, %v1928_v40  ;;  %v1942_v49 = vrot.slane %v1941_v44, 4  ;;  %v9887_v34 = vpop.f32.mrb[50].mxu0 }
 0x18f   : > { %v1918_v50 = vrot.slane %v1917_v62, 1  ;;  %v1924_v54 = vmax.f32 %v1922_v27, %v1923_v42  ;;  %v1936_v51 = vmax.f32 %v1934_v43, %v1935_v46  ;;  %v1948_v61 = vsel %vm1618_vm3, %v1149_v33, -inf  ;;  %v856_v43 = vpop.f32.mrb[51].mxu0 }
 0x190   : > { %v1912_v53 = vmax.f32 %v1910_v58, %v1911_v41  ;;  %v2565_v59 = vsel %vm2515_vm2, %v1905_v48, -inf  ;;  %v1930_v28 = vrot.slane %v1929_v22, 2  ;;  %v1943_v31 = vmax.f32 %v1941_v44, %v1942_v49  ;;  %v9892_v44 = vpop.f32.mrb[52].mxu0 }
 0x191   : > { %v1919_v6 = vmax.f32 %v1917_v62, %v1918_v50  ;;  %v1925_v32 = vrot.slane %v1924_v54, 1  ;;  %v2566_v63 = vmax.f32 %v9825_v7, %v2565_v59  ;;  %v1937_v0 = vrot.slane %v1936_v51, 2  ;;  %v861_v49 = vpop.f32.mrb[53].mxu0 }
 0x192   : > { %v2568_v4 = vsel %vm2515_vm2, %v1912_v53, -inf  ;;  %v1931_v5 = vmax.f32 %v1929_v22, %v1930_v28  ;;  %v1944_v10 = vrot.slane %v1943_v31, 2  ;;  %v1949_v11 = vrot.slane %v1948_v61, 4 }
 0x193   : > { %v1926_v8 = vmax.f32 %v1924_v54, %v1925_v32  ;;  %v2569_v9 = vmax.f32 %v9830_v3, %v2568_v4  ;;  %v2571_v19 = vsel %vm2515_vm2, %v1919_v6, -inf  ;;  %v1938_v20 = vmax.f32 %v1936_v51, %v1937_v0 }
 0x194   : > { %v2572_v21 = vmax.f32 %v9834_v52, %v2571_v19  ;;  %v1932_v15 = vrot.slane %v1931_v5, 1  ;;  %v1945_v25 = vmax.f32 %v1943_v31, %v1944_v10  ;;  %v1950_v7 = vmax.f32 %v1948_v61, %v1949_v11 }
 0x195   : > { %v2574_v26 = vsel %vm2515_vm2, %v1926_v8, -inf  ;;  %v2829_v23 = vsel %vm2808_vm4, %v2569_v9, %v2566_v63  ;;  %v1939_v27 = vrot.slane %v1938_v20, 1  ;;  %v894_v33 = vmax.f32 %v9845_v37, 0.0 }
 0x196   : > { %v2575_v29 = vmax.f32 %v9848_v45, %v2574_v26  ;;  %v2830_v3 = vsel %vm2810_vm5, %v2572_v21, %v2829_v23  ;;  %v1933_v58 = vmax.f32 %v1931_v5, %v1932_v15  ;;  %v1946_v40 = vrot.slane %v1945_v25, 1  ;;  %v9899_v45 = vld [vmem:[%s11473_s2] ss:$0 sm:$0xff] }
 0x197   : > { %v1940_v52 = vmax.f32 %v1938_v20, %v1939_v27  ;;  %v1951_v62 = vrot.slane %v1950_v7, 2  ;;  %v1150_v42 = vcombine.high %v894_v33, %v894_v33  ;;  %v1157_v46 = vrot.slane %v894_v33, %v9595_v56 }
 0x198   : > { %v1947_v48 = vmax.f32 %v1945_v25, %v1946_v40  ;;  %v2577_v41 = vsel %vm2515_vm2, %v1933_v58, -inf  ;;  %v2831_v37 = vsel %vm2812_vm6, %v2575_v29, %v2830_v3  ;;  %v807_v22 = vadd.f32 %v9899_v45, %v9714_v36 }
 0x199   : > { %v1952_v50 = vmax.f32 %v1950_v7, %v1951_v62  ;;  %v2578_v54 = vmax.f32 %v9859_v1, %v2577_v41  ;;  %v2580_v51 = vsel %vm2515_vm2, %v1940_v52, -inf  ;;  %v1164_v61 = vrot.slane %v1150_v42, %v9595_v56 }
 0x19a   : > { %v2581_v53 = vmax.f32 %v9866_v18, %v2580_v51  ;;  %v2583_v59 = vsel %vm2515_vm2, %v1947_v48, -inf  ;;  %v1165_v28 = vcombine.high %v1157_v46, %v1157_v46  ;;  %v1955_v31 = vsel %vm1618_vm3, %v1157_v46, -inf }
 0x19b   : > { %v1953_v6 = vrot.slane %v1952_v50, 1  ;;  %v2584_v32 = vmax.f32 %v9863_v14, %v2583_v59  ;;  %v2832_v36 = vsel %vm2814_vm7, %v2578_v54, %v2831_v37  ;;  %v1166_v63 = vcombine.high %v1164_v61, %v1164_v61 }
 0x19c   : > { %v2833_v0 = vsel %vm2816_vm8, %v2581_v53, %v2832_v36  ;;  %v1956_v1 = vrot.slane %v1955_v31, 4  ;;  %v1962_v4 = vsel %vm1618_vm3, %v1165_v28, -inf  ;;  %v1969_v5 = vsel %vm1618_vm3, %v1164_v61, -inf }
 0x19d   : > { %v1954_v10 = vmax.f32 %v1952_v50, %v1953_v6  ;;  %v2834_v18 = vsel %vm2818_vm9, %v2584_v32, %v2833_v0  ;;  %v1963_v11 = vrot.slane %v1962_v4, 4  ;;  %v1970_v13 = vrot.slane %v1969_v5, 4 }
 0x19e   : > { %v1957_v8 = vmax.f32 %v1955_v31, %v1956_v1  ;;  %v1976_v9 = vsel %vm1618_vm3, %v1166_v63, -inf  ;;  %v895_v19 = vmax.f32 %v807_v22, 0.0  ;;  %v812_v14 = vadd.f32 %v9899_v45, %v9727_v2 }
 0x19f   : > { %v2586_v20 = vsel %vm2515_vm2, %v1954_v10, -inf  ;;  %v1964_v21 = vmax.f32 %v1962_v4, %v1963_v11  ;;  %v1971_v15 = vmax.f32 %v1969_v5, %v1970_v13  ;;  %v1977_v25 = vrot.slane %v1976_v9, 4 }
 0x1a0   : > { %v2587_v7 = vmax.f32 %v9870_v35, %v2586_v20  ;;  %v1958_v26 = vrot.slane %v1957_v8, 2  ;;  %v1167_v23 = vcombine.high %v895_v19, %v895_v19  ;;  %v1174_v27 = vrot.slane %v895_v19, %v9595_v56 }
 0x1a1   : > { %v1965_v33 = vrot.slane %v1964_v21, 2  ;;  %v1972_v29 = vrot.slane %v1971_v15, 2  ;;  %v1978_v3 = vmax.f32 %v1976_v9, %v1977_v25  ;;  %v896_v58 = vmax.f32 %v812_v14, 0.0 }
 0x1a2   : > { %v2835_v40 = vsel %vm2820_vm10, %v2587_v7, %v2834_v18  ;;  %v1959_v43 = vmax.f32 %v1957_v8, %v1958_v26  ;;  %v1181_v2 = vrot.slane %v1167_v23, %v9595_v56  ;;  %v1182_v52 = vcombine.high %v1174_v27, %v1174_v27 }
 0x1a3   : > { %2882 = vst.msk [vmem:[#allocation2 + $0x68] sm:$0xff] %vm2515_vm2, %v2835_v40  ;;  %v1966_v62 = vmax.f32 %v1964_v21, %v1965_v33  ;;  %v1973_v42 = vmax.f32 %v1971_v15, %v1972_v29  ;;  %v1979_v46 = vrot.slane %v1978_v3, 2  ;;  %v1983_v35 = vsel %vm1618_vm3, %v1174_v27, -inf }
 0x1a4   : > { %v1960_v48 = vrot.slane %v1959_v43, 1  ;;  %v1183_v41 = vcombine.high %v1181_v2, %v1181_v2  ;;  %v1984_v37 = vrot.slane %v1983_v35, 4  ;;  %v1990_v22 = vsel %vm1618_vm3, %v1182_v52, -inf }
 0x1a5   : > { %v1967_v49 = vrot.slane %v1966_v62, 1  ;;  %v1974_v50 = vrot.slane %v1973_v42, 1  ;;  %v1980_v54 = vmax.f32 %v1978_v3, %v1979_v46  ;;  %v1991_v51 = vrot.slane %v1990_v22, 4 }
 0x1a6   : > { %v1961_v61 = vmax.f32 %v1959_v43, %v1960_v48  ;;  %v1985_v53 = vmax.f32 %v1983_v35, %v1984_v37  ;;  %v1997_v59 = vsel %vm1618_vm3, %v1181_v2, -inf  ;;  %v2004_v28 = vsel %vm1618_vm3, %v1183_v41, -inf }
 0x1a7   : > { %v1968_v31 = vmax.f32 %v1966_v62, %v1967_v49  ;;  %v1975_v6 = vmax.f32 %v1973_v42, %v1974_v50  ;;  %v1981_v32 = vrot.slane %v1980_v54, 1  ;;  %v1992_v36 = vmax.f32 %v1990_v22, %v1991_v51  ;;  %v9945_v62 = vpop.f32.mrb[54].mxu0 }
 0x1a8   : > { %v9929_v63 = vsel %vm2515_vm2, %v1961_v61, -inf  ;;  %v1986_v0 = vrot.slane %v1985_v53, 2  ;;  %v1998_v1 = vrot.slane %v1997_v59, 4  ;;  %v2005_v4 = vrot.slane %v2004_v28, 4  ;;  %v864_v35 = vpop.f32.mrb[55].mxu0 }
 0x1a9   : > { %v1982_v5 = vmax.f32 %v1980_v54, %v1981_v32  ;;  %v9932_v10 = vsel %vm2515_vm2, %v1968_v31, -inf  ;;  %v9935_v18 = vsel %vm2515_vm2, %v1975_v6, -inf  ;;  %v1993_v11 = vrot.slane %v1992_v36, 2 }
 0x1aa   : > { %v1987_v13 = vmax.f32 %v1985_v53, %v1986_v0  ;;  %v1999_v8 = vmax.f32 %v1997_v59, %v1998_v1  ;;  %v2006_v9 = vmax.f32 %v2004_v28, %v2005_v4  ;;  %v1184_v19 = vcombine.high %v896_v58, %v896_v58 }
 0x1ab   : > { %v9938_v14 = vsel %vm2515_vm2, %v1982_v5, -inf  ;;  %v1994_v20 = vmax.f32 %v1992_v36, %v1993_v11  ;;  %v1191_v21 = vrot.slane %v896_v58, %v9595_v56  ;;  %v815_v15 = vadd.f32 %v9899_v45, %v9731_v16 }
 0x1ac   : > { %v1988_v25 = vrot.slane %v1987_v13, 1  ;;  %v2000_v7 = vrot.slane %v1999_v8, 2  ;;  %v2007_v26 = vrot.slane %v2006_v9, 2  ;;  %v1198_v23 = vrot.slane %v1184_v19, %v9595_v56 }
 0x1ad   : > { %v1995_v27 = vrot.slane %v1994_v20, 1  ;;  %v1199_v33 = vcombine.high %v1191_v21, %v1191_v21  ;;  %v2011_v29 = vsel %vm1618_vm3, %v1191_v21, -inf  ;;  %v897_v3 = vmax.f32 %v815_v15, 0.0 }
 0x1ae   : > { %v1989_v40 = vmax.f32 %v1987_v13, %v1988_v25  ;;  %v2001_v43 = vmax.f32 %v1999_v8, %v2000_v7  ;;  %v2008_v2 = vmax.f32 %v2006_v9, %v2007_v26  ;;  %v1200_v52 = vcombine.high %v1198_v23, %v1198_v23 }
 0x1af   : > { %v1996_v58 = vmax.f32 %v1994_v20, %v1995_v27  ;;  %v2012_v42 = vrot.slane %v2011_v29, 4  ;;  %v2018_v16 = vsel %vm1618_vm3, %v1199_v33, -inf  ;;  %v2025_v46 = vsel %vm1618_vm3, %v1198_v23, -inf }
 0x1b0   : > { %v2002_v48 = vrot.slane %v2001_v43, 1  ;;  %v2009_v41 = vrot.slane %v2008_v2, 1  ;;  %v9950_v37 = vsel %vm2515_vm2, %v1989_v40, -inf  ;;  %v2019_v22 = vrot.slane %v2018_v16, 4 }
 0x1b1   : > { %v9953_v49 = vsel %vm2515_vm2, %v1996_v58, -inf  ;;  %v2013_v50 = vmax.f32 %v2011_v29, %v2012_v42  ;;  %v2026_v54 = vrot.slane %v2025_v46, 4  ;;  %v2032_v51 = vsel %vm1618_vm3, %v1200_v52, -inf }
 0x1b2   : > { %v2003_v61 = vmax.f32 %v2001_v43, %v2002_v48  ;;  %v2010_v53 = vmax.f32 %v2008_v2, %v2009_v41  ;;  %v2020_v59 = vmax.f32 %v2018_v16, %v2019_v22  ;;  %v2033_v28 = vrot.slane %v2032_v51, 4 }
 0x1b3   : > { %v2014_v31 = vrot.slane %v2013_v50, 2  ;;  %v2027_v6 = vmax.f32 %v2025_v46, %v2026_v54  ;;  %v1201_v32 = vcombine.high %v897_v3, %v897_v3  ;;  %v1208_v36 = vrot.slane %v897_v3, %v9595_v56 }
 0x1b4   : > { %v9958_v0 = vsel %vm2515_vm2, %v2003_v61, -inf  ;;  %v9961_v1 = vsel %vm2515_vm2, %v2010_v53, -inf  ;;  %v2021_v4 = vrot.slane %v2020_v59, 2  ;;  %v2034_v5 = vmax.f32 %v2032_v51, %v2033_v28 }
 0x1b5   : > { %v2015_v11 = vmax.f32 %v2013_v50, %v2014_v31  ;;  %v2028_v13 = vrot.slane %v2027_v6, 2  ;;  %v1215_v8 = vrot.slane %v1201_v32, %v9595_v56  ;;  %v1216_v9 = vcombine.high %v1208_v36, %v1208_v36 }
 0x1b6   : > { %v2022_v19 = vmax.f32 %v2020_v59, %v2021_v4  ;;  %v2035_v20 = vrot.slane %v2034_v5, 2  ;;  %v2039_v21 = vsel %vm1618_vm3, %v1208_v36, -inf  ;;  %v820_v15 = vadd.f32 %v9899_v45, %v9743_v30  ;;  %v2921_v4 = vld [vmem:[#allocation2 + $0x8] sm:$0xff] }
 0x1b7   : > { %v2016_v25 = vrot.slane %v2015_v11, 1  ;;  %v2029_v7 = vmax.f32 %v2027_v6, %v2028_v13  ;;  %v1217_v26 = vcombine.high %v1215_v8, %v1215_v8  ;;  %v2040_v23 = vrot.slane %v2039_v21, 4 }
 0x1b8   : > { %v2023_v27 = vrot.slane %v2022_v19, 1  ;;  %v2036_v33 = vmax.f32 %v2034_v5, %v2035_v20  ;;  %v2046_v29 = vsel %vm1618_vm3, %v1216_v9, -inf  ;;  %v2053_v3 = vsel %vm1618_vm3, %v1215_v8, -inf  ;;  %v2922_v5 = vld [vmem:[#allocation2 + $0x20] sm:$0xff] }
 0x1b9   : > { %v2017_v40 = vmax.f32 %v2015_v11, %v2016_v25  ;;  %v2030_v43 = vrot.slane %v2029_v7, 1  ;;  %v2041_v2 = vmax.f32 %v2039_v21, %v2040_v23  ;;  %v2047_v52 = vrot.slane %v2046_v29, 4  ;;  %v2924_v21 = vld [vmem:[#allocation2 + $0x50] sm:$0xff] }
 0x1ba   : > { %v2024_v58 = vmax.f32 %v2022_v19, %v2023_v27  ;;  %v2037_v42 = vrot.slane %v2036_v33, 1  ;;  %v2054_v16 = vrot.slane %v2053_v3, 4  ;;  %v2060_v46 = vsel %vm1618_vm3, %v1217_v26, -inf }
 0x1bb   : > { %v2031_v30 = vmax.f32 %v2029_v7, %v2030_v43  ;;  %v2589_v35 = vsel %vm2515_vm2, %v2017_v40, -inf  ;;  %v2042_v48 = vrot.slane %v2041_v2, 2  ;;  %v2048_v41 = vmax.f32 %v2046_v29, %v2047_v52  ;;  %v2923_v29 = vld [vmem:[#allocation2 + $0x38] sm:$0xff] }
 0x1bc   : > { %v2038_v22 = vmax.f32 %v2036_v33, %v2037_v42  ;;  %v2590_v50 = vmax.f32 %v9929_v63, %v2589_v35  ;;  %v2592_v54 = vsel %vm2515_vm2, %v2024_v58, -inf  ;;  %v2055_v51 = vmax.f32 %v2053_v3, %v2054_v16  ;;  %v9120_v16 = vld [vmem:[%s11474_s3] sm:$0xff]  }
 0x1bd   : > { %v2593_v61 = vmax.f32 %v9932_v10, %v2592_v54  ;;  %v2595_v53 = vsel %vm2515_vm2, %v2031_v30, -inf  ;;  %v2043_v59 = vmax.f32 %v2041_v2, %v2042_v48  ;;  %v2049_v28 = vrot.slane %v2048_v41, 2  ;;  %8366 = vmatprep.subr.bf16.mxu1 %v9120_v16 }
 0x1be   : > { %v2596_v31 = vmax.f32 %v9935_v18, %v2595_v53  ;;  %v2598_v6 = vsel %vm2515_vm2, %v2038_v22, -inf  ;;  %v2056_v32 = vrot.slane %v2055_v51, 2  ;;  %v2061_v36 = vrot.slane %v2060_v46, 4 }
 0x1bf   : > { %v2599_v11 = vmax.f32 %v9938_v14, %v2598_v6  ;;  %v2836_v63 = vsel %vm2808_vm4, %v2593_v61, %v2590_v50  ;;  %v2044_v13 = vrot.slane %v2043_v59, 1  ;;  %v2050_v8 = vmax.f32 %v2048_v41, %v2049_v28 }
 0x1c0   : > { %v2837_v10 = vsel %vm2810_vm5, %v2596_v31, %v2836_v63  ;;  %v2057_v9 = vmax.f32 %v2055_v51, %v2056_v32  ;;  %v2062_v19 = vmax.f32 %v2060_v46, %v2061_v36  ;;  %v898_v20 = vmax.f32 %v820_v15, 0.0 }
 0x1c1   : > { %v2045_v25 = vmax.f32 %v2043_v59, %v2044_v13  ;;  %v2051_v18 = vrot.slane %v2050_v8, 1  ;;  %v2838_v7 = vsel %vm2812_vm6, %v2599_v11, %v2837_v10  ;;  %v2929_v26 = vpack.c.bf16 %v2922_v5, %v2921_v4 }
 0x1c2   : > { %v2058_v23 = vrot.slane %v2057_v9, 1  ;;  %v2063_v27 = vrot.slane %v2062_v19, 2  ;;  %v1218_v33 = vcombine.high %v898_v20, %v898_v20  ;;  %v1225_v14 = vrot.slane %v898_v20, %v9595_v56 }
 0x1c3   : > { %v2052_v3 = vmax.f32 %v2050_v8, %v2051_v18  ;;  %v2601_v40 = vsel %vm2515_vm2, %v2045_v25, -inf  ;;  %8358 = vmatprep.mubr.msk.bf16.mxu1 %vm2515_vm2, %v2929_v26  ;;  %v823_v15 = vadd.f32 %v9899_v45, %v9750_v60  ;;  %v2930_v43 = vpack.c.bf16 %v2924_v21, %v2923_v29  ;;  %v9122_v18 = vld [vmem:[%s11474_s3 + $0x30] sm:$0xff]  }
 0x1c4   : > { %v2059_v2 = vmax.f32 %v2057_v9, %v2058_v23  ;;  %v2064_v52 = vmax.f32 %v2062_v19, %v2063_v27  ;;  %v2602_v58 = vmax.f32 %v9950_v37, %v2601_v40  ;;  %v1232_v42 = vrot.slane %v1218_v33, %v9595_v56 }
 0x1c5   : > { %v2604_v46 = vsel %vm2515_vm2, %v2052_v3, -inf  ;;  %v1233_v30 = vcombine.high %v1225_v14, %v1225_v14  ;;  %v2067_v35 = vsel %vm1618_vm3, %v1225_v14, -inf  ;;  %v899_v48 = vmax.f32 %v823_v15, 0.0  ;;  %8359 = vmatmul.mubr.msk.bf16.vlgmr.msra.gmra.mrb[0].mxu1 %vm2515_vm2, %v2930_v43 }
 0x1c6   : > { %v2065_v60 = vrot.slane %v2064_v52, 1  ;;  %v2605_v41 = vmax.f32 %v9953_v49, %v2604_v46  ;;  %v2607_v22 = vsel %vm2515_vm2, %v2059_v2, -inf  ;;  %v2839_v37 = vsel %vm2814_vm7, %v2602_v58, %v2838_v7  ;;  %8367 = vmatpush3.bf16.msra.mxu1 %v9120_v16  ;;  %v9121_v49 = vld [vmem:[%s11474_s3 + $0x8] sm:$0xff]   ;;  %v10015_v7 = vpop.f32.mrb[56].mxu0 }
 0x1c7   : > { %v2608_v50 = vmax.f32 %v9958_v0, %v2607_v22  ;;  %v1234_v54 = vcombine.high %v1232_v42, %v1232_v42  ;;  %v2068_v51 = vrot.slane %v2067_v35, 4  ;;  %v2074_v61 = vsel %vm1618_vm3, %v1233_v30, -inf  ;;  %8368 = vmatprep.subr.bf16.mxu1 %v9121_v49  ;;  %v869_v33 = vpop.f32.mrb[57].mxu0 }
 0x1c8   : > { %v2066_v53 = vmax.f32 %v2064_v52, %v2065_v60  ;;  %v2840_v59 = vsel %vm2816_vm8, %v2605_v41, %v2839_v37  ;;  %v2075_v28 = vrot.slane %v2074_v61, 4  ;;  %v2081_v31 = vsel %vm1618_vm3, %v1232_v42, -inf }
 0x1c9   : > { %v2841_v6 = vsel %vm2818_vm9, %v2608_v50, %v2840_v59  ;;  %v2069_v32 = vmax.f32 %v2067_v35, %v2068_v51  ;;  %v2082_v36 = vrot.slane %v2081_v31, 4  ;;  %v2088_v0 = vsel %vm1618_vm3, %v1234_v54, -inf }
 0x1ca   : > { %v2610_v4 = vsel %vm2515_vm2, %v2066_v53, -inf  ;;  %v2076_v5 = vmax.f32 %v2074_v61, %v2075_v28  ;;  %v2089_v11 = vrot.slane %v2088_v0, 4  ;;  %v1235_v63 = vcombine.high %v899_v48, %v899_v48  ;;  %8369 = vmatpush3.bf16.msra.mxu1 %v9121_v49 }
 0x1cb   : > { %v2611_v13 = vmax.f32 %v9961_v1, %v2610_v4  ;;  %v2070_v8 = vrot.slane %v2069_v32, 2  ;;  %v2083_v10 = vmax.f32 %v2081_v31, %v2082_v36  ;;  %v1242_v9 = vrot.slane %v899_v48, %v9595_v56  ;;  %8378 = vmatprep.subr.bf16.mxu1 %v9122_v18 }
 0x1cc   : > { %v2077_v19 = vrot.slane %v2076_v5, 2  ;;  %v2090_v20 = vmax.f32 %v2088_v0, %v2089_v11  ;;  %v1249_v21 = vrot.slane %v1235_v63, %v9595_v56  ;;  %v828_v25 = vadd.f32 %v9899_v45, %v9766_v24 }
 0x1cd   : > { %v2842_v1 = vsel %vm2820_vm10, %v2611_v13, %v2841_v6  ;;  %v2071_v26 = vmax.f32 %v2069_v32, %v2070_v8  ;;  %v2084_v23 = vrot.slane %v2083_v10, 2  ;;  %v1250_v27 = vcombine.high %v1242_v9, %v1242_v9 }
 0x1ce   : > { %2883 = vst.msk [vmem:[#allocation2 + $0x80] sm:$0xff] %vm2515_vm2, %v2842_v1  ;;  %v2078_v14 = vmax.f32 %v2076_v5, %v2077_v19  ;;  %v2091_v29 = vrot.slane %v2090_v20, 2  ;;  %v1251_v3 = vcombine.high %v1249_v21, %v1249_v21  ;;  %v2095_v40 = vsel %vm1618_vm3, %v1242_v9, -inf }
 0x1cf   : > { %v2072_v24 = vrot.slane %v2071_v26, 1  ;;  %v2085_v15 = vmax.f32 %v2083_v10, %v2084_v23  ;;  %v2096_v43 = vrot.slane %v2095_v40, 4  ;;  %v2102_v2 = vsel %vm1618_vm3, %v1250_v27, -inf }
 0x1d0   : > { %v2079_v52 = vrot.slane %v2078_v14, 1  ;;  %v2092_v58 = vmax.f32 %v2090_v20, %v2091_v29  ;;  %v2103_v42 = vrot.slane %v2102_v2, 4  ;;  %v2109_v16 = vsel %vm1618_vm3, %v1249_v21, -inf }
 0x1d1   : > { %v2073_v46 = vmax.f32 %v2071_v26, %v2072_v24  ;;  %v2086_v30 = vrot.slane %v2085_v15, 1  ;;  %v2097_v35 = vmax.f32 %v2095_v40, %v2096_v43  ;;  %v2110_v48 = vrot.slane %v2109_v16, 4 }
 0x1d2   : > { %v2080_v60 = vmax.f32 %v2078_v14, %v2079_v52  ;;  %v2093_v41 = vrot.slane %v2092_v58, 1  ;;  %v2104_v22 = vmax.f32 %v2102_v2, %v2103_v42  ;;  %v2116_v37 = vsel %vm1618_vm3, %v1251_v3, -inf  ;;  %v10052_v2 = vpop.f32.mrb[58].mxu0 }
 0x1d3   : > { %v2087_v50 = vmax.f32 %v2085_v15, %v2086_v30  ;;  %v10024_v54 = vsel %vm2515_vm2, %v2073_v46, -inf  ;;  %v2098_v51 = vrot.slane %v2097_v35, 2  ;;  %v2111_v61 = vmax.f32 %v2109_v16, %v2110_v48  ;;  %v872_v46 = vpop.f32.mrb[59].mxu0 }
 0x1d4   : > { %v2094_v53 = vmax.f32 %v2092_v58, %v2093_v41  ;;  %v10027_v59 = vsel %vm2515_vm2, %v2080_v60, -inf  ;;  %v2105_v28 = vrot.slane %v2104_v22, 2  ;;  %v2117_v31 = vrot.slane %v2116_v37, 4 }
 0x1d5   : > { %v10030_v49 = vsel %vm2515_vm2, %v2087_v50, -inf  ;;  %v2099_v6 = vmax.f32 %v2097_v35, %v2098_v51  ;;  %v2112_v32 = vrot.slane %v2111_v61, 2  ;;  %v900_v36 = vmax.f32 %v828_v25, 0.0 }
 0x1d6   : > { %v10033_v0 = vsel %vm2515_vm2, %v2094_v53, -inf  ;;  %v2106_v4 = vmax.f32 %v2104_v22, %v2105_v28  ;;  %v2118_v5 = vmax.f32 %v2116_v37, %v2117_v31  ;;  %v831_v11 = vadd.f32 %v9899_v45, %v9775_v39 }
 0x1d7   : > { %v2100_v63 = vrot.slane %v2099_v6, 1  ;;  %v2113_v13 = vmax.f32 %v2111_v61, %v2112_v32  ;;  %v1252_v8 = vcombine.high %v900_v36, %v900_v36  ;;  %v1259_v10 = vrot.slane %v900_v36, %v9595_v56 }
 0x1d8   : > { %v2107_v9 = vrot.slane %v2106_v4, 1  ;;  %v2119_v19 = vrot.slane %v2118_v5, 2  ;;  %v901_v20 = vmax.f32 %v831_v11, 0.0  ;;  %v10040_v21 = vadd.f32 %v9899_v45, %v9786_v12 }
 0x1d9   : > { %v2101_v25 = vmax.f32 %v2099_v6, %v2100_v63  ;;  %v2114_v18 = vrot.slane %v2113_v13, 1  ;;  %v1266_v1 = vrot.slane %v1252_v8, %v9595_v56  ;;  %v1267_v26 = vcombine.high %v1259_v10, %v1259_v10 }
 0x1da   : > { %v2108_v23 = vmax.f32 %v2106_v4, %v2107_v9  ;;  %v2120_v27 = vmax.f32 %v2118_v5, %v2119_v19  ;;  %v2123_v39 = vsel %vm1618_vm3, %v1259_v10, -inf  ;;  %v1269_v33 = vcombine.high %v901_v20, %v901_v20  ;;  %v10064_v4 = vpop.f32.mrb[60].mxu0 }
 0x1db   : > { %v2115_v14 = vmax.f32 %v2113_v13, %v2114_v18  ;;  %v10045_v29 = vsel %vm2515_vm2, %v2101_v25, -inf  ;;  %v1268_v3 = vcombine.high %v1266_v1, %v1266_v1  ;;  %v2124_v40 = vrot.slane %v2123_v39, 4  ;;  %v877_v8 = vpop.f32.mrb[61].mxu0 }
 0x1dc   : > { %v2121_v24 = vrot.slane %v2120_v27, 1  ;;  %v10048_v12 = vsel %vm2515_vm2, %v2108_v23, -inf  ;;  %v2130_v15 = vsel %vm1618_vm3, %v1267_v26, -inf  ;;  %v2137_v43 = vsel %vm1618_vm3, %v1266_v1, -inf }
 0x1dd   : > { %v10055_v52 = vsel %vm2515_vm2, %v2115_v14, -inf  ;;  %v2125_v58 = vmax.f32 %v2123_v39, %v2124_v40  ;;  %v2131_v42 = vrot.slane %v2130_v15, 4  ;;  %v2138_v16 = vrot.slane %v2137_v43, 4 }
 0x1de   : > { %v2122_v30 = vmax.f32 %v2120_v27, %v2121_v24  ;;  %v2144_v35 = vsel %vm1618_vm3, %v1268_v3, -inf  ;;  %v1276_v48 = vrot.slane %v901_v20, %v9595_v56  ;;  %v1283_v60 = vrot.slane %v1269_v33, %v9595_v56 }
 0x1df   : > { %v2126_v41 = vrot.slane %v2125_v58, 2  ;;  %v2132_v22 = vmax.f32 %v2130_v15, %v2131_v42  ;;  %v2139_v37 = vmax.f32 %v2137_v43, %v2138_v16  ;;  %v2145_v50 = vrot.slane %v2144_v35, 4 }
 0x1e0   : > { %v10061_v51 = vsel %vm2515_vm2, %v2122_v30, -inf  ;;  %v1284_v61 = vcombine.high %v1276_v48, %v1276_v48  ;;  %v1285_v53 = vcombine.high %v1283_v60, %v1283_v60  ;;  %v2151_v28 = vsel %vm1618_vm3, %v1276_v48, -inf }
 0x1e1   : > { %v2127_v31 = vmax.f32 %v2125_v58, %v2126_v41  ;;  %v2133_v6 = vrot.slane %v2132_v22, 2  ;;  %v2140_v32 = vrot.slane %v2139_v37, 2  ;;  %v2146_v36 = vmax.f32 %v2144_v35, %v2145_v50 }
 0x1e2   : > { %v2152_v5 = vrot.slane %v2151_v28, 4  ;;  %v2158_v11 = vsel %vm1618_vm3, %v1284_v61, -inf  ;;  %v2165_v63 = vsel %vm1618_vm3, %v1283_v60, -inf  ;;  %v2172_v13 = vsel %vm1618_vm3, %v1285_v53, -inf }
 0x1e3   : > { %v2128_v10 = vrot.slane %v2127_v31, 1  ;;  %v2134_v9 = vmax.f32 %v2132_v22, %v2133_v6  ;;  %v2141_v19 = vmax.f32 %v2139_v37, %v2140_v32  ;;  %v2147_v20 = vrot.slane %v2146_v36, 2 }
 0x1e4   : > { %v2153_v25 = vmax.f32 %v2151_v28, %v2152_v5  ;;  %v2159_v18 = vrot.slane %v2158_v11, 4  ;;  %v2166_v1 = vrot.slane %v2165_v63, 4  ;;  %v2173_v26 = vrot.slane %v2172_v13, 4 }
 0x1e5   : > { %v2129_v23 = vmax.f32 %v2127_v31, %v2128_v10  ;;  %v2135_v27 = vrot.slane %v2134_v9, 1  ;;  %v2142_v39 = vrot.slane %v2141_v19, 1  ;;  %v2148_v33 = vmax.f32 %v2146_v36, %v2147_v20  ;;  %v10083_v20 = vpop.f32.mrb[62].mxu0 }
 0x1e6   : > { %v2154_v14 = vrot.slane %v2153_v25, 2  ;;  %v2160_v3 = vmax.f32 %v2158_v11, %v2159_v18  ;;  %v2167_v40 = vmax.f32 %v2165_v63, %v2166_v1  ;;  %v2174_v24 = vmax.f32 %v2172_v13, %v2173_v26  ;;  %v880_v1 = vpop.f32.mrb[63].mxu0 }
 0x1e7   : > { %v2136_v15 = vmax.f32 %v2134_v9, %v2135_v27  ;;  %v2143_v43 = vmax.f32 %v2141_v19, %v2142_v39  ;;  %v2149_v58 = vrot.slane %v2148_v33, 1  ;;  %v2613_v42 = vsel %vm2515_vm2, %v2129_v23, -inf }
 0x1e8   : > { %v2614_v16 = vmax.f32 %v10024_v54, %v2613_v42  ;;  %v2155_v46 = vmax.f32 %v2153_v25, %v2154_v14  ;;  %v2161_v30 = vrot.slane %v2160_v3, 2  ;;  %v2168_v35 = vrot.slane %v2167_v40, 2 }
 0x1e9   : > { %v2150_v48 = vmax.f32 %v2148_v33, %v2149_v58  ;;  %v2616_v60 = vsel %vm2515_vm2, %v2136_v15, -inf  ;;  %v2619_v41 = vsel %vm2515_vm2, %v2143_v43, -inf  ;;  %v2175_v22 = vrot.slane %v2174_v24, 2 }
 0x1ea   : > { %v2617_v37 = vmax.f32 %v10027_v59, %v2616_v60  ;;  %v2620_v50 = vmax.f32 %v10030_v49, %v2619_v41  ;;  %v2156_v61 = vrot.slane %v2155_v46, 1  ;;  %v2162_v53 = vmax.f32 %v2160_v3, %v2161_v30 }
 0x1eb   : > { %v2622_v28 = vsel %vm2515_vm2, %v2150_v48, -inf  ;;  %v2169_v31 = vmax.f32 %v2167_v40, %v2168_v35  ;;  %v2176_v6 = vmax.f32 %v2174_v24, %v2175_v22  ;;  %v902_v54 = vmax.f32 %v10040_v21, 0.0 }
 0x1ec   : > { %v2623_v32 = vmax.f32 %v10033_v0, %v2622_v28  ;;  %v2843_v36 = vsel %vm2808_vm4, %v2617_v37, %v2614_v16  ;;  %v2157_v5 = vmax.f32 %v2155_v46, %v2156_v61  ;;  %v2163_v11 = vrot.slane %v2162_v53, 1 }
 0x1ed   : > { %v2844_v63 = vsel %vm2810_vm5, %v2620_v50, %v2843_v36  ;;  %v2170_v13 = vrot.slane %v2169_v31, 1  ;;  %v2177_v59 = vrot.slane %v2176_v6, 1  ;;  %v1286_v8 = vcombine.high %v902_v54, %v902_v54 }
 0x1ee   : > { %v2164_v49 = vmax.f32 %v2162_v53, %v2163_v11  ;;  %v2625_v10 = vsel %vm2515_vm2, %v2157_v5, -inf  ;;  %v2845_v9 = vsel %vm2812_vm6, %v2623_v32, %v2844_v63  ;;  %v1293_v19 = vrot.slane %v902_v54, %v9595_v56 }
 0x1ef   : > { %v2171_v21 = vmax.f32 %v2169_v31, %v2170_v13  ;;  %v2178_v0 = vmax.f32 %v2176_v6, %v2177_v59  ;;  %v2626_v25 = vmax.f32 %v10045_v29, %v2625_v10  ;;  %v1300_v18 = vrot.slane %v1286_v8, %v9595_v56 }
 0x1f0   : > { %v2628_v26 = vsel %vm2515_vm2, %v2164_v49, -inf  ;;  %v1301_v23 = vcombine.high %v1293_v19, %v1293_v19  ;;  %v2179_v27 = vsel %vm1618_vm3, %v1293_v19, -inf  ;;  %v839_v39 = vadd.f32 %v9899_v45, %v9801_v57 }
 0x1f1   : > { %v2629_v33 = vmax.f32 %v10048_v12, %v2628_v26  ;;  %v2631_v14 = vsel %vm2515_vm2, %v2171_v21, -inf  ;;  %v2634_v3 = vsel %vm2515_vm2, %v2178_v0, -inf  ;;  %v2846_v40 = vsel %vm2814_vm7, %v2626_v25, %v2845_v9 }
 0x1f2   : > { %v2632_v29 = vmax.f32 %v10055_v52, %v2631_v14  ;;  %v2635_v24 = vmax.f32 %v10061_v51, %v2634_v3  ;;  %v1302_v15 = vcombine.high %v1300_v18, %v1300_v18  ;;  %v2180_v43 = vrot.slane %v2179_v27, 4 }
 0x1f3   : > { %v2847_v58 = vsel %vm2816_vm8, %v2629_v33, %v2846_v40  ;;  %v2186_v42 = vsel %vm1618_vm3, %v1301_v23, -inf  ;;  %v2193_v57 = vsel %vm1618_vm3, %v1300_v18, -inf  ;;  %v903_v16 = vmax.f32 %v839_v39, 0.0 }
 0x1f4   : > { %v2848_v12 = vsel %vm2818_vm9, %v2632_v29, %v2847_v58  ;;  %v2181_v46 = vmax.f32 %v2179_v27, %v2180_v43  ;;  %v2187_v30 = vrot.slane %v2186_v42, 4  ;;  %v2194_v35 = vrot.slane %v2193_v57, 4 }
 0x1f5   : > { %v2849_v48 = vsel %vm2820_vm10, %v2635_v24, %v2848_v12  ;;  %v2200_v52 = vsel %vm1618_vm3, %v1302_v15, -inf  ;;  %v1303_v60 = vcombine.high %v903_v16, %v903_v16  ;;  %v1310_v51 = vrot.slane %v903_v16, %v9595_v56 }
 0x1f6   : > { %2884 = vst.msk [vmem:[#allocation2 + $0x98] sm:$0xff] %vm2515_vm2, %v2849_v48  ;;  %v2182_v41 = vrot.slane %v2181_v46, 2  ;;  %v2188_v22 = vmax.f32 %v2186_v42, %v2187_v30  ;;  %v2195_v37 = vmax.f32 %v2193_v57, %v2194_v35  ;;  %v2201_v50 = vrot.slane %v2200_v52, 4 }
 0x1f7   : > { %v1317_v61 = vrot.slane %v1303_v60, %v9595_v56  ;;  %v1318_v53 = vcombine.high %v1310_v51, %v1310_v51  ;;  %v2207_v28 = vsel %vm1618_vm3, %v1310_v51, -inf  ;;  %v844_v31 = vadd.f32 %v9899_v45, %v9818_v17 }
 0x1f8   : > { %v2183_v6 = vmax.f32 %v2181_v46, %v2182_v41  ;;  %v2189_v54 = vrot.slane %v2188_v22, 2  ;;  %v2196_v32 = vrot.slane %v2195_v37, 2  ;;  %v2202_v36 = vmax.f32 %v2200_v52, %v2201_v50 }
 0x1f9   : > { %v1319_v5 = vcombine.high %v1317_v61, %v1317_v61  ;;  %v2208_v11 = vrot.slane %v2207_v28, 4  ;;  %v2214_v63 = vsel %vm1618_vm3, %v1318_v53, -inf  ;;  %v2221_v13 = vsel %vm1618_vm3, %v1317_v61, -inf }
 0x1fa   : > { %v2184_v59 = vrot.slane %v2183_v6, 1  ;;  %v2190_v8 = vmax.f32 %v2188_v22, %v2189_v54  ;;  %v2197_v49 = vmax.f32 %v2195_v37, %v2196_v32  ;;  %v2203_v10 = vrot.slane %v2202_v36, 2 }
 0x1fb   : > { %v2209_v9 = vmax.f32 %v2207_v28, %v2208_v11  ;;  %v2215_v19 = vrot.slane %v2214_v63, 4  ;;  %v2222_v21 = vrot.slane %v2221_v13, 4  ;;  %v2228_v0 = vsel %vm1618_vm3, %v1319_v5, -inf }
 0x1fc   : > { %v2185_v17 = vmax.f32 %v2183_v6, %v2184_v59  ;;  %v2191_v25 = vrot.slane %v2190_v8, 1  ;;  %v2198_v18 = vrot.slane %v2197_v49, 1  ;;  %v2204_v1 = vmax.f32 %v2202_v36, %v2203_v10 }
 0x1fd   : > { %v2210_v26 = vrot.slane %v2209_v9, 2  ;;  %v2216_v23 = vmax.f32 %v2214_v63, %v2215_v19  ;;  %v2223_v27 = vmax.f32 %v2221_v13, %v2222_v21  ;;  %v2229_v39 = vrot.slane %v2228_v0, 4 }
 0x1fe   : > { %v2192_v33 = vmax.f32 %v2190_v8, %v2191_v25  ;;  %v2199_v14 = vmax.f32 %v2197_v49, %v2198_v18  ;;  %v2205_v3 = vrot.slane %v2204_v1, 1  ;;  %v10113_v58 = vsel %vm2515_vm2, %v2185_v17, -inf  ;;  %v2926_v8 = vld [vmem:[#allocation2 + $0x80] sm:$0xff]  ;;  %v2925_v18 = vld [vmem:[#allocation2 + $0x68] sm:$0xff] }
 0x1ff   : > { %v2211_v40 = vmax.f32 %v2209_v9, %v2210_v26  ;;  %v2217_v29 = vrot.slane %v2216_v23, 2  ;;  %v2224_v24 = vrot.slane %v2223_v27, 2  ;;  %v2230_v15 = vmax.f32 %v2228_v0, %v2229_v39 }
 0x200   : > { %v2206_v43 = vmax.f32 %v2204_v1, %v2205_v3  ;;  %v10116_v42 = vsel %vm2515_vm2, %v2192_v33, -inf  ;;  %v904_v57 = vmax.f32 %v844_v31, 0.0  ;;  %v10119_v35 = vsel %vm2515_vm2, %v2199_v14, -inf }
 0x201   : > { %v2212_v16 = vrot.slane %v2211_v40, 1  ;;  %v2218_v12 = vmax.f32 %v2216_v23, %v2217_v29  ;;  %v2225_v46 = vmax.f32 %v2223_v27, %v2224_v24  ;;  %v2231_v30 = vrot.slane %v2230_v15, 2 }
 0x202   : > { %v1320_v48 = vcombine.high %v904_v57, %v904_v57  ;;  %v1327_v52 = vrot.slane %v904_v57, %v9595_v56  ;;  %v847_v60 = vadd.f32 %v9899_v45, %v9850_v38  ;;  %v10127_v31 = vsel %vm2515_vm2, %v2206_v43, -inf }
 0x203   : > { %v2213_v51 = vmax.f32 %v2211_v40, %v2212_v16  ;;  %v2219_v41 = vrot.slane %v2218_v12, 1  ;;  %v2226_v22 = vrot.slane %v2225_v46, 1  ;;  %v2232_v37 = vmax.f32 %v2230_v15, %v2231_v30 }
 0x204   : > { %v1334_v50 = vrot.slane %v1320_v48, %v9595_v56  ;;  %v1335_v61 = vcombine.high %v1327_v52, %v1327_v52  ;;  %v2235_v53 = vsel %vm1618_vm3, %v1327_v52, -inf  ;;  %v905_v28 = vmax.f32 %v847_v60, 0.0 }
 0x205   : > { %v2220_v6 = vmax.f32 %v2218_v12, %v2219_v41  ;;  %v2227_v54 = vmax.f32 %v2225_v46, %v2226_v22  ;;  %v2233_v32 = vrot.slane %v2232_v37, 1  ;;  %v2236_v5 = vrot.slane %v2235_v53, 4 }
 0x206   : > { %v1336_v36 = vcombine.high %v1334_v50, %v1334_v50  ;;  %v2242_v38 = vsel %vm1618_vm3, %v1335_v61, -inf  ;;  %v2249_v45 = vsel %vm1618_vm3, %v1334_v50, -inf  ;;  %v10134_v63 = vsel %vm2515_vm2, %v2213_v51, -inf }
 0x207   : > { %v10131_v11 = vmax.f32 %v2232_v37, %v2233_v32  ;;  %v10137_v13 = vsel %vm2515_vm2, %v2220_v6, -inf  ;;  %v2243_v59 = vrot.slane %v2242_v38, 4  ;;  %v2237_v49 = vmax.f32 %v2235_v53, %v2236_v5 }
 0x208   : > { %v2250_v10 = vrot.slane %v2249_v45, 4  ;;  %v2256_v9 = vsel %vm1618_vm3, %v1336_v36, -inf  ;;  %v1337_v19 = vcombine.high %v905_v28, %v905_v28  ;;  %v10141_v21 = vsel %vm2515_vm2, %v2227_v54, -inf }
 0x209   : > { %v2244_v0 = vmax.f32 %v2242_v38, %v2243_v59  ;;  %v2257_v17 = vrot.slane %v2256_v9, 4  ;;  %v1344_v25 = vrot.slane %v905_v28, %v9595_v56  ;;  %v2238_v1 = vrot.slane %v2237_v49, 2 }
 0x20a   : > { %v2251_v26 = vmax.f32 %v2249_v45, %v2250_v10  ;;  %v1351_v23 = vrot.slane %v1337_v19, %v9595_v56  ;;  %v2931_v27 = vpack.c.bf16 %v2926_v8, %v2925_v18 }
 0x20b   : > { %v2245_v39 = vrot.slane %v2244_v0, 2  ;;  %v2258_v33 = vmax.f32 %v2256_v9, %v2257_v17  ;;  %v1352_v14 = vcombine.high %v1344_v25, %v1344_v25  ;;  %v2263_v3 = vsel %vm1618_vm3, %v1344_v25, -inf }
 0x20c   : > { %v2239_v40 = vmax.f32 %v2237_v49, %v2238_v1  ;;  %v2252_v29 = vrot.slane %v2251_v26, 2  ;;  %v1353_v24 = vcombine.high %v1351_v23, %v1351_v23  ;;  %v2264_v15 = vrot.slane %v2263_v3, 4  ;;  %8362 = vmatprep.mubr.msk.bf16.mxu1 %vm2515_vm2, %v2931_v27 }
 0x20d   : > { %v2246_v43 = vmax.f32 %v2244_v0, %v2245_v39  ;;  %v2259_v57 = vrot.slane %v2258_v33, 2  ;;  %v2270_v16 = vsel %vm1618_vm3, %v1352_v14, -inf  ;;  %v2277_v12 = vsel %vm1618_vm3, %v1351_v23, -inf }
 0x20e   : > { %v2240_v46 = vrot.slane %v2239_v40, 1  ;;  %v2253_v30 = vmax.f32 %v2251_v26, %v2252_v29  ;;  %v2265_v48 = vmax.f32 %v2263_v3, %v2264_v15  ;;  %v2271_v52 = vrot.slane %v2270_v16, 4  ;;  %v10163_v3 = vld [vmem:[%s11473_s2] ss:$0 sm:$0xff] }
 0x20f   : > { %v2247_v60 = vrot.slane %v2246_v43, 1  ;;  %v2260_v51 = vmax.f32 %v2258_v33, %v2259_v57  ;;  %v2278_v41 = vrot.slane %v2277_v12, 4  ;;  %v2284_v22 = vsel %vm1618_vm3, %v1353_v24, -inf }
 0x210   : > { %v2241_v37 = vmax.f32 %v2239_v40, %v2240_v46  ;;  %v2254_v50 = vrot.slane %v2253_v30, 1  ;;  %v2266_v61 = vrot.slane %v2265_v48, 2  ;;  %v2272_v53 = vmax.f32 %v2270_v16, %v2271_v52 }
 0x211   : > { %v2248_v28 = vmax.f32 %v2246_v43, %v2247_v60  ;;  %v2261_v6 = vrot.slane %v2260_v51, 1  ;;  %v2279_v54 = vmax.f32 %v2277_v12, %v2278_v41  ;;  %v2285_v32 = vrot.slane %v2284_v22, 4 }
 0x212   : > { %v2255_v36 = vmax.f32 %v2253_v30, %v2254_v50  ;;  %v2637_v5 = vsel %vm2515_vm2, %v2241_v37, -inf  ;;  %v2267_v38 = vmax.f32 %v2265_v48, %v2266_v61  ;;  %v2273_v45 = vrot.slane %v2272_v53, 2 }
 0x213   : > { %v2262_v59 = vmax.f32 %v2260_v51, %v2261_v6  ;;  %v2638_v8 = vmax.f32 %v10113_v58, %v2637_v5  ;;  %v2640_v49 = vsel %vm2515_vm2, %v2248_v28, -inf  ;;  %v2280_v10 = vrot.slane %v2279_v54, 2 }
 0x214   : > { %v2641_v9 = vmax.f32 %v10116_v42, %v2640_v49  ;;  %v2643_v19 = vsel %vm2515_vm2, %v2255_v36, -inf  ;;  %v2268_v0 = vrot.slane %v2267_v38, 1  ;;  %v2274_v17 = vmax.f32 %v2272_v53, %v2273_v45 }
 0x215   : > { %v2644_v25 = vmax.f32 %v10119_v35, %v2643_v19  ;;  %v2646_v18 = vsel %vm2515_vm2, %v2262_v59, -inf  ;;  %v2281_v1 = vmax.f32 %v2279_v54, %v2280_v10  ;;  %v2286_v26 = vmax.f32 %v2284_v22, %v2285_v32 }
 0x216   : > { %v2647_v23 = vmax.f32 %v10127_v31, %v2646_v18  ;;  %v2850_v27 = vsel %vm2808_vm4, %v2641_v9, %v2638_v8  ;;  %v2269_v58 = vmax.f32 %v2267_v38, %v2268_v0  ;;  %v2275_v39 = vrot.slane %v2274_v17, 1 }
 0x217   : > { %v2851_v33 = vsel %vm2810_vm5, %v2644_v25, %v2850_v27  ;;  %v2282_v14 = vrot.slane %v2281_v1, 1  ;;  %v2287_v42 = vrot.slane %v2286_v26, 2  ;;  %v852_v35 = vadd.f32 %v10163_v3, %v9878_v55 }
 0x218   : > { %v2276_v40 = vmax.f32 %v2274_v17, %v2275_v39  ;;  %v2649_v29 = vsel %vm2515_vm2, %v2269_v58, -inf  ;;  %v2852_v31 = vsel %vm2812_vm6, %v2647_v23, %v2851_v33  ;;  %v855_v24 = vadd.f32 %v10163_v3, %v9887_v34 }
 0x219   : > { %v2283_v15 = vmax.f32 %v2281_v1, %v2282_v14  ;;  %v2288_v43 = vmax.f32 %v2286_v26, %v2287_v42  ;;  %v2650_v57 = vmax.f32 %v10134_v63, %v2649_v29  ;;  %v906_v16 = vmax.f32 %v852_v35, 0.0 }
 0x21a   : > { %v2657_v12 = vsel %vm2515_vm2, %v10131_v11, -inf  ;;  %v2652_v46 = vsel %vm2515_vm2, %v2276_v40, -inf  ;;  %v907_v30 = vmax.f32 %v855_v24, 0.0  ;;  %v860_v55 = vadd.f32 %v10163_v3, %v9892_v44 }
 0x21b   : > { %v2289_v48 = vrot.slane %v2288_v43, 1  ;;  %v2653_v52 = vmax.f32 %v10137_v13, %v2652_v46  ;;  %v2655_v60 = vsel %vm2515_vm2, %v2283_v15, -inf  ;;  %v2853_v34 = vsel %vm2814_vm7, %v2650_v57, %v2852_v31 }
 0x21c   : > { %v2656_v51 = vmax.f32 %v10141_v21, %v2655_v60  ;;  %v1354_v63 = vcombine.high %v906_v16, %v906_v16  ;;  %v1361_v41 = vrot.slane %v906_v16, %v9595_v56  ;;  %v1371_v22 = vcombine.high %v907_v30, %v907_v30 }
 0x21d   : > { %v2290_v11 = vmax.f32 %v2288_v43, %v2289_v48  ;;  %v2854_v37 = vsel %vm2816_vm8, %v2653_v52, %v2853_v34  ;;  %v1378_v50 = vrot.slane %v907_v30, %v9595_v56  ;;  %v10184_v61 = vmax.f32 %v860_v55, 0.0 }
 0x21e   : > { %v2855_v44 = vsel %vm2818_vm9, %v2656_v51, %v2854_v37  ;;  %v1368_v13 = vrot.slane %v1354_v63, %v9595_v56  ;;  %v1369_v53 = vcombine.high %v1361_v41, %v1361_v41  ;;  %v2291_v28 = vsel %vm1618_vm3, %v1361_v41, -inf }
 0x21f   : > { %v2658_v21 = vsel %vm2515_vm2, %v2290_v11, -inf  ;;  %v2292_v6 = vrot.slane %v2291_v28, 4  ;;  %v1385_v54 = vrot.slane %v1371_v22, %v9595_v56  ;;  %v1386_v32 = vcombine.high %v1378_v50, %v1378_v50 }
 0x220   : > { %v2659_v36 = vmax.f32 %v2657_v12, %v2658_v21  ;;  %v1370_v5 = vcombine.high %v1368_v13, %v1368_v13  ;;  %v2298_v38 = vsel %vm1618_vm3, %v1369_v53, -inf  ;;  %v2305_v45 = vsel %vm1618_vm3, %v1368_v13, -inf }
 0x221   : > { %v2293_v59 = vmax.f32 %v2291_v28, %v2292_v6  ;;  %v2299_v8 = vrot.slane %v2298_v38, 4  ;;  %v2306_v49 = vrot.slane %v2305_v45, 4  ;;  %v1387_v10 = vcombine.high %v1385_v54, %v1385_v54 }
 0x222   : > { %v2856_v9 = vsel %vm2820_vm10, %v2659_v36, %v2855_v44  ;;  %v2312_v19 = vsel %vm1618_vm3, %v1370_v5, -inf  ;;  %v2319_v0 = vsel %vm1618_vm3, %v1378_v50, -inf  ;;  %v2326_v17 = vsel %vm1618_vm3, %v1386_v32, -inf }
 0x223   : > { %2885 = vst.msk [vmem:[#allocation2 + $0xb0] sm:$0xff] %vm2515_vm2, %v2856_v9  ;;  %v2294_v25 = vrot.slane %v2293_v59, 2  ;;  %v2300_v18 = vmax.f32 %v2298_v38, %v2299_v8  ;;  %v2307_v1 = vmax.f32 %v2305_v45, %v2306_v49  ;;  %v2313_v26 = vrot.slane %v2312_v19, 4 }
 0x224   : > { %v2320_v23 = vrot.slane %v2319_v0, 4  ;;  %v2327_v27 = vrot.slane %v2326_v17, 4  ;;  %v2333_v58 = vsel %vm1618_vm3, %v1385_v54, -inf  ;;  %v2340_v39 = vsel %vm1618_vm3, %v1387_v10, -inf }
 0x225   : > { %v2295_v33 = vmax.f32 %v2293_v59, %v2294_v25  ;;  %v2301_v14 = vrot.slane %v2300_v18, 2  ;;  %v2308_v42 = vrot.slane %v2307_v1, 2  ;;  %v2314_v35 = vmax.f32 %v2312_v19, %v2313_v26 }
 0x226   : > { %v2321_v40 = vmax.f32 %v2319_v0, %v2320_v23  ;;  %v2328_v29 = vmax.f32 %v2326_v17, %v2327_v27  ;;  %v2334_v31 = vrot.slane %v2333_v58, 4  ;;  %v2341_v24 = vrot.slane %v2340_v39, 4 }
 0x227   : > { %v2296_v15 = vrot.slane %v2295_v33, 1  ;;  %v2302_v43 = vmax.f32 %v2300_v18, %v2301_v14  ;;  %v2309_v57 = vmax.f32 %v2307_v1, %v2308_v42  ;;  %v2315_v16 = vrot.slane %v2314_v35, 2 }
 0x228   : > { %v2322_v12 = vrot.slane %v2321_v40, 2  ;;  %v2329_v46 = vrot.slane %v2328_v29, 2  ;;  %v2335_v30 = vmax.f32 %v2333_v58, %v2334_v31  ;;  %v2342_v55 = vmax.f32 %v2340_v39, %v2341_v24 }
 0x229   : > { %v2297_v48 = vmax.f32 %v2295_v33, %v2296_v15  ;;  %v2303_v52 = vrot.slane %v2302_v43, 1  ;;  %v2310_v60 = vrot.slane %v2309_v57, 1  ;;  %v2316_v34 = vmax.f32 %v2314_v35, %v2315_v16  ;;  %v10237_v15 = vld [vmem:[#allocation2 + $0x98] sm:$0xff] }
 0x22a   : > { %v2323_v51 = vmax.f32 %v2321_v40, %v2322_v12  ;;  %v2330_v63 = vmax.f32 %v2328_v29, %v2329_v46  ;;  %v2336_v41 = vrot.slane %v2335_v30, 2  ;;  %v2343_v22 = vrot.slane %v2342_v55, 2  ;;  %v10232_v39 = vld [vmem:[#allocation2 + $0xb0] sm:$0xff] }
 0x22b   : > { %v2304_v11 = vmax.f32 %v2302_v43, %v2303_v52  ;;  %v2311_v37 = vmax.f32 %v2309_v57, %v2310_v60  ;;  %v2317_v50 = vrot.slane %v2316_v34, 1  ;;  %v863_v44 = vadd.f32 %v10163_v3, %v9945_v62 }
 0x22c   : > { %v2324_v13 = vrot.slane %v2323_v51, 1  ;;  %v2331_v53 = vrot.slane %v2330_v63, 1  ;;  %v2337_v28 = vmax.f32 %v2335_v30, %v2336_v41  ;;  %v2344_v21 = vmax.f32 %v2342_v55, %v2343_v22 }
 0x22d   : > { %v2318_v6 = vmax.f32 %v2316_v34, %v2317_v50  ;;  %v10203_v54 = vsel %vm2515_vm2, %v2297_v48, -inf  ;;  %v10206_v32 = vsel %vm2515_vm2, %v2304_v11, -inf  ;;  %v1388_v36 = vcombine.high %v10184_v61, %v10184_v61 }
 0x22e   : > { %v2325_v5 = vmax.f32 %v2323_v51, %v2324_v13  ;;  %v2332_v38 = vmax.f32 %v2330_v63, %v2331_v53  ;;  %v2338_v45 = vrot.slane %v2337_v28, 1  ;;  %v2345_v59 = vrot.slane %v2344_v21, 1 }
 0x22f   : > { %v10211_v62 = vsel %vm2515_vm2, %v2311_v37, -inf  ;;  %v1395_v8 = vrot.slane %v10184_v61, %v9595_v56  ;;  %v1402_v49 = vrot.slane %v1388_v36, %v9595_v56  ;;  %v909_v10 = vmax.f32 %v863_v44, 0.0 }
 0x230   : > { %v10217_v9 = vsel %vm2515_vm2, %v2318_v6, -inf  ;;  %v2339_v19 = vmax.f32 %v2337_v28, %v2338_v45  ;;  %v10219_v0 = vmax.f32 %v2344_v21, %v2345_v59  ;;  %v10222_v17 = vsel %vm2515_vm2, %v2325_v5, -inf }
 0x231   : > { %v1403_v25 = vcombine.high %v1395_v8, %v1395_v8  ;;  %v1404_v18 = vcombine.high %v1402_v49, %v1402_v49  ;;  %v2347_v1 = vsel %vm1618_vm3, %v1395_v8, -inf  ;;  %v2361_v26 = vsel %vm1618_vm3, %v1402_v49, -inf }
 0x232   : > { %v10227_v61 = vsel %vm2515_vm2, %v2332_v38, -inf  ;;  %v10230_v23 = vsel %vm2515_vm2, %v2339_v19, -inf  ;;  %v2348_v27 = vrot.slane %v2347_v1, 4  ;;  %v2362_v58 = vrot.slane %v2361_v26, 4 }
 0x233   : > { %v2354_v33 = vsel %vm1618_vm3, %v1403_v25, -inf  ;;  %v2368_v14 = vsel %vm1618_vm3, %v1404_v18, -inf  ;;  %v1405_v42 = vcombine.high %v909_v10, %v909_v10  ;;  %v1412_v35 = vrot.slane %v909_v10, %v9595_v56 }
 0x234   : > { %v2349_v40 = vmax.f32 %v2347_v1, %v2348_v27  ;;  %v2355_v29 = vrot.slane %v2354_v33, 4  ;;  %v2363_v31 = vmax.f32 %v2361_v26, %v2362_v58  ;;  %v2369_v24 = vrot.slane %v2368_v14, 4 }
 0x235   : > { %v1419_v43 = vrot.slane %v1405_v42, %v9595_v56  ;;  %v1420_v57 = vcombine.high %v1412_v35, %v1412_v35  ;;  %v2375_v16 = vsel %vm1618_vm3, %v1412_v35, -inf  ;;  %v10243_v12 = vpack.c.bf16 %v10232_v39, %v10237_v15 }
 0x236   : > { %v2350_v46 = vrot.slane %v2349_v40, 2  ;;  %v2356_v30 = vmax.f32 %v2354_v33, %v2355_v29  ;;  %v2364_v55 = vrot.slane %v2363_v31, 2  ;;  %v2370_v48 = vmax.f32 %v2368_v14, %v2369_v24  ;;  %v2888_v29 = vld [vmem:[#allocation2 + $0x6] sm:$0xff] }
 0x237   : > { %v1421_v52 = vcombine.high %v1419_v43, %v1419_v43  ;;  %v2376_v60 = vrot.slane %v2375_v16, 4  ;;  %v2382_v34 = vsel %vm1618_vm3, %v1420_v57, -inf  ;;  %v2389_v51 = vsel %vm1618_vm3, %v1419_v43, -inf  ;;  %8363 = vmatmul.mubr.msk.bf16.gmra.mrb[4].mxu1 %vm2515_vm2, %v10243_v12 }
 0x238   : > { %v2351_v63 = vmax.f32 %v2349_v40, %v2350_v46  ;;  %v2357_v41 = vrot.slane %v2356_v30, 2  ;;  %v2365_v22 = vmax.f32 %v2363_v31, %v2364_v55  ;;  %v2371_v11 = vrot.slane %v2370_v48, 2  ;;  %v10254_v31 = vld [vmem:[#allocation2 + $0x4e] sm:$0xff]  ;;  %v10258_v46 = vld [vmem:[#allocation2 + $0x7e] sm:$0xff] }
 0x239   : > { %v2377_v37 = vmax.f32 %v2375_v16, %v2376_v60  ;;  %v2383_v50 = vrot.slane %v2382_v34, 4  ;;  %v2390_v44 = vrot.slane %v2389_v51, 4  ;;  %v2396_v13 = vsel %vm1618_vm3, %v1421_v52, -inf  ;;  %v10264_v52 = vld [vmem:[#allocation2 + $0x36] sm:$0xff] }
 0x23a   : > { %v2352_v53 = vrot.slane %v2351_v63, 1  ;;  %v2358_v28 = vmax.f32 %v2356_v30, %v2357_v41  ;;  %v2366_v21 = vrot.slane %v2365_v22, 1  ;;  %v2372_v6 = vmax.f32 %v2370_v48, %v2371_v11  ;;  %v10271_v41 = vld [vmem:[#allocation2 + $0x66] sm:$0xff] }
 0x23b   : > { %v2378_v36 = vrot.slane %v2377_v37, 2  ;;  %v2384_v5 = vmax.f32 %v2382_v34, %v2383_v50  ;;  %v2391_v38 = vmax.f32 %v2389_v51, %v2390_v44  ;;  %v2397_v45 = vrot.slane %v2396_v13, 4 }
 0x23c   : > { %v2353_v59 = vmax.f32 %v2351_v63, %v2352_v53  ;;  %v2359_v8 = vrot.slane %v2358_v28, 1  ;;  %v2367_v49 = vmax.f32 %v2365_v22, %v2366_v21  ;;  %v2373_v10 = vrot.slane %v2372_v6, 1 }
 0x23d   : > { %v2379_v19 = vmax.f32 %v2377_v37, %v2378_v36  ;;  %v2385_v25 = vrot.slane %v2384_v5, 2  ;;  %v2392_v18 = vrot.slane %v2391_v38, 2  ;;  %v2398_v1 = vmax.f32 %v2396_v13, %v2397_v45  ;;  %v9123_v37 = vld [vmem:[%s11474_s3 + $0x38] sm:$0xff]  }
 0x23e   : > { %v2360_v26 = vmax.f32 %v2358_v28, %v2359_v8  ;;  %v2374_v27 = vmax.f32 %v2372_v6, %v2373_v10  ;;  %v2661_v58 = vsel %vm2515_vm2, %v2353_v59, -inf  ;;  %v2667_v33 = vsel %vm2515_vm2, %v2367_v49, -inf  ;;  %v10304_v49 = vld [vmem:[#allocation2 + $0x96] sm:$0xff] }
 0x23f   : > { %v2662_v14 = vmax.f32 %v10203_v54, %v2661_v58  ;;  %v2668_v42 = vmax.f32 %v10211_v62, %v2667_v33  ;;  %v2380_v35 = vrot.slane %v2379_v19, 1  ;;  %v2386_v40 = vmax.f32 %v2384_v5, %v2385_v25  ;;  %v10262_v62 = vld [vmem:[#allocation2 + $0x1e] sm:$0xff]  ;;  %v10293_v5 = vld [vmem:[#allocation2 + $0xae] sm:$0xff] }
 0x240   : > { %v2664_v24 = vsel %vm2515_vm2, %v2360_v26, -inf  ;;  %v2670_v43 = vsel %vm2515_vm2, %v2374_v27, -inf  ;;  %v2393_v57 = vmax.f32 %v2391_v38, %v2392_v18  ;;  %v2399_v16 = vrot.slane %v2398_v1, 2  ;;  %v10313_v25 = vld [vmem:[%s11474_s3 + $0x10] sm:$0xff]   ;;  %v10323_v58 = vld [vmem:[#allocation2 + $0x21] sm:$0xff] }
 0x241   : > { %v2665_v30 = vmax.f32 %v10206_v32, %v2664_v24  ;;  %v2671_v55 = vmax.f32 %v10217_v9, %v2670_v43  ;;  %v2381_v54 = vmax.f32 %v2379_v19, %v2380_v35  ;;  %v2387_v48 = vrot.slane %v2386_v40, 1  ;;  %v3116_v19 = vld [vmem:[#allocation2 + $0x9] sm:$0xff]  ;;  %v10325_v33 = vld [vmem:[#allocation2 + $0x51] sm:$0xff] }
 0x242   : > { %v2394_v60 = vrot.slane %v2393_v57, 1  ;;  %v2400_v34 = vmax.f32 %v2398_v1, %v2399_v16  ;;  %v2896_v51 = vpack.c.bf16 %v10262_v62, %v2888_v29  ;;  %v10269_v63 = vpack.c.bf16 %v10254_v31, %v10264_v52  ;;  %v10336_v16 = vld [vmem:[#allocation2 + $0x39] sm:$0xff] }
 0x243   : > { %v2857_v32 = vsel %vm2808_vm4, %v2665_v30, %v2662_v14  ;;  %v2388_v22 = vmax.f32 %v2386_v40, %v2387_v48  ;;  %v2673_v9 = vsel %vm2515_vm2, %v2381_v54, -inf  ;;  %v10277_v11 = vpack.c.bf16 %v10258_v46, %v10271_v41 }
 0x244   : > { %v2858_v50 = vsel %vm2810_vm5, %v2668_v42, %v2857_v32  ;;  %v2395_v44 = vmax.f32 %v2393_v57, %v2394_v60  ;;  %v2401_v13 = vrot.slane %v2400_v34, 1  ;;  %v2674_v53 = vmax.f32 %v10222_v17, %v2673_v9  ;;  %8370 = vmatprep.mubr.msk.bf16.mxu1 %vm2515_vm2, %v2896_v51 }
 0x245   : > { %v2681_v28 = vsel %vm2515_vm2, %v10219_v0, -inf  ;;  %v2676_v21 = vsel %vm2515_vm2, %v2388_v22, -inf  ;;  %v2859_v6 = vsel %vm2812_vm6, %v2671_v55, %v2858_v50  ;;  %8371 = vmatmul.mubr.msk.bf16.vlgmr.msra.gmra.mrb[0].mxu1 %vm2515_vm2, %v10269_v63  ;;  %v868_v36 = vadd.f32 %v10163_v3, %v10015_v7  ;;  %v9244_v0 = vld [vmem:[%s11474_s3 + $0x30] sm:$0xff]  }
 0x246   : > { %v2402_v38 = vmax.f32 %v2400_v34, %v2401_v13  ;;  %v2677_v17 = vmax.f32 %v10227_v61, %v2676_v21  ;;  %v2679_v45 = vsel %vm2515_vm2, %v2395_v44, -inf  ;;  %v2860_v59 = vsel %vm2814_vm7, %v2674_v53, %v2859_v6  ;;  %8379 = vmatpush3.bf16.msra.mxu1 %v9244_v0  ;;  %8374 = vmatprep.mubr.msk.bf16.mxu1 %vm2515_vm2, %v10277_v11 }
 0x247   : > { %v2680_v8 = vmax.f32 %v10230_v23, %v2679_v45  ;;  %v910_v7 = vmax.f32 %v868_v36, 0.0  ;;  %8380 = vmatprep.subr.bf16.mxu1 %v9123_v37  ;;  %v871_v61 = vadd.f32 %v10163_v3, %v10052_v2  ;;  %v876_v10 = vadd.f32 %v10163_v3, %v10064_v4 }
 0x248   : > { %v2682_v18 = vsel %vm2515_vm2, %v2402_v38, -inf  ;;  %v2861_v23 = vsel %vm2816_vm8, %v2677_v17, %v2860_v59  ;;  %v10319_v1 = vpack.c.bf16 %v10293_v5, %v10304_v49  ;;  %v10329_v35 = vadd.f32 %v10163_v3, %v10083_v20 }
 0x249   : > { %v2683_v26 = vmax.f32 %v2681_v28, %v2682_v18  ;;  %v2862_v2 = vsel %vm2818_vm9, %v2680_v8, %v2861_v23  ;;  %v1422_v27 = vcombine.high %v910_v7, %v910_v7  ;;  %v1429_v4 = vrot.slane %v910_v7, %v9595_v56  ;;  %v9125_v23 = vld [vmem:[%s11474_s3 + $0x18] sm:$0xff]  }
 0x24a   : > { %8381 = vmatpush3.bf16.msra.mxu1 %v9123_v37  ;;  %v911_v14 = vmax.f32 %v871_v61, 0.0  ;;  %v912_v42 = vmax.f32 %v876_v10, 0.0  ;;  %v3124_v40 = vpack.c.bf16 %v10323_v58, %v3116_v19  ;;  %v10342_v3 = vpack.c.bf16 %v10325_v33, %v10336_v16 }
 0x24b   : > { %v2863_v29 = vsel %vm2820_vm10, %v2683_v26, %v2862_v2  ;;  %v1436_v24 = vrot.slane %v1422_v27, %v9595_v56  ;;  %v1437_v43 = vcombine.high %v1429_v4, %v1429_v4  ;;  %v2403_v57 = vsel %vm1618_vm3, %v1429_v4, -inf  ;;  %8390 = vmatprep.subr.bf16.mxu1 %v10313_v25 }
 0x24c   : > { %2886 = vst.msk [vmem:[#allocation2 + $0xc8] sm:$0xff] %vm2515_vm2, %v2863_v29  ;;  %v2404_v30 = vrot.slane %v2403_v57, 4  ;;  %v1439_v55 = vcombine.high %v911_v14, %v911_v14  ;;  %v1446_v20 = vrot.slane %v911_v14, %v9595_v56  ;;  %v1456_v34 = vcombine.high %v912_v42, %v912_v42 }
 0x24d   : > { %v1438_v54 = vcombine.high %v1436_v24, %v1436_v24  ;;  %v2410_v48 = vsel %vm1618_vm3, %v1437_v43, -inf  ;;  %v2417_v60 = vsel %vm1618_vm3, %v1436_v24, -inf  ;;  %8375 = vmatmul.mubr.msk.bf16.gmra.mrb[4].mxu1 %vm2515_vm2, %v10319_v1  ;;  %v1463_v13 = vrot.slane %v912_v42, %v9595_v56 }
 0x24e   : > { %v2405_v51 = vmax.f32 %v2403_v57, %v2404_v30  ;;  %v2411_v32 = vrot.slane %v2410_v48, 4  ;;  %v2418_v22 = vrot.slane %v2417_v60, 4  ;;  %v1453_v9 = vrot.slane %v1439_v55, %v9595_v56  ;;  %8382 = vmatprep.mubr.msk.bf16.mxu1 %vm2515_vm2, %v3124_v40 }
 0x24f   : > { %v2424_v37 = vsel %vm1618_vm3, %v1438_v54, -inf  ;;  %v1454_v50 = vcombine.high %v1446_v20, %v1446_v20  ;;  %v2431_v44 = vsel %vm1618_vm3, %v1446_v20, -inf  ;;  %v1470_v30 = vrot.slane %v1456_v34, %v9595_v56 }
 0x250   : > { %v2406_v53 = vrot.slane %v2405_v51, 2  ;;  %v2412_v28 = vmax.f32 %v2410_v48, %v2411_v32  ;;  %v2419_v21 = vmax.f32 %v2417_v60, %v2418_v22  ;;  %v2425_v6 = vrot.slane %v2424_v37, 4  ;;  %v10366_v60 = vld [vmem:[%s11474_s3 + $0x40] sm:$0xff]  }
 0x251   : > { %v1455_v36 = vcombine.high %v1453_v9, %v1453_v9  ;;  %v2432_v38 = vrot.slane %v2431_v44, 4  ;;  %v2438_v17 = vsel %vm1618_vm3, %v1454_v50, -inf  ;;  %v2445_v45 = vsel %vm1618_vm3, %v1453_v9, -inf }
 0x252   : > { %v2407_v59 = vmax.f32 %v2405_v51, %v2406_v53  ;;  %v2413_v0 = vrot.slane %v2412_v28, 2  ;;  %v2420_v8 = vrot.slane %v2419_v21, 2  ;;  %v2426_v7 = vmax.f32 %v2424_v37, %v2425_v6 }
 0x253   : > { %v2433_v61 = vmax.f32 %v2431_v44, %v2432_v38  ;;  %v2439_v10 = vrot.slane %v2438_v17, 4  ;;  %v2446_v19 = vrot.slane %v2445_v45, 4  ;;  %v2452_v18 = vsel %vm1618_vm3, %v1455_v36, -inf }
 0x254   : > { %v2408_v26 = vrot.slane %v2407_v59, 1  ;;  %v2414_v2 = vmax.f32 %v2412_v28, %v2413_v0  ;;  %v2421_v27 = vmax.f32 %v2419_v21, %v2420_v8  ;;  %v2427_v4 = vrot.slane %v2426_v7, 2 }
 0x255   : > { %v2434_v14 = vrot.slane %v2433_v61, 2  ;;  %v2440_v42 = vmax.f32 %v2438_v17, %v2439_v10  ;;  %v2447_v40 = vmax.f32 %v2445_v45, %v2446_v19  ;;  %v2453_v29 = vrot.slane %v2452_v18, 4  ;;  %8383 = vmatmul.mubr.msk.bf16.vlgmr.msra.gmra.mrb[0].mxu1 %vm2515_vm2, %v10342_v3 }
 0x256   : > { %v2415_v24 = vrot.slane %v2414_v2, 1  ;;  %v2422_v43 = vrot.slane %v2421_v27, 1  ;;  %v2428_v57 = vmax.f32 %v2426_v7, %v2427_v4  ;;  %8391 = vmatpush3.bf16.msra.mxu1 %v10313_v25  ;;  %v2409_v51 = vmax.f32 %v2407_v59, %v2408_v26 }
 0x257   : > { %v2435_v55 = vmax.f32 %v2433_v61, %v2434_v14  ;;  %v2441_v20 = vrot.slane %v2440_v42, 2  ;;  %v2448_v54 = vrot.slane %v2447_v40, 2  ;;  %v2454_v48 = vmax.f32 %v2452_v18, %v2453_v29  ;;  %8392 = vmatprep.subr.bf16.mxu1 %v9125_v23  ;;  %v10395_v29 = vld [vmem:[#allocation2 + $0x69] sm:$0xff] }
 0x258   : > { %v2416_v32 = vmax.f32 %v2414_v2, %v2415_v24  ;;  %v2423_v22 = vmax.f32 %v2421_v27, %v2422_v43  ;;  %v2429_v9 = vrot.slane %v2428_v57, 1  ;;  %v1471_v25 = vcombine.high %v1463_v13, %v1463_v13  ;;  %v10397_v24 = vld [vmem:[#allocation2 + $0xb1] sm:$0xff] }
 0x259   : > { %v2436_v37 = vrot.slane %v2435_v55, 1  ;;  %v2442_v50 = vmax.f32 %v2440_v42, %v2441_v20  ;;  %v2449_v44 = vmax.f32 %v2447_v40, %v2448_v54  ;;  %v2455_v34 = vrot.slane %v2454_v48, 2 }
 0x25a   : > { %v2430_v53 = vmax.f32 %v2428_v57, %v2429_v9  ;;  %8393 = vmatpush3.bf16.msra.mxu1 %v9125_v23  ;;  %v913_v36 = vmax.f32 %v10329_v35, 0.0  ;;  %v10373_v38 = vsel %vm2515_vm2, %v2409_v51, -inf  ;;  %v1472_v17 = vcombine.high %v1470_v30, %v1470_v30  ;;  %v10388_v23 = vld [vmem:[#allocation2 + $0x81] sm:$0xff] }
 0x25b   : > { %v2443_v28 = vrot.slane %v2442_v50, 1  ;;  %v2450_v21 = vrot.slane %v2449_v44, 1  ;;  %v10368_v6 = vmax.f32 %v2454_v48, %v2455_v34  ;;  %8402 = vmatprep.subr.bf16.mxu1 %v10366_v60  ;;  %v2459_v45 = vsel %vm1618_vm3, %v1463_v13, -inf }
 0x25c   : > { %v2466_v59 = vsel %vm1618_vm3, %v1471_v25, -inf  ;;  %v10378_v0 = vsel %vm2515_vm2, %v2416_v32, -inf  ;;  %v10381_v8 = vsel %vm2515_vm2, %v2423_v22, -inf  ;;  %v10384_v7 = vsel %vm2515_vm2, %v2430_v53, -inf  ;;  %v10408_v32 = vld [vmem:[#allocation2 + $0x99] sm:$0xff] }
 0x25d   : > { %v2437_v35 = vmax.f32 %v2435_v55, %v2436_v37  ;;  %v2460_v61 = vrot.slane %v2459_v45, 4  ;;  %v2467_v10 = vrot.slane %v2466_v59, 4  ;;  %v2473_v19 = vsel %vm1618_vm3, %v1470_v30, -inf }
 0x25e   : > { %v2480_v18 = vsel %vm1618_vm3, %v1472_v17, -inf  ;;  %v10390_v13 = vmax.f32 %v2442_v50, %v2443_v28  ;;  %v10392_v26 = vmax.f32 %v2449_v44, %v2450_v21  ;;  %v2457_v2 = vrot.slane %v10368_v6, 1 }
 0x25f   : > { %v2474_v27 = vrot.slane %v2473_v19, 4  ;;  %v2461_v4 = vmax.f32 %v2459_v45, %v2460_v61  ;;  %v2468_v14 = vmax.f32 %v2466_v59, %v2467_v10  ;;  %v2481_v42 = vrot.slane %v2480_v18, 4 }
 0x260   : > { %v1473_v40 = vcombine.high %v913_v36, %v913_v36  ;;  %v10400_v43 = vsel %vm2515_vm2, %v2437_v35, -inf  ;;  %v1480_v30 = vrot.slane %v913_v36, %v9595_v56  ;;  %v10405_v55 = vpack.c.bf16 %v10388_v23, %v10395_v29 }
 0x261   : > { %v2475_v57 = vmax.f32 %v2473_v19, %v2474_v27  ;;  %v2462_v20 = vrot.slane %v2461_v4, 2  ;;  %v2469_v54 = vrot.slane %v2468_v14, 2  ;;  %v2482_v48 = vmax.f32 %v2480_v18, %v2481_v42 }
 0x262   : > { %v1487_v51 = vrot.slane %v1473_v40, %v9595_v56  ;;  %v1488_v9 = vcombine.high %v1480_v30, %v1480_v30  ;;  %v2487_v37 = vsel %vm1618_vm3, %v1480_v30, -inf  ;;  %8386 = vmatprep.mubr.msk.bf16.mxu1 %vm2515_vm2, %v10405_v55  ;;  %v10415_v50 = vpack.c.bf16 %v10397_v24, %v10408_v32 }
 0x263   : > { %v2476_v22 = vrot.slane %v2475_v57, 2  ;;  %v2463_v44 = vmax.f32 %v2461_v4, %v2462_v20  ;;  %v2470_v34 = vmax.f32 %v2468_v14, %v2469_v54  ;;  %v2483_v53 = vrot.slane %v2482_v48, 2 }
 0x264   : > { %v1489_v25 = vcombine.high %v1487_v51, %v1487_v51  ;;  %v2488_v21 = vrot.slane %v2487_v37, 4  ;;  %v2494_v36 = vsel %vm1618_vm3, %v1488_v9, -inf  ;;  %v2501_v17 = vsel %vm1618_vm3, %v1487_v51, -inf  ;;  %8387 = vmatmul.mubr.msk.bf16.gmra.mrb[4].mxu1 %vm2515_vm2, %v10415_v50 }
 0x265   : > { %v2477_v28 = vmax.f32 %v2475_v57, %v2476_v22  ;;  %v2464_v45 = vrot.slane %v2463_v44, 1  ;;  %v2471_v59 = vrot.slane %v2470_v34, 1  ;;  %v2484_v35 = vmax.f32 %v2482_v48, %v2483_v53 }
 0x266   : > { %v2495_v61 = vrot.slane %v2494_v36, 4  ;;  %v2489_v19 = vmax.f32 %v2487_v37, %v2488_v21  ;;  %v2502_v18 = vrot.slane %v2501_v17, 4  ;;  %v2508_v27 = vsel %vm1618_vm3, %v1489_v25, -inf }
 0x267   : > { %v2478_v10 = vrot.slane %v2477_v28, 1  ;;  %v2465_v4 = vmax.f32 %v2463_v44, %v2464_v45  ;;  %v2472_v14 = vmax.f32 %v2470_v34, %v2471_v59  ;;  %v2485_v42 = vrot.slane %v2484_v35, 1  ;;  %v2904_v34 = vld [vmem:[#allocation2 + $0x7] sm:$0xff]  ;;  %v10429_v45 = vld [vmem:[#allocation2 + $0x4f] sm:$0xff] }
 0x268   : > { %v2496_v40 = vmax.f32 %v2494_v36, %v2495_v61  ;;  %v2490_v30 = vrot.slane %v2489_v19, 2  ;;  %v2503_v20 = vmax.f32 %v2501_v17, %v2502_v18  ;;  %v2509_v54 = vrot.slane %v2508_v27, 4 }
 0x269   : > { %v2479_v57 = vmax.f32 %v2477_v28, %v2478_v10  ;;  %v2486_v51 = vmax.f32 %v2484_v35, %v2485_v42  ;;  %v2685_v22 = vsel %vm2515_vm2, %v2465_v4, -inf  ;;  %v2688_v9 = vsel %vm2515_vm2, %v2472_v14, -inf  ;;  %v10433_v10 = vld [vmem:[#allocation2 + $0x1f] sm:$0xff]  ;;  %v10439_v14 = vld [vmem:[#allocation2 + $0x37] sm:$0xff] }
 0x26a   : > { %v2497_v48 = vrot.slane %v2496_v40, 2  ;;  %v2686_v53 = vmax.f32 %v10373_v38, %v2685_v22  ;;  %v2689_v37 = vmax.f32 %v10378_v0, %v2688_v9  ;;  %v2491_v44 = vmax.f32 %v2489_v19, %v2490_v30  ;;  %v10435_v0 = vld [vmem:[#allocation2 + $0x7f] sm:$0xff]  ;;  %v9127_v30 = vld [vmem:[%s11474_s3 + $0x48] sm:$0xff]  }
 0x26b   : > { %v2691_v25 = vsel %vm2515_vm2, %v2479_v57, -inf  ;;  %v2694_v28 = vsel %vm2515_vm2, %v2486_v51, -inf  ;;  %v2504_v17 = vrot.slane %v2503_v20, 2  ;;  %v2510_v38 = vmax.f32 %v2508_v27, %v2509_v54  ;;  %v10446_v27 = vld [vmem:[#allocation2 + $0x67] sm:$0xff] }
 0x26c   : > { %v2692_v21 = vmax.f32 %v10381_v8, %v2691_v25  ;;  %v2498_v36 = vmax.f32 %v2496_v40, %v2497_v48  ;;  %v2695_v59 = vmax.f32 %v10384_v7, %v2694_v28  ;;  %v2864_v35 = vsel %vm2808_vm4, %v2689_v37, %v2686_v53 }
 0x26d   : > { %v2492_v61 = vrot.slane %v2491_v44, 1  ;;  %v2505_v8 = vmax.f32 %v2503_v20, %v2504_v17  ;;  %v2912_v4 = vpack.c.bf16 %v10433_v10, %v2904_v34  ;;  %v2511_v40 = vrot.slane %v2510_v38, 2  ;;  %v3311_v34 = vld [vmem:[#allocation2 + $0xa] sm:$0xff] }
 0x26e   : > { %v2865_v19 = vsel %vm2810_vm5, %v2692_v21, %v2864_v35  ;;  %v2499_v18 = vrot.slane %v2498_v36, 1  ;;  %v10444_v57 = vpack.c.bf16 %v10429_v45, %v10439_v14  ;;  %v2699_v20 = vsel %vm2515_vm2, %v10390_v13, -inf  ;;  %v9128_v21 = vld [vmem:[%s11474_s3 + $0x50] sm:$0xff]  }
 0x26f   : > { %v2493_v42 = vmax.f32 %v2491_v44, %v2492_v61  ;;  %v2866_v7 = vsel %vm2812_vm6, %v2695_v59, %v2865_v19  ;;  %v2506_v51 = vrot.slane %v2505_v8, 1  ;;  %8394 = vmatprep.mubr.msk.bf16.mxu1 %vm2515_vm2, %v2912_v4  ;;  %v10456_v22 = vpack.c.bf16 %v10435_v0, %v10446_v27  ;;  %v10486_v19 = vld [vmem:[#allocation2 + $0x22] sm:$0xff]  ;;  %v3317_v4 = vld [vmem:[#allocation2 + $0x9a] sm:$0xff] }
 0x270   : > { %v2500_v54 = vmax.f32 %v2498_v36, %v2499_v18  ;;  %v2458_v9 = vmax.f32 %v10368_v6, %v2457_v2  ;;  %v2512_v48 = vmax.f32 %v2510_v38, %v2511_v40  ;;  %8395 = vmatmul.mubr.msk.bf16.vlgmr.msra.gmra.mrb[0].mxu1 %vm2515_vm2, %v10444_v57  ;;  %v2702_v13 = vsel %vm2515_vm2, %v10392_v26, -inf  ;;  %v10478_v36 = vld [vmem:[#allocation2 + $0xaf] sm:$0xff]  ;;  %v10491_v18 = vld [vmem:[#allocation2 + $0x3a] sm:$0xff] }
 0x271   : > { %v2697_v53 = vsel %vm2515_vm2, %v2493_v42, -inf  ;;  %v2507_v37 = vmax.f32 %v2505_v8, %v2506_v51  ;;  %8403 = vmatpush3.bf16.msra.mxu1 %v10366_v60  ;;  %8398 = vmatprep.mubr.msk.bf16.mxu1 %vm2515_vm2, %v10456_v22  ;;  %v3434_v26 = vpack.c.bf16 %v10264_v52, %v10262_v62  ;;  %v3435_v60 = vpack.c.bf16 %v10271_v41, %v10254_v31  ;;  %v10488_v62 = vld [vmem:[#allocation2 + $0x97] sm:$0xff]  ;;  %v3315_v8 = vld [vmem:[#allocation2 + $0x6a] sm:$0xff] }
 0x272   : > { %v2698_v25 = vmax.f32 %v10400_v43, %v2697_v53  ;;  %v2700_v44 = vsel %vm2515_vm2, %v2500_v54, -inf  ;;  %v2513_v6 = vrot.slane %v2512_v48, 1  ;;  %8404 = vmatprep.subr.bf16.mxu1 %v9127_v30  ;;  %v3436_v17 = vpack.c.bf16 %v10304_v49, %v10258_v46  ;;  %v10499_v40 = vld [vmem:[#allocation2 + $0x50] sm:$0xff]  ;;  %v3316_v54 = vld [vmem:[#allocation2 + $0x82] sm:$0xff] }
 0x273   : > { %v2701_v2 = vmax.f32 %v2699_v20, %v2700_v44  ;;  %v2703_v43 = vsel %vm2515_vm2, %v2507_v37, -inf  ;;  %v2705_v59 = vsel %vm2515_vm2, %v2458_v9, -inf  ;;  %v3319_v52 = vpack.c.bf16 %v10486_v19, %v3311_v34  ;;  %v3314_v20 = vld [vmem:[#allocation2 + $0x52] sm:$0xff]  ;;  %v10517_v53 = vld [vmem:[#allocation2 + $0x7e] sm:$0xff] }
 0x274   : > { %v2867_v28 = vsel %vm2814_vm7, %v2698_v25, %v2866_v7  ;;  %v2514_v35 = vmax.f32 %v2512_v48, %v2513_v6  ;;  %v2704_v61 = vmax.f32 %v2702_v13, %v2703_v43  ;;  %v10497_v46 = vpack.c.bf16 %v10478_v36, %v10488_v62  ;;  %v10501_v7 = vld [vmem:[#allocation2 + $0x80] sm:$0xff]  ;;  %v10521_v37 = vld [vmem:[#allocation2 + $0x38] sm:$0xff]  ;;  %v3657_v25 = vld [vmem:[#allocation2 + $0x68] sm:$0xff] }
 0x275   : > { %v2868_v38 = vsel %vm2816_vm8, %v2701_v2, %v2867_v28  ;;  %8405 = vmatpush3.bf16.msra.mxu1 %v9127_v30  ;;  %v3776_v30 = vpack.c.bf16 %v10336_v16, %v10323_v58  ;;  %v10509_v51 = vpack.c.bf16 %v10395_v29, %v10325_v33  ;;  %v10513_v9 = vpack.c.bf16 %v10408_v32, %v10388_v23  ;;  %v10527_v29 = vld [vmem:[#allocation2 + $0xb0] sm:$0xff]  ;;  %v10535_v6 = vld [vmem:[#allocation2 + $0x66] sm:$0xff]  ;;  %v10537_v2 = vld [vmem:[#allocation2 + $0x98] sm:$0xff] }
 0x276   : > { %v2706_v31 = vsel %vm2515_vm2, %v2514_v35, -inf  ;;  %v2869_v41 = vsel %vm2818_vm9, %v2704_v61, %v2868_v38  ;;  %8414 = vmatprep.subr.bf16.mxu1 %v9128_v21  ;;  %v3890_v48 = vpack.c.bf16 %v10491_v18, %v10486_v19  ;;  %v10523_v44 = vpack.c.bf16 %v3315_v8, %v3314_v20  ;;  %v9130_v61 = vld [vmem:[%s11474_s3 + $0x60] sm:$0xff]   ;;  %v10558_v38 = vld [vmem:[#allocation2 + $0xb2] sm:$0xff]  ;;  %v9139_v16 = vld [vmem:[%s11474_s3 + $0xa8] sm:$0xff]  }
 0x277   : > { %v2707_v42 = vmax.f32 %v2705_v59, %v2706_v31  ;;  %v10525_v33 = vpack.c.bf16 %v3317_v4, %v3316_v54  ;;  %v4232_v23 = vpack.c.bf16 %v10499_v40, %v10521_v37  ;;  %v10533_v32 = vpack.c.bf16 %v10501_v7, %v3657_v25  ;;  %v9129_v59 = vld [vmem:[%s11474_s3 + $0x58] sm:$0xff]   ;;  %v9132_v31 = vld [vmem:[%s11474_s3 + $0x70] sm:$0xff]  }
 0x278   : > { %8399 = vmatmul.mubr.msk.bf16.gmra.mrb[4].mxu1 %vm2515_vm2, %v10497_v46  ;;  %v5146_v34 = vpack.c.bf16 %v10517_v53, %v10535_v6  ;;  %v5375_v43 = vpack.c.bf16 %v10527_v29, %v10537_v2  ;;  %v10544_v28 = vpack.c.bf16 %v3314_v20, %v10491_v18  ;;  %v10549_v35 = vpack.c.bf16 %v3316_v54, %v3315_v8  ;;  %v10627_v20 = vld [vmem:[#allocation2 + $0xc8] sm:$0xff]  ;;  %v9141_v18 = vld [vmem:[%s11474_s3 + $0xb8] sm:$0xff]  }
 0x279   : > { %v2870_v13 = vsel %vm2820_vm10, %v2707_v42, %v2869_v41  ;;  %8406 = vmatprep.mubr.msk.bf16.mxu1 %vm2515_vm2, %v3319_v52  ;;  %v10561_v52 = vpack.c.bf16 %v10558_v38, %v3317_v4  ;;  %v10574_v41 = vld [vmem:[#allocation2 + $0xc6] sm:$0xff]  ;;  %v3548_v8 = vpack.c.bf16 %v10439_v14, %v10433_v10  ;;  %v3664_v42 = vpack.c.bf16 %v10237_v15, %v10501_v7  ;;  %v9137_v15 = vld [vmem:[%s11474_s3 + $0x98] sm:$0xff]  }
 0x27a   : > { %2887 = vst.msk [vmem:[#allocation2 + $0xe0] sm:$0xff] %vm2515_vm2, %v2870_v13  ;;  %v10603_v10 = vld [vmem:[#allocation2 + $0xc7] sm:$0xff]  ;;  %v3665_v54 = vpack.c.bf16 %v10627_v20, %v10232_v39 }
 0x27b   : > { %v3654_v14 = vld [vmem:[#allocation2 + $0x20] sm:$0xff]  ;;  %v9135_v4 = vld [vmem:[%s11474_s3 + $0x88] sm:$0xff]  }
 0x27c   : > { %v9138_v39 = vld [vmem:[%s11474_s3 + $0xa0] sm:$0xff]   ;;  %v3775_v13 = vld [vmem:[#allocation2 + $0xc9] sm:$0xff] }
 0x27d   : > { %v10647_v58 = vpack.c.bf16 %v3775_v13, %v10397_v24  ;;  %v9140_v24 = vld [vmem:[%s11474_s3 + $0xb0] sm:$0xff]  }
 0x280   : > { %8407 = vmatmul.mubr.msk.bf16.vlgmr.msra.gmra.mrb[0].mxu1 %vm2515_vm2, %v10544_v28 }
 0x281   : > { %8415 = vmatpush3.bf16.msra.mxu1 %v9128_v21  ;;  %8410 = vmatprep.mubr.msk.bf16.mxu1 %vm2515_vm2, %v10549_v35  ;;  %v9131_v21 = vld [vmem:[%s11474_s3 + $0x68] sm:$0xff]  }
 0x282   : > { %8416 = vmatprep.subr.bf16.mxu1 %v9129_v59 }
 0x285   : > { %8417 = vmatpush3.bf16.msra.mxu1 %v9129_v59  ;;  %v10702_v59 = vld [vmem:[#allocation2 + $0xdf] sm:$0xff] }
 0x286   : > { %8426 = vmatprep.subr.bf16.mxu1 %v9130_v61 }
 0x288   : > { %8411 = vmatmul.mubr.msk.bf16.gmra.mrb[4].mxu1 %vm2515_vm2, %v10561_v52 }
 0x289   : > { %8418 = vmatprep.mubr.msk.bf16.mxu1 %vm2515_vm2, %v3434_v26  ;;  %v10578_v26 = vpack.c.bf16 %v10574_v41, %v10293_v5  ;;  %v10594_v5 = vpack.c.bf16 %v10488_v62, %v10435_v0  ;;  %v10607_v0 = vpack.c.bf16 %v10603_v10, %v10478_v36  ;;  %v10614_v62 = vpack.c.bf16 %v3657_v25, %v10499_v40  ;;  %v9136_v36 = vld [vmem:[%s11474_s3 + $0x90] sm:$0xff]   ;;  %v10682_v25 = vld [vmem:[#allocation2 + $0xde] sm:$0xff] }
 0x290   : > { %8419 = vmatmul.mubr.msk.bf16.vlgmr.msra.gmra.mrb[0].mxu1 %vm2515_vm2, %v3435_v60  ;;  %v10587_v60 = vpack.c.bf16 %v10446_v27, %v10429_v45  ;;  %v9134_v45 = vld [vmem:[%s11474_s3 + $0x80] sm:$0xff]   ;;  %v3662_v27 = vpack.c.bf16 %v10521_v37, %v3654_v14  ;;  %v9148_v37 = vld [vmem:[%s11474_s3 + $0xf0] sm:$0xff]  }
 0x291   : > { %8427 = vmatpush3.bf16.msra.mxu1 %v9130_v61  ;;  %8422 = vmatprep.mubr.msk.bf16.mxu1 %vm2515_vm2, %v3436_v17  ;;  %v9133_v17 = vld [vmem:[%s11474_s3 + $0x78] sm:$0xff]  }
 0x292   : > { %8428 = vmatprep.subr.bf16.mxu1 %v9131_v21  ;;  %v9145_v61 = vld [vmem:[%s11474_s3 + $0xd8] sm:$0xff]  }
 0x293   : > { %v10783_v14 = vld [vmem:[#allocation2 + $0xf6] sm:$0xff] }
 0x295   : > { %8429 = vmatpush3.bf16.msra.mxu1 %v9131_v21  ;;  %v10724_v21 = vld [vmem:[#allocation2 + $0xe0] sm:$0xff] }
 0x296   : > { %8438 = vmatprep.subr.bf16.mxu1 %v9132_v31  ;;  %v10728_v40 = vpack.c.bf16 %v10724_v21, %v10627_v20 }
 0x298   : > { %8423 = vmatmul.mubr.msk.bf16.gmra.mrb[4].mxu1 %vm2515_vm2, %v10578_v26 }
 0x299   : > { %8430 = vmatprep.mubr.msk.bf16.mxu1 %vm2515_vm2, %v3548_v8 }
 0x2a0   : > { %8431 = vmatmul.mubr.msk.bf16.vlgmr.msra.gmra.mrb[0].mxu1 %vm2515_vm2, %v10587_v60 }
 0x2a1   : > { %8439 = vmatpush3.bf16.msra.mxu1 %v9132_v31  ;;  %8434 = vmatprep.mubr.msk.bf16.mxu1 %vm2515_vm2, %v10594_v5  ;;  %v10763_v31 = vld [vmem:[#allocation2 + $0xe2] sm:$0xff] }
 0x2a2   : > { %8440 = vmatprep.subr.bf16.mxu1 %v9133_v17 }
 0x2a5   : > { %8441 = vmatpush3.bf16.msra.mxu1 %v9133_v17  ;;  %v4576_v17 = vpack.c.bf16 %v10304_v49, %v10517_v53  ;;  %v4578_v49 = vpack.c.bf16 %v10783_v14, %v10682_v25  ;;  %v9162_v53 = vld [vmem:[%s11474_s3 + $0x160] sm:$0xff]  }
 0x2a6   : > { %8450 = vmatprep.subr.bf16.mxu1 %v9134_v45 }
 0x2a8   : > { %8435 = vmatmul.mubr.msk.bf16.gmra.mrb[4].mxu1 %vm2515_vm2, %v10607_v0 }
 0x2a9   : > { %8442 = vmatprep.mubr.msk.bf16.mxu1 %vm2515_vm2, %v3662_v27  ;;  %v9154_v27 = vld [vmem:[%s11474_s3 + $0x120] sm:$0xff]  }
 0x2b0   : > { %8443 = vmatmul.mubr.msk.bf16.vlgmr.msra.gmra.mrb[0].mxu1 %vm2515_vm2, %v10614_v62 }
 0x2b1   : > { %8451 = vmatpush3.bf16.msra.mxu1 %v9134_v45  ;;  %8446 = vmatprep.mubr.msk.bf16.mxu1 %vm2515_vm2, %v3664_v42  ;;  %v9151_v45 = vld [vmem:[%s11474_s3 + $0x108] sm:$0xff]   ;;  %v4804_v42 = vpack.c.bf16 %v10537_v2, %v10501_v7  ;;  %v9156_v7 = vld [vmem:[%s11474_s3 + $0x130] sm:$0xff]   ;;  %v5482_v2 = vld [vmem:[#allocation2 + $0x99] sm:$0xff] }
 0x2b2   : > { %8452 = vmatprep.subr.bf16.mxu1 %v9135_v4 }
 0x2b5   : > { %8453 = vmatpush3.bf16.msra.mxu1 %v9135_v4  ;;  %v10800_v4 = vld [vmem:[#allocation2 + $0xf7] sm:$0xff] }
 0x2b6   : > { %8462 = vmatprep.subr.bf16.mxu1 %v9136_v36 }
 0x2b8   : > { %8447 = vmatmul.mubr.msk.bf16.gmra.mrb[4].mxu1 %vm2515_vm2, %v3665_v54  ;;  %v9170_v54 = vld [vmem:[%s11476_s5 + $0x50] sm:$0xff]  }
 0x2b9   : > { %8454 = vmatprep.mubr.msk.bf16.mxu1 %vm2515_vm2, %v3776_v30  ;;  %v3889_v30 = vld [vmem:[#allocation2 + $0xca] sm:$0xff] }
 0x2ba   : > { %v10666_v19 = vpack.c.bf16 %v3889_v30, %v10558_v38  ;;  %v9146_v38 = vld [vmem:[%s11474_s3 + $0xe0] sm:$0xff]  }
 0x2c0   : > { %8455 = vmatmul.mubr.msk.bf16.vlgmr.msra.gmra.mrb[0].mxu1 %vm2515_vm2, %v10509_v51 }
 0x2c1   : > { %8463 = vmatpush3.bf16.msra.mxu1 %v9136_v36  ;;  %8458 = vmatprep.mubr.msk.bf16.mxu1 %vm2515_vm2, %v10513_v9  ;;  %v9155_v36 = vld [vmem:[%s11474_s3 + $0x128] sm:$0xff]  }
 0x2c2   : > { %8464 = vmatprep.subr.bf16.mxu1 %v9137_v15 }
 0x2c5   : > { %8465 = vmatpush3.bf16.msra.mxu1 %v9137_v15  ;;  %v10830_v15 = vld [vmem:[#allocation2 + $0xf8] sm:$0xff] }
 0x2c6   : > { %8474 = vmatprep.subr.bf16.mxu1 %v9138_v39 }
 0x2c8   : > { %8459 = vmatmul.mubr.msk.bf16.gmra.mrb[4].mxu1 %vm2515_vm2, %v10647_v58 }
 0x2c9   : > { %8466 = vmatprep.mubr.msk.bf16.mxu1 %vm2515_vm2, %v3890_v48  ;;  %v9142_v48 = vld [vmem:[%s11474_s3 + $0xc0] sm:$0xff]  }
 0x2d0   : > { %8467 = vmatmul.mubr.msk.bf16.vlgmr.msra.gmra.mrb[0].mxu1 %vm2515_vm2, %v10523_v44 }
 0x2d1   : > { %8475 = vmatpush3.bf16.msra.mxu1 %v9138_v39  ;;  %8470 = vmatprep.mubr.msk.bf16.mxu1 %vm2515_vm2, %v10525_v33  ;;  %v9157_v39 = vld [vmem:[%s11474_s3 + $0x138] sm:$0xff]  }
 0x2d2   : > { %8476 = vmatprep.subr.bf16.mxu1 %v9139_v16 }
 0x2d5   : > { %8477 = vmatpush3.bf16.msra.mxu1 %v9139_v16  ;;  %v10848_v16 = vld [vmem:[#allocation2 + $0xf9] sm:$0xff] }
 0x2d6   : > { %8486 = vmatprep.subr.bf16.mxu1 %v9140_v24 }
 0x2d8   : > { %8471 = vmatmul.mubr.msk.bf16.gmra.mrb[4].mxu1 %vm2515_vm2, %v10666_v19 }
 0x2d9   : > { %8478 = vmatprep.mubr.msk.bf16.mxu1 %vm2515_vm2, %v10269_v63  ;;  %v10686_v63 = vpack.c.bf16 %v10682_v25, %v10574_v41  ;;  %v4567_v41 = vld [vmem:[#allocation2 + $0x4e] sm:$0xff] }
 0x2da   : > { %v4575_v8 = vpack.c.bf16 %v10535_v6, %v4567_v41  ;;  %v5259_v25 = vld [vmem:[#allocation2 + $0x10f] sm:$0xff] }
 0x2e0   : > { %8479 = vmatmul.mubr.msk.bf16.vlgmr.msra.gmra.mrb[0].mxu1 %vm2515_vm2, %v10277_v11  ;;  %v9143_v11 = vld [vmem:[%s11474_s3 + $0xc8] sm:$0xff]  }
 0x2e1   : > { %8487 = vmatpush3.bf16.msra.mxu1 %v9140_v24  ;;  %8482 = vmatprep.mubr.msk.bf16.mxu1 %vm2515_vm2, %v10319_v1  ;;  %v9144_v1 = vld [vmem:[%s11474_s3 + $0xd0] sm:$0xff]   ;;  %v10865_v24 = vld [vmem:[#allocation2 + $0xfa] sm:$0xff] }
 0x2e2   : > { %8488 = vmatprep.subr.bf16.mxu1 %v9141_v18 }
 0x2e5   : > { %8489 = vmatpush3.bf16.msra.mxu1 %v9141_v18  ;;  %v9161_v18 = vld [vmem:[%s11474_s3 + $0x158] sm:$0xff]  }
 0x2e6   : > { %8498 = vmatprep.subr.bf16.mxu1 %v9142_v48 }
 0x2e8   : > { %8483 = vmatmul.mubr.msk.bf16.gmra.mrb[4].mxu1 %vm2515_vm2, %v10686_v63 }
 0x2e9   : > { %8490 = vmatprep.mubr.msk.bf16.mxu1 %vm2515_vm2, %v10444_v57  ;;  %v10706_v57 = vpack.c.bf16 %v10702_v59, %v10603_v10  ;;  %v9152_v10 = vld [vmem:[%s11474_s3 + $0x110] sm:$0xff]  }
 0x2f0   : > { %8491 = vmatmul.mubr.msk.bf16.vlgmr.msra.gmra.mrb[0].mxu1 %vm2515_vm2, %v10456_v22 }
 0x2f1   : > { %8499 = vmatpush3.bf16.msra.mxu1 %v9142_v48  ;;  %8494 = vmatprep.mubr.msk.bf16.mxu1 %vm2515_vm2, %v10497_v46  ;;  %v5145_v48 = vld [vmem:[#allocation2 + $0x10e] sm:$0xff] }
 0x2f2   : > { %8500 = vmatprep.subr.bf16.mxu1 %v9143_v11  ;;  %v5149_v6 = vpack.c.bf16 %v5145_v48, %v10783_v14 }
 0x2f5   : > { %8501 = vmatpush3.bf16.msra.mxu1 %v9143_v11  ;;  %v5263_v11 = vpack.c.bf16 %v5259_v25, %v10800_v4 }
 0x2f6   : > { %8510 = vmatprep.subr.bf16.mxu1 %v9144_v1 }
 0x2f8   : > { %8495 = vmatmul.mubr.msk.bf16.gmra.mrb[4].mxu1 %vm2515_vm2, %v10706_v57 }
 0x2f9   : > { %8502 = vmatprep.mubr.msk.bf16.mxu1 %vm2515_vm2, %v4232_v23  ;;  %v10744_v23 = vld [vmem:[#allocation2 + $0xe1] sm:$0xff] }
 0x300   : > { %8503 = vmatmul.mubr.msk.bf16.vlgmr.msra.gmra.mrb[0].mxu1 %vm2515_vm2, %v10533_v32 }
 0x301   : > { %8511 = vmatpush3.bf16.msra.mxu1 %v9144_v1  ;;  %8506 = vmatprep.mubr.msk.bf16.mxu1 %vm2515_vm2, %v10243_v12  ;;  %v9147_v12 = vld [vmem:[%s11474_s3 + $0xe8] sm:$0xff]   ;;  %v9166_v1 = vld [vmem:[%s11474_s3 + $0x180] sm:$0xff]  }
 0x302   : > { %8512 = vmatprep.subr.bf16.mxu1 %v9145_v61 }
 0x305   : > { %8513 = vmatpush3.bf16.msra.mxu1 %v9145_v61 }
 0x306   : > { %8522 = vmatprep.subr.bf16.mxu1 %v9146_v38 }
 0x308   : > { %8507 = vmatmul.mubr.msk.bf16.gmra.mrb[4].mxu1 %vm2515_vm2, %v10728_v40 }
 0x309   : > { %8514 = vmatprep.mubr.msk.bf16.mxu1 %vm2515_vm2, %v10342_v3  ;;  %v10747_v3 = vpack.c.bf16 %v10744_v23, %v3775_v13  ;;  %v9158_v13 = vld [vmem:[%s11474_s3 + $0x140] sm:$0xff]  }
 0x310   : > { %8515 = vmatmul.mubr.msk.bf16.vlgmr.msra.gmra.mrb[0].mxu1 %vm2515_vm2, %v10405_v55  ;;  %v9149_v55 = vld [vmem:[%s11474_s3 + $0xf8] sm:$0xff]  }
 0x311   : > { %8523 = vmatpush3.bf16.msra.mxu1 %v9146_v38  ;;  %8518 = vmatprep.mubr.msk.bf16.mxu1 %vm2515_vm2, %v10415_v50  ;;  %v9150_v50 = vld [vmem:[%s11474_s3 + $0x100] sm:$0xff]   ;;  %v9167_v38 = vld [vmem:[%s11474_s3 + $0x188] sm:$0xff]  }
 0x312   : > { %8524 = vmatprep.subr.bf16.mxu1 %v9147_v12 }
 0x315   : > { %8525 = vmatpush3.bf16.msra.mxu1 %v9147_v12  ;;  %v5601_v12 = vld [vmem:[#allocation2 + $0x112] sm:$0xff] }
 0x316   : > { %8534 = vmatprep.subr.bf16.mxu1 %v9148_v37 }
 0x318   : > { %8519 = vmatmul.mubr.msk.bf16.gmra.mrb[4].mxu1 %vm2515_vm2, %v10747_v3 }
 0x319   : > { %8526 = vmatprep.mubr.msk.bf16.mxu1 %vm2515_vm2, %v10544_v28  ;;  %v10766_v28 = vpack.c.bf16 %v10763_v31, %v3889_v30  ;;  %v5140_v30 = vld [vmem:[#allocation2 + $0x96] sm:$0xff] }
 0x320   : > { %8527 = vmatmul.mubr.msk.bf16.vlgmr.msra.gmra.mrb[0].mxu1 %vm2515_vm2, %v10549_v35 }
 0x321   : > { %8535 = vmatpush3.bf16.msra.mxu1 %v9148_v37  ;;  %8530 = vmatprep.mubr.msk.bf16.mxu1 %vm2515_vm2, %v10561_v52  ;;  %v5605_v37 = vpack.c.bf16 %v5601_v12, %v10865_v24 }
 0x322   : > { %8536 = vmatprep.subr.bf16.mxu1 %v9149_v55 }
 0x325   : > { %8537 = vmatpush3.bf16.msra.mxu1 %v9149_v55 }
 0x326   : > { %8546 = vmatprep.subr.bf16.mxu1 %v9150_v50 }
 0x328   : > { %8531 = vmatmul.mubr.msk.bf16.gmra.mrb[4].mxu1 %vm2515_vm2, %v10766_v28 }
 0x329   : > { %8538 = vmatprep.mubr.msk.bf16.mxu1 %vm2515_vm2, %v4575_v8 }
 0x330   : > { %8539 = vmatmul.mubr.msk.bf16.vlgmr.msra.gmra.mrb[0].mxu1 %vm2515_vm2, %v4576_v17 }
 0x331   : > { %8547 = vmatpush3.bf16.msra.mxu1 %v9150_v50  ;;  %8542 = vmatprep.mubr.msk.bf16.mxu1 %vm2515_vm2, %v10578_v26  ;;  %v9153_v26 = vld [vmem:[%s11474_s3 + $0x118] sm:$0xff]  }
 0x332   : > { %8548 = vmatprep.subr.bf16.mxu1 %v9151_v45 }
 0x335   : > { %8549 = vmatpush3.bf16.msra.mxu1 %v9151_v45 }
 0x336   : > { %8558 = vmatprep.subr.bf16.mxu1 %v9152_v10 }
 0x338   : > { %8543 = vmatmul.mubr.msk.bf16.gmra.mrb[4].mxu1 %vm2515_vm2, %v4578_v49 }
 0x339   : > { %8550 = vmatprep.mubr.msk.bf16.mxu1 %vm2515_vm2, %v10587_v60  ;;  %v4692_v60 = vpack.c.bf16 %v10800_v4, %v10702_v59  ;;  %v5481_v59 = vld [vmem:[#allocation2 + $0x81] sm:$0xff] }
 0x340   : > { %8551 = vmatmul.mubr.msk.bf16.vlgmr.msra.gmra.mrb[0].mxu1 %vm2515_vm2, %v10594_v5  ;;  %v9168_v5 = vld [vmem:[%s11476_s5 + $0x40] sm:$0xff]  }
 0x341   : > { %8559 = vmatpush3.bf16.msra.mxu1 %v9152_v10  ;;  %8554 = vmatprep.mubr.msk.bf16.mxu1 %vm2515_vm2, %v10607_v0  ;;  %v9169_v0 = vld [vmem:[%s11476_s5 + $0x48] sm:$0xff]  }
 0x342   : > { %8560 = vmatprep.subr.bf16.mxu1 %v9153_v26  ;;  %8655 = vmatpush3.bf16.msra.mxu0 %v9168_v5 }
 0x343   : > { %8656 = vmatprep.subr.bf16.mxu0 %v9310_v47 }
 0x345   : > { %8561 = vmatpush3.bf16.msra.mxu1 %v9153_v26 }
 0x346   : > { %8570 = vmatprep.subr.bf16.mxu1 %v9154_v27  ;;  %8657 = vmatpush3.bf16.msra.mxu0 %v9169_v0 }
 0x347   : > { %8658 = vmatprep.subr.bf16.mxu0 %v9310_v47 }
 0x348   : > { %8555 = vmatmul.mubr.msk.bf16.gmra.mrb[4].mxu1 %vm2515_vm2, %v4692_v60 }
 0x349   : > { %8562 = vmatprep.mubr.msk.bf16.mxu1 %vm2515_vm2, %v10614_v62  ;;  %v4805_v62 = vpack.c.bf16 %v10627_v20, %v10527_v29  ;;  %v4806_v20 = vpack.c.bf16 %v10830_v15, %v10724_v21  ;;  %v5483_v29 = vld [vmem:[#allocation2 + $0xb1] sm:$0xff] }
 0x34a   : > { %8659 = vmatpush3.bf16.msra.mxu0 %v9170_v54  ;;  %v5487_v21 = vld [vmem:[#allocation2 + $0x111] sm:$0xff] }
 0x34b   : > { %8660 = vmatprep.subr.bf16.mxu0 %v9310_v47 }
 0x350   : > { %8563 = vmatmul.mubr.msk.bf16.vlgmr.msra.gmra.mrb[0].mxu1 %vm2515_vm2, %v4804_v42 }
 0x351   : > { %8571 = vmatpush3.bf16.msra.mxu1 %v9154_v27  ;;  %8566 = vmatprep.mubr.msk.bf16.mxu1 %vm2515_vm2, %v4805_v62 }
 0x352   : > { %8572 = vmatprep.subr.bf16.mxu1 %v9155_v36 }
 0x355   : > { %8573 = vmatpush3.bf16.msra.mxu1 %v9155_v36 }
 0x356   : > { %8582 = vmatprep.subr.bf16.mxu1 %v9156_v7 }
 0x358   : > { %8567 = vmatmul.mubr.msk.bf16.gmra.mrb[4].mxu1 %vm2515_vm2, %v4806_v20 }
 0x359   : > { %8574 = vmatprep.mubr.msk.bf16.mxu1 %vm2515_vm2, %v10509_v51  ;;  %v4920_v51 = vpack.c.bf16 %v10848_v16, %v10744_v23 }
 0x360   : > { %8575 = vmatmul.mubr.msk.bf16.vlgmr.msra.gmra.mrb[0].mxu1 %vm2515_vm2, %v10513_v9  ;;  %v9159_v9 = vld [vmem:[%s11474_s3 + $0x148] sm:$0xff]  }
 0x361   : > { %8583 = vmatpush3.bf16.msra.mxu1 %v9156_v7  ;;  %8578 = vmatprep.mubr.msk.bf16.mxu1 %vm2515_vm2, %v10647_v58  ;;  %v9160_v58 = vld [vmem:[%s11474_s3 + $0x150] sm:$0xff]  }
 0x362   : > { %8584 = vmatprep.subr.bf16.mxu1 %v9157_v39 }
 0x365   : > { %8585 = vmatpush3.bf16.msra.mxu1 %v9157_v39 }
 0x366   : > { %8594 = vmatprep.subr.bf16.mxu1 %v9158_v13 }
 0x368   : > { %8579 = vmatmul.mubr.msk.bf16.gmra.mrb[4].mxu1 %vm2515_vm2, %v4920_v51 }
 0x369   : > { %8586 = vmatprep.mubr.msk.bf16.mxu1 %vm2515_vm2, %v10523_v44  ;;  %v5034_v44 = vpack.c.bf16 %v10865_v24, %v10763_v31 }
 0x370   : > { %8587 = vmatmul.mubr.msk.bf16.vlgmr.msra.gmra.mrb[0].mxu1 %vm2515_vm2, %v10525_v33  ;;  %v5141_v33 = vld [vmem:[#allocation2 + $0xae] sm:$0xff] }
 0x371   : > { %8595 = vmatpush3.bf16.msra.mxu1 %v9158_v13  ;;  %8590 = vmatprep.mubr.msk.bf16.mxu1 %vm2515_vm2, %v10666_v19  ;;  %v5147_v19 = vpack.c.bf16 %v5141_v33, %v5140_v30 }
 0x372   : > { %8596 = vmatprep.subr.bf16.mxu1 %v9159_v9 }
 0x375   : > { %8597 = vmatpush3.bf16.msra.mxu1 %v9159_v9 }
 0x376   : > { %8606 = vmatprep.subr.bf16.mxu1 %v9160_v58 }
 0x378   : > { %8591 = vmatmul.mubr.msk.bf16.gmra.mrb[4].mxu1 %vm2515_vm2, %v5034_v44 }
 0x379   : > { %8598 = vmatprep.mubr.msk.bf16.mxu1 %vm2515_vm2, %v5146_v34  ;;  %v9163_v34 = vld [vmem:[%s11474_s3 + $0x168] sm:$0xff]  }
 0x380   : > { %8599 = vmatmul.mubr.msk.bf16.vlgmr.msra.gmra.mrb[0].mxu1 %vm2515_vm2, %v5147_v19 }
 0x381   : > { %8607 = vmatpush3.bf16.msra.mxu1 %v9160_v58  ;;  %8602 = vmatprep.mubr.msk.bf16.mxu1 %vm2515_vm2, %v10686_v63  ;;  %v9164_v63 = vld [vmem:[%s11474_s3 + $0x170] sm:$0xff]  }
 0x382   : > { %8608 = vmatprep.subr.bf16.mxu1 %v9161_v18 }
 0x385   : > { %8609 = vmatpush3.bf16.msra.mxu1 %v9161_v18 }
 0x386   : > { %8618 = vmatprep.subr.bf16.mxu1 %v9162_v53 }
 0x388   : > { %8603 = vmatmul.mubr.msk.bf16.gmra.mrb[4].mxu1 %vm2515_vm2, %v5149_v6 }
 0x389   : > { %8610 = vmatprep.mubr.msk.bf16.mxu1 %vm2515_vm2, %v10456_v22  ;;  %v9165_v22 = vld [vmem:[%s11474_s3 + $0x178] sm:$0xff]  }
 0x390   : > { %8611 = vmatmul.mubr.msk.bf16.vlgmr.msra.gmra.mrb[0].mxu1 %vm2515_vm2, %v10497_v46  ;;  %v5373_v46 = vld [vmem:[#allocation2 + $0x110] sm:$0xff] }
 0x391   : > { %8619 = vmatpush3.bf16.msra.mxu1 %v9162_v53  ;;  %8614 = vmatprep.mubr.msk.bf16.mxu1 %vm2515_vm2, %v10706_v57  ;;  %v5480_v57 = vld [vmem:[#allocation2 + $0x69] sm:$0xff] }
 0x392   : > { %8620 = vmatprep.subr.bf16.mxu1 %v9163_v34  ;;  %v5488_v61 = vpack.c.bf16 %v5481_v59, %v5480_v57 }
 0x395   : > { %8621 = vmatpush3.bf16.msra.mxu1 %v9163_v34 }
 0x396   : > { %8630 = vmatprep.subr.bf16.mxu1 %v9164_v63 }
 0x398   : > { %8615 = vmatmul.mubr.msk.bf16.gmra.mrb[4].mxu1 %vm2515_vm2, %v5263_v11 }
 0x399   : > { %8622 = vmatprep.mubr.msk.bf16.mxu1 %vm2515_vm2, %v10533_v32  ;;  %v5377_v32 = vpack.c.bf16 %v5373_v46, %v10830_v15 }
 0x3a0   : > { %8623 = vmatmul.mubr.msk.bf16.vlgmr.msra.gmra.mrb[0].mxu1 %vm2515_vm2, %v5375_v43  ;;  %v5489_v43 = vpack.c.bf16 %v5483_v29, %v5482_v2 }
 0x3a1   : > { %8631 = vmatpush3.bf16.msra.mxu1 %v9164_v63  ;;  %8626 = vmatprep.mubr.msk.bf16.mxu1 %vm2515_vm2, %v10728_v40  ;;  %v5491_v40 = vpack.c.bf16 %v5487_v21, %v10848_v16 }
 0x3a2   : > { %8632 = vmatprep.subr.bf16.mxu1 %v9165_v22 }
 0x3a5   : > { %8633 = vmatpush3.bf16.msra.mxu1 %v9165_v22 }
 0x3a6   : > { %8642 = vmatprep.subr.bf16.mxu1 %v9166_v1 }
 0x3a8   : > { %8627 = vmatmul.mubr.msk.bf16.gmra.mrb[4].mxu1 %vm2515_vm2, %v5377_v32 }
 0x3a9   : > { %8634 = vmatprep.mubr.msk.bf16.mxu1 %vm2515_vm2, %v5488_v61 }
 0x3b0   : > { %8635 = vmatmul.mubr.msk.bf16.vlgmr.msra.gmra.mrb[0].mxu1 %vm2515_vm2, %v5489_v43 }
 0x3b1   : > { %8643 = vmatpush3.bf16.msra.mxu1 %v9166_v1  ;;  %8638 = vmatprep.mubr.msk.bf16.mxu1 %vm2515_vm2, %v10747_v3 }
 0x3b2   : > { %8644 = vmatprep.subr.bf16.mxu1 %v9167_v38 }
 0x3b5   : > { %8645 = vmatpush3.bf16.msra.mxu1 %v9167_v38 }
 0x3b8   : > { %8639 = vmatmul.mubr.msk.bf16.gmra.mrb[4].mxu1 %vm2515_vm2, %v5491_v40 }
 0x3b9   : > { %8646 = vmatprep.mubr.msk.bf16.mxu1 %vm2515_vm2, %v10549_v35  ;;  %v9171_v35 = vld [vmem:[%s11476_s5 + $0x58] sm:$0xff]  }
 0x3ba   : > { %8661 = vmatpush3.bf16.msra.mxu0 %v9171_v35 }
 0x3bb   : > { %8666 = vmatprep.subr.bf16.mxu0 %v9310_v47 }
 0x3c0   : > { %8647 = vmatmul.mubr.msk.bf16.vlgmr.msra.gmra.mrb[0].mxu1 %vm2515_vm2, %v10561_v52  ;;  %v10965_v52 = vld [vmem:[%s11475_s4] ss:$0 sm:$0xff] }
 0x3c1   : > { %8650 = vmatprep.mubr.msk.bf16.mxu1 %vm2515_vm2, %v10766_v28 }
 0x3c8   : > { %8651 = vmatmul.mubr.msk.bf16.gmra.mrb[4].mxu1 %vm2515_vm2, %v5605_v37 }
 0x493   : > { %v8648_v23 = vpop.f32.mrb[0].mxu1 }
 0x494   : > { %v5725_v3 = vadd.f32 %v8648_v23, %v10965_v52  ;;  %v5669_v55 = vpop.f32.mrb[1].mxu1 }
 0x495   : > { %v5723_v50 = vadd.f32 %v10965_v52, %v5669_v55  ;;  %v8649_v31 = vpop.f32.mrb[2].mxu1 }
 0x496   : > { %v5733_v28 = vmax.f32 %v5725_v3, 0.0  ;;  %v5726_v41 = vadd.f32 %v8649_v31, %v10965_v52  ;;  %v5672_v8 = vpop.f32.mrb[3].mxu1 }
 0x497   : > { %v5731_v17 = vmax.f32 %v5723_v50, 0.0  ;;  %v5724_v45 = vadd.f32 %v10965_v52, %v5672_v8 }
 0x498   : > { %v5781_v10 = vcombine.high %v5733_v28, %v5733_v28  ;;  %v5788_v14 = vrot.slane %v5733_v28, %v9595_v56  ;;  %v10972_v49 = vmax.f32 %v5726_v41, 0.0 }
 0x499   : > { %v5747_v26 = vcombine.high %v5731_v17, %v5731_v17  ;;  %v5754_v27 = vrot.slane %v5731_v17, %v9595_v56  ;;  %v10975_v4 = vmax.f32 %v5724_v45, 0.0 }
 0x49a   : > { %v5795_v60 = vrot.slane %v5781_v10, %v9595_v56  ;;  %v5796_v5 = vcombine.high %v5788_v14, %v5788_v14  ;;  %v5972_v0 = vsel %vm5915_vm13, %v5788_v14, -inf  ;;  %v5798_v42 = vcombine.high %v10972_v49, %v10972_v49 }
 0x49b   : > { %v5973_v36 = vrot.slane %v5972_v0, 4  ;;  %v5761_v54 = vrot.slane %v5747_v26, %v9595_v56  ;;  %v5762_v62 = vcombine.high %v5754_v27, %v5754_v27  ;;  %v5916_v7 = vsel %vm5915_vm13, %v5754_v27, -inf  ;;  %v10983_v15 = vpop.f32.mrb[4].mxu1 }
 0x49c   : > { %v5797_v20 = vcombine.high %v5795_v60, %v5795_v60  ;;  %v5979_v39 = vsel %vm5915_vm13, %v5796_v5, -inf  ;;  %v5986_v13 = vsel %vm5915_vm13, %v5795_v60, -inf  ;;  %v5917_v16 = vrot.slane %v5916_v7, 4  ;;  %v10987_v51 = vpop.f32.mrb[5].mxu1 }
 0x49d   : > { %v5974_v9 = vmax.f32 %v5972_v0, %v5973_v36  ;;  %v5980_v58 = vrot.slane %v5979_v39, 4  ;;  %v5987_v24 = vrot.slane %v5986_v13, 4  ;;  %v5763_v44 = vcombine.high %v5761_v54, %v5761_v54  ;;  %v10989_v33 = vpop.f32.mrb[6].mxu1 }
 0x49e   : > { %v5993_v30 = vsel %vm5915_vm13, %v5797_v20, -inf  ;;  %v5918_v19 = vmax.f32 %v5916_v7, %v5917_v16  ;;  %v5923_v18 = vsel %vm5915_vm13, %v5762_v62, -inf  ;;  %v5930_v48 = vsel %vm5915_vm13, %v5761_v54, -inf  ;;  %v10994_v53 = vpop.f32.mrb[7].mxu1 }
 0x49f   : > { %v5975_v6 = vrot.slane %v5974_v9, 2  ;;  %v5981_v34 = vmax.f32 %v5979_v39, %v5980_v58  ;;  %v5988_v25 = vmax.f32 %v5986_v13, %v5987_v24  ;;  %v5994_v63 = vrot.slane %v5993_v30, 4 }
 0x4a0   : > { %v5919_v11 = vrot.slane %v5918_v19, 2  ;;  %v5924_v22 = vrot.slane %v5923_v18, 4  ;;  %v5931_v46 = vrot.slane %v5930_v48, 4  ;;  %v5937_v1 = vsel %vm5915_vm13, %v5763_v44, -inf }
 0x4a1   : > { %v5976_v32 = vmax.f32 %v5974_v9, %v5975_v6  ;;  %v5982_v59 = vrot.slane %v5981_v34, 2  ;;  %v5989_v57 = vrot.slane %v5988_v25, 2  ;;  %v5995_v61 = vmax.f32 %v5993_v30, %v5994_v63 }
 0x4a2   : > { %v5920_v29 = vmax.f32 %v5918_v19, %v5919_v11  ;;  %v5925_v2 = vmax.f32 %v5923_v18, %v5924_v22  ;;  %v5932_v43 = vmax.f32 %v5930_v48, %v5931_v46  ;;  %v5938_v38 = vrot.slane %v5937_v1, 4 }
 0x4a3   : > { %v5977_v21 = vrot.slane %v5976_v32, 1  ;;  %v5983_v40 = vmax.f32 %v5981_v34, %v5982_v59  ;;  %v5990_v12 = vmax.f32 %v5988_v25, %v5989_v57  ;;  %v5996_v37 = vrot.slane %v5995_v61, 2 }
 0x4a4   : > { %v5921_v35 = vrot.slane %v5920_v29, 1  ;;  %v5926_v23 = vrot.slane %v5925_v2, 2  ;;  %v5933_v3 = vrot.slane %v5932_v43, 2  ;;  %v5939_v55 = vmax.f32 %v5937_v1, %v5938_v38 }
 0x4a5   : > { %v5978_v50 = vmax.f32 %v5976_v32, %v5977_v21  ;;  %v5984_v31 = vrot.slane %v5983_v40, 1  ;;  %v5991_v28 = vrot.slane %v5990_v12, 1  ;;  %v5997_v41 = vmax.f32 %v5995_v61, %v5996_v37 }
 0x4a6   : > { %v5922_v8 = vmax.f32 %v5920_v29, %v5921_v35  ;;  %v5927_v17 = vmax.f32 %v5925_v2, %v5926_v23  ;;  %v5934_v45 = vmax.f32 %v5932_v43, %v5933_v3  ;;  %v5940_v10 = vrot.slane %v5939_v55, 2 }
 0x4a7   : > { %v5985_v14 = vmax.f32 %v5983_v40, %v5984_v31  ;;  %v5992_v26 = vmax.f32 %v5990_v12, %v5991_v28  ;;  %v5998_v27 = vrot.slane %v5997_v41, 1  ;;  %v10998_v60 = vsel %vm6140_vm11, %v5978_v50, -inf }
 0x4a8   : > { %v5928_v5 = vrot.slane %v5927_v17, 1  ;;  %v5935_v0 = vrot.slane %v5934_v45, 1  ;;  %v5941_v36 = vmax.f32 %v5939_v55, %v5940_v10  ;;  %v11001_v54 = vsel %vm6140_vm11, %v5922_v8, -inf }
 0x4a9   : > { %v5999_v62 = vmax.f32 %v5997_v41, %v5998_v27  ;;  %v11004_v7 = vsel %vm6140_vm11, %v5985_v14, -inf  ;;  %v11007_v20 = vsel %vm6140_vm11, %v5992_v26, -inf  ;;  %v5805_v39 = vrot.slane %v10972_v49, %v9595_v56 }
 0x4aa   : > { %v5929_v13 = vmax.f32 %v5927_v17, %v5928_v5  ;;  %v5936_v16 = vmax.f32 %v5934_v45, %v5935_v0  ;;  %v5942_v9 = vrot.slane %v5941_v36, 1  ;;  %v5812_v58 = vrot.slane %v5798_v42, %v9595_v56 }
 0x4ab   : > { %v11016_v24 = vsel %vm6140_vm11, %v5999_v62, -inf  ;;  %v5813_v44 = vcombine.high %v5805_v39, %v5805_v39  ;;  %v6000_v30 = vsel %vm5915_vm13, %v5805_v39, -inf  ;;  %v5764_v19 = vcombine.high %v10975_v4, %v10975_v4 }
 0x4ac   : > { %v5943_v18 = vmax.f32 %v5941_v36, %v5942_v9  ;;  %v11022_v48 = vsel %vm6140_vm11, %v5929_v13, -inf  ;;  %v11025_v6 = vsel %vm6140_vm11, %v5936_v16, -inf  ;;  %v5814_v34 = vcombine.high %v5812_v58, %v5812_v58 }
 0x4ad   : > { %v6001_v25 = vrot.slane %v6000_v30, 4  ;;  %v6007_v49 = vsel %vm5915_vm13, %v5813_v44, -inf  ;;  %v6014_v42 = vsel %vm5915_vm13, %v5812_v58, -inf  ;;  %v5771_v63 = vrot.slane %v10975_v4, %v9595_v56 }
 0x4ae   : > { %v11032_v11 = vsel %vm6140_vm11, %v5943_v18, -inf  ;;  %v6008_v22 = vrot.slane %v6007_v49, 4  ;;  %v6015_v46 = vrot.slane %v6014_v42, 4  ;;  %v6021_v1 = vsel %vm5915_vm13, %v5814_v34, -inf }
 0x4af   : > { %v6002_v32 = vmax.f32 %v6000_v30, %v6001_v25  ;;  %v6022_v59 = vrot.slane %v6021_v1, 4  ;;  %v5778_v57 = vrot.slane %v5764_v19, %v9595_v56  ;;  %v5779_v61 = vcombine.high %v5771_v63, %v5771_v63 }
 0x4b0   : > { %v6009_v29 = vmax.f32 %v6007_v49, %v6008_v22  ;;  %v6016_v2 = vmax.f32 %v6014_v42, %v6015_v46  ;;  %v5944_v43 = vsel %vm5915_vm13, %v5771_v63, -inf  ;;  %v5729_v38 = vadd.f32 %v10983_v15, %v10965_v52 }
 0x4b1   : > { %v6003_v4 = vrot.slane %v6002_v32, 2  ;;  %v6023_v21 = vmax.f32 %v6021_v1, %v6022_v59  ;;  %v5780_v40 = vcombine.high %v5778_v57, %v5778_v57  ;;  %v5945_v12 = vrot.slane %v5944_v43, 4 }
 0x4b2   : > { %v6010_v37 = vrot.slane %v6009_v29, 2  ;;  %v6017_v35 = vrot.slane %v6016_v2, 2  ;;  %v5951_v23 = vsel %vm5915_vm13, %v5779_v61, -inf  ;;  %v5958_v3 = vsel %vm5915_vm13, %v5778_v57, -inf }
 0x4b3   : > { %v6004_v55 = vmax.f32 %v6002_v32, %v6003_v4  ;;  %v6024_v50 = vrot.slane %v6023_v21, 2  ;;  %v5946_v31 = vmax.f32 %v5944_v43, %v5945_v12  ;;  %v5952_v28 = vrot.slane %v5951_v23, 4 }
 0x4b4   : > { %v6011_v41 = vmax.f32 %v6009_v29, %v6010_v37  ;;  %v6018_v8 = vmax.f32 %v6016_v2, %v6017_v35  ;;  %v5959_v17 = vrot.slane %v5958_v3, 4  ;;  %v5965_v45 = vsel %vm5915_vm13, %v5780_v40, -inf }
 0x4b5   : > { %v6005_v15 = vrot.slane %v6004_v55, 1  ;;  %v6025_v10 = vmax.f32 %v6023_v21, %v6024_v50  ;;  %v5947_v14 = vrot.slane %v5946_v31, 2  ;;  %v5953_v26 = vmax.f32 %v5951_v23, %v5952_v28 }
 0x4b6   : > { %v6012_v27 = vrot.slane %v6011_v41, 1  ;;  %v6019_v5 = vrot.slane %v6018_v8, 1  ;;  %v5960_v0 = vmax.f32 %v5958_v3, %v5959_v17  ;;  %v5966_v36 = vrot.slane %v5965_v45, 4 }
 0x4b7   : > { %v6006_v62 = vmax.f32 %v6004_v55, %v6005_v15  ;;  %v6026_v39 = vrot.slane %v6025_v10, 1  ;;  %v5948_v13 = vmax.f32 %v5946_v31, %v5947_v14  ;;  %v5954_v16 = vrot.slane %v5953_v26, 2 }
 0x4b8   : > { %v6013_v9 = vmax.f32 %v6011_v41, %v6012_v27  ;;  %v6020_v58 = vmax.f32 %v6018_v8, %v6019_v5  ;;  %v5961_v44 = vrot.slane %v5960_v0, 2  ;;  %v5967_v30 = vmax.f32 %v5965_v45, %v5966_v36 }
 0x4b9   : > { %v6027_v19 = vmax.f32 %v6025_v10, %v6026_v39  ;;  %v6154_v18 = vsel %vm6140_vm11, %v6006_v62, -inf  ;;  %v5949_v34 = vrot.slane %v5948_v13, 1  ;;  %v5955_v25 = vmax.f32 %v5953_v26, %v5954_v16 }
 0x4ba   : > { %v6155_v49 = vmax.f32 %v10998_v60, %v6154_v18  ;;  %v6157_v42 = vsel %vm6140_vm11, %v6013_v9, -inf  ;;  %v6160_v63 = vsel %vm6140_vm11, %v6020_v58, -inf  ;;  %v5962_v22 = vmax.f32 %v5960_v0, %v5961_v44 }
 0x4bb   : > { %v6158_v46 = vmax.f32 %v11004_v7, %v6157_v42  ;;  %v6161_v1 = vmax.f32 %v11007_v20, %v6160_v63  ;;  %v6163_v32 = vsel %vm6140_vm11, %v6027_v19, -inf  ;;  %v5950_v59 = vmax.f32 %v5948_v13, %v5949_v34 }
 0x4bc   : > { %v6164_v57 = vmax.f32 %v11016_v24, %v6163_v32  ;;  %v5956_v61 = vrot.slane %v5955_v25, 1  ;;  %v5963_v29 = vrot.slane %v5962_v22, 1  ;;  %v5968_v2 = vrot.slane %v5967_v30, 2 }
 0x4bd   : > { %v6220_v43 = vsel %vm2808_vm4, %v6158_v46, %v6155_v49  ;;  %v6142_v60 = vsel %vm6140_vm11, %v5950_v59, -inf  ;;  %v5737_v4 = vmax.f32 %v5729_v38, 0.0  ;;  %v5727_v21 = vadd.f32 %v10965_v52, %v10987_v51 }
 0x4be   : > { %v6221_v7 = vsel %vm2810_vm5, %v6161_v1, %v6220_v43  ;;  %v5957_v40 = vmax.f32 %v5955_v25, %v5956_v61  ;;  %v5964_v20 = vmax.f32 %v5962_v22, %v5963_v29  ;;  %v5969_v12 = vmax.f32 %v5967_v30, %v5968_v2 }
 0x4bf   : > { %v6222_v37 = vsel %vm2812_vm6, %v6164_v57, %v6221_v7  ;;  %v6143_v24 = vmax.f32 %v11001_v54, %v6142_v60  ;;  %v5849_v35 = vcombine.high %v5737_v4, %v5737_v4  ;;  %v5856_v23 = vrot.slane %v5737_v4, %v9595_v56 }
 0x4c0   : > { %6236 = vst.msk [vmem:[#allocation3 + $0x28] sm:$0xf] %vm6234_vm14, %v6222_v37  ;;  %v5970_v3 = vrot.slane %v5969_v12, 1  ;;  %v6145_v38 = vsel %vm6140_vm11, %v5957_v40, -inf  ;;  %v6148_v55 = vsel %vm6140_vm11, %v5964_v20, -inf  ;;  %v5735_v51 = vmax.f32 %v5727_v21, 0.0 }
 0x4c1   : > { %v6146_v50 = vmax.f32 %v11022_v48, %v6145_v38  ;;  %v6149_v31 = vmax.f32 %v11025_v6, %v6148_v55  ;;  %v5863_v28 = vrot.slane %v5849_v35, %v9595_v56  ;;  %v5864_v41 = vcombine.high %v5856_v23, %v5856_v23 }
 0x4c2   : > { %v5971_v8 = vmax.f32 %v5969_v12, %v5970_v3  ;;  %v6084_v54 = vsel %vm5915_vm13, %v5856_v23, -inf  ;;  %v5815_v17 = vcombine.high %v5735_v51, %v5735_v51  ;;  %v5822_v45 = vrot.slane %v5735_v51, %v9595_v56 }
 0x4c3   : > { %v6217_v15 = vsel %vm2808_vm4, %v6146_v50, %v6143_v24  ;;  %v5865_v10 = vcombine.high %v5863_v28, %v5863_v28  ;;  %v6085_v14 = vrot.slane %v6084_v54, 4  ;;  %v6091_v26 = vsel %vm5915_vm13, %v5864_v41, -inf }
 0x4c4   : > { %v6151_v27 = vsel %vm6140_vm11, %v5971_v8, -inf  ;;  %v6218_v48 = vsel %vm2810_vm5, %v6149_v31, %v6217_v15  ;;  %v6092_v6 = vrot.slane %v6091_v26, 4  ;;  %v6098_v5 = vsel %vm5915_vm13, %v5863_v28, -inf }
 0x4c5   : > { %v6152_v0 = vmax.f32 %v11032_v11, %v6151_v27  ;;  %v6086_v36 = vmax.f32 %v6084_v54, %v6085_v14  ;;  %v6099_v62 = vrot.slane %v6098_v5, 4  ;;  %v6105_v39 = vsel %vm5915_vm13, %v5865_v10, -inf }
 0x4c6   : > { %v6093_v13 = vmax.f32 %v6091_v26, %v6092_v6  ;;  %v6106_v16 = vrot.slane %v6105_v39, 4  ;;  %v5829_v9 = vrot.slane %v5815_v17, %v9595_v56  ;;  %v5830_v58 = vcombine.high %v5822_v45, %v5822_v45 }
 0x4c7   : > { %v6219_v44 = vsel %vm2812_vm6, %v6152_v0, %v6218_v48  ;;  %v6087_v30 = vrot.slane %v6086_v36, 2  ;;  %v6100_v19 = vmax.f32 %v6098_v5, %v6099_v62  ;;  %v6028_v18 = vsel %vm5915_vm13, %v5822_v45, -inf }
 0x4c8   : > { %6235 = vst.msk [vmem:[#allocation3 + $0x18] sm:$0xf] %vm6234_vm14, %v6219_v44  ;;  %v6094_v34 = vrot.slane %v6093_v13, 2  ;;  %v6107_v25 = vmax.f32 %v6105_v39, %v6106_v16  ;;  %v5831_v11 = vcombine.high %v5829_v9, %v5829_v9  ;;  %v6029_v49 = vrot.slane %v6028_v18, 4 }
 0x4c9   : > { %v6088_v42 = vmax.f32 %v6086_v36, %v6087_v30  ;;  %v6101_v63 = vrot.slane %v6100_v19, 2  ;;  %v6035_v22 = vsel %vm5915_vm13, %v5830_v58, -inf  ;;  %v6042_v46 = vsel %vm5915_vm13, %v5829_v9, -inf }
 0x4ca   : > { %v6095_v1 = vmax.f32 %v6093_v13, %v6094_v34  ;;  %v6108_v32 = vrot.slane %v6107_v25, 2  ;;  %v6030_v59 = vmax.f32 %v6028_v18, %v6029_v49  ;;  %v6036_v57 = vrot.slane %v6035_v22, 4 }
 0x4cb   : > { %v6089_v61 = vrot.slane %v6088_v42, 1  ;;  %v6102_v29 = vmax.f32 %v6100_v19, %v6101_v63  ;;  %v6043_v2 = vrot.slane %v6042_v46, 4  ;;  %v6049_v43 = vsel %vm5915_vm13, %v5831_v11, -inf }
 0x4cc   : > { %v6096_v60 = vrot.slane %v6095_v1, 1  ;;  %v6109_v4 = vmax.f32 %v6107_v25, %v6108_v32  ;;  %v6031_v21 = vrot.slane %v6030_v59, 2  ;;  %v6037_v7 = vmax.f32 %v6035_v22, %v6036_v57 }
 0x4cd   : > { %v6103_v40 = vrot.slane %v6102_v29, 1  ;;  %v6044_v20 = vmax.f32 %v6042_v46, %v6043_v2  ;;  %v6050_v12 = vrot.slane %v6049_v43, 4  ;;  %v6090_v38 = vmax.f32 %v6088_v42, %v6089_v61 }
 0x4ce   : > { %v6110_v37 = vrot.slane %v6109_v4, 1  ;;  %v6032_v24 = vmax.f32 %v6030_v59, %v6031_v21  ;;  %v6038_v35 = vrot.slane %v6037_v7, 2  ;;  %v6097_v55 = vmax.f32 %v6095_v1, %v6096_v60 }
 0x4cf   : > { %v6045_v23 = vrot.slane %v6044_v20, 2  ;;  %v6051_v3 = vmax.f32 %v6049_v43, %v6050_v12  ;;  %v6104_v31 = vmax.f32 %v6102_v29, %v6103_v40  ;;  %v5730_v8 = vadd.f32 %v10989_v33, %v10965_v52 }
 0x4d0   : > { %v6033_v51 = vrot.slane %v6032_v24, 1  ;;  %v6039_v50 = vmax.f32 %v6037_v7, %v6038_v35  ;;  %v6111_v54 = vmax.f32 %v6109_v4, %v6110_v37  ;;  %v5728_v15 = vadd.f32 %v10965_v52, %v10994_v53 }
 0x4d1   : > { %v6046_v28 = vmax.f32 %v6044_v20, %v6045_v23  ;;  %v6052_v41 = vrot.slane %v6051_v3, 2  ;;  %v5738_v26 = vmax.f32 %v5730_v8, 0.0  ;;  %v11085_v27 = vsel %vm6140_vm11, %v6090_v38, -inf }
 0x4d2   : > { %v6034_v17 = vmax.f32 %v6032_v24, %v6033_v51  ;;  %v6040_v45 = vrot.slane %v6039_v50, 1  ;;  %v11088_v48 = vsel %vm6140_vm11, %v6097_v55, -inf  ;;  %v5736_v5 = vmax.f32 %v5728_v15, 0.0 }
 0x4d3   : > { %v6047_v10 = vrot.slane %v6046_v28, 1  ;;  %v6053_v14 = vmax.f32 %v6051_v3, %v6052_v41  ;;  %v11091_v0 = vsel %vm6140_vm11, %v6104_v31, -inf  ;;  %v5866_v36 = vcombine.high %v5738_v26, %v5738_v26 }
 0x4d4   : > { %v6041_v6 = vmax.f32 %v6039_v50, %v6040_v45  ;;  %v5873_v62 = vrot.slane %v5738_v26, %v9595_v56  ;;  %v11095_v52 = vsel %vm6140_vm11, %v6111_v54, -inf  ;;  %v11098_v53 = vsel %vm6140_vm11, %v6034_v17, -inf }
 0x4d5   : > { %v6054_v33 = vrot.slane %v6053_v14, 1  ;;  %v5832_v39 = vcombine.high %v5736_v5, %v5736_v5  ;;  %v5839_v13 = vrot.slane %v5736_v5, %v9595_v56  ;;  %v11101_v16 = vmax.f32 %v6046_v28, %v6047_v10 }
 0x4d6   : > { %v11104_v9 = vsel %vm6140_vm11, %v6041_v6, -inf  ;;  %v5880_v58 = vrot.slane %v5866_v36, %v9595_v56  ;;  %v5881_v44 = vcombine.high %v5873_v62, %v5873_v62  ;;  %v6112_v30 = vsel %vm5915_vm13, %v5873_v62, -inf }
 0x4d7   : > { %v5846_v19 = vrot.slane %v5832_v39, %v9595_v56  ;;  %v5847_v18 = vcombine.high %v5839_v13, %v5839_v13  ;;  %v6056_v34 = vsel %vm5915_vm13, %v5839_v13, -inf  ;;  %v11110_v25 = vmax.f32 %v6053_v14, %v6054_v33 }
 0x4d8   : > { %v5882_v11 = vcombine.high %v5880_v58, %v5880_v58  ;;  %v6113_v49 = vrot.slane %v6112_v30, 4  ;;  %v6119_v42 = vsel %vm5915_vm13, %v5881_v44, -inf  ;;  %v6126_v22 = vsel %vm5915_vm13, %v5880_v58, -inf }
 0x4d9   : > { %v6120_v63 = vrot.slane %v6119_v42, 4  ;;  %v5848_v46 = vcombine.high %v5846_v19, %v5846_v19  ;;  %v6057_v1 = vrot.slane %v6056_v34, 4  ;;  %v6127_v59 = vrot.slane %v6126_v22, 4 }
 0x4da   : > { %v6114_v32 = vmax.f32 %v6112_v30, %v6113_v49  ;;  %v6133_v57 = vsel %vm5915_vm13, %v5882_v11, -inf  ;;  %v6063_v61 = vsel %vm5915_vm13, %v5847_v18, -inf  ;;  %v6070_v7 = vsel %vm5915_vm13, %v5846_v19, -inf }
 0x4db   : > { %v6121_v29 = vmax.f32 %v6119_v42, %v6120_v63  ;;  %v6134_v2 = vrot.slane %v6133_v57, 4  ;;  %v6058_v43 = vmax.f32 %v6056_v34, %v6057_v1  ;;  %v6064_v60 = vrot.slane %v6063_v61, 4 }
 0x4dc   : > { %v6115_v4 = vrot.slane %v6114_v32, 2  ;;  %v6128_v21 = vmax.f32 %v6126_v22, %v6127_v59  ;;  %v6077_v40 = vsel %vm5915_vm13, %v5848_v46, -inf  ;;  %v6071_v3 = vrot.slane %v6070_v7, 4 }
 0x4dd   : > { %v6122_v20 = vrot.slane %v6121_v29, 2  ;;  %v6135_v12 = vmax.f32 %v6133_v57, %v6134_v2  ;;  %v6059_v37 = vrot.slane %v6058_v43, 2  ;;  %v6065_v24 = vmax.f32 %v6063_v61, %v6064_v60 }
 0x4de   : > { %v6116_v35 = vmax.f32 %v6114_v32, %v6115_v4  ;;  %v6129_v23 = vrot.slane %v6128_v21, 2  ;;  %v6078_v38 = vrot.slane %v6077_v40, 4  ;;  %v6072_v8 = vmax.f32 %v6070_v7, %v6071_v3 }
 0x4df   : > { %v6123_v55 = vmax.f32 %v6121_v29, %v6122_v20  ;;  %v6136_v51 = vrot.slane %v6135_v12, 2  ;;  %v6060_v50 = vmax.f32 %v6058_v43, %v6059_v37  ;;  %v6066_v31 = vrot.slane %v6065_v24, 2 }
 0x4e0   : > { %v6117_v28 = vrot.slane %v6116_v35, 1  ;;  %v6130_v41 = vmax.f32 %v6128_v21, %v6129_v23  ;;  %v6079_v54 = vmax.f32 %v6077_v40, %v6078_v38  ;;  %v6073_v6 = vrot.slane %v6072_v8, 2  ;;  %v9177_v23 = vld [vmem:[%s11476_s5 + $0x18] sm:$0xff]  }
 0x4e1   : > { %v6124_v17 = vrot.slane %v6123_v55, 1  ;;  %v6137_v45 = vmax.f32 %v6135_v12, %v6136_v51  ;;  %v6061_v15 = vrot.slane %v6060_v50, 1  ;;  %v6067_v10 = vmax.f32 %v6065_v24, %v6066_v31  ;;  %v9174_v12 = vld [vmem:[%s11476_s5] sm:$0xff]   ;;  %v9175_v24 = vld [vmem:[%s11476_s5 + $0x8] sm:$0xff]   ;;  %v9182_v31 = vld [vmem:[%s11476_s5 + $0x70] sm:$0xff]  }
 0x4e2   : > { %v6118_v14 = vmax.f32 %v6116_v35, %v6117_v28  ;;  %v6131_v26 = vrot.slane %v6130_v41, 1  ;;  %v6080_v5 = vrot.slane %v6079_v54, 2  ;;  %v6074_v44 = vmax.f32 %v6072_v8, %v6073_v6  ;;  %v9176_v35 = vld [vmem:[%s11476_s5 + $0x10] sm:$0xff]   ;;  %v9183_v28 = vld [vmem:[%s11476_s5 + $0x78] sm:$0xff]   ;;  %v9192_v6 = vld [vmem:[%s11476_s5 + $0x80] sm:$0xff]  }
 0x4e3   : > { %v6125_v33 = vmax.f32 %v6123_v55, %v6124_v17  ;;  %v6138_v36 = vrot.slane %v6137_v45, 1  ;;  %v6062_v62 = vmax.f32 %v6060_v50, %v6061_v15  ;;  %v6068_v39 = vrot.slane %v6067_v10, 1  ;;  %v9178_v38 = vld [vmem:[#allocation3 + $0x7] ss:$16 sps:$4 sm:$0xff]  }
 0x4e4   : > { %v6132_v13 = vmax.f32 %v6130_v41, %v6131_v26  ;;  %v6178_v58 = vsel %vm6140_vm11, %v6118_v14, -inf  ;;  %v6081_v30 = vmax.f32 %v6079_v54, %v6080_v5  ;;  %v6075_v63 = vrot.slane %v6074_v44, 1  ;;  %v9180_v55 = vld [vmem:[%s11476_s5 + $0x60] sm:$0xff]   ;;  %v9181_v50 = vld [vmem:[%s11476_s5 + $0x68] sm:$0xff]   ;;  %v9188_v15 = vld [vmem:[%s11476_s5 + $0x30] sm:$0xff]  }
 0x4e5   : > { %v6139_v19 = vmax.f32 %v6137_v45, %v6138_v36  ;;  %v6179_v18 = vmax.f32 %v11085_v27, %v6178_v58  ;;  %v6181_v34 = vsel %vm6140_vm11, %v6125_v33, -inf  ;;  %v6069_v11 = vmax.f32 %v6067_v10, %v6068_v39  ;;  %v9184_v8 = vld [vmem:[#allocation3 + $0x17] ss:$16 sps:$4 sm:$0xff]  }
 0x4e6   : > { %v6182_v49 = vmax.f32 %v11088_v48, %v6181_v34  ;;  %v6184_v42 = vsel %vm6140_vm11, %v6132_v13, -inf  ;;  %v6082_v22 = vrot.slane %v6081_v30, 1  ;;  %v6166_v32 = vsel %vm6140_vm11, %v6062_v62, -inf  ;;  %v9186_v54 = vld [vmem:[%s11476_s5 + $0x20] sm:$0xff]   ;;  %v9187_v45 = vld [vmem:[%s11476_s5 + $0x28] sm:$0xff]   ;;  %v9189_v10 = vld [vmem:[%s11476_s5 + $0x38] sm:$0xff]  }
 0x4e7   : > { %v6185_v46 = vmax.f32 %v11091_v0, %v6184_v42  ;;  %v6187_v1 = vsel %vm6140_vm11, %v6139_v19, -inf  ;;  %v6169_v59 = vsel %vm6140_vm11, %v6069_v11, -inf  ;;  %v6076_v61 = vmax.f32 %v6074_v44, %v6075_v63  ;;  %v9190_v26 = vld [vmem:[#allocation3 + $0x8] ss:$16 sps:$4 sm:$0xff]   ;;  %v9194_v36 = vld [vmem:[%s11476_s5 + $0x90] sm:$0xff]   ;;  %v9198_v58 = vld [vmem:[%s11476_s5 + $0xa0] sm:$0xff]  }
 0x4e8   : > { %v6188_v57 = vmax.f32 %v11095_v52, %v6187_v1  ;;  %v6226_v27 = vsel %vm2808_vm4, %v6182_v49, %v6179_v18  ;;  %v6083_v29 = vmax.f32 %v6081_v30, %v6082_v22  ;;  %v6171_v48 = vsel %vm6140_vm11, %v11101_v16, -inf  ;;  %v9193_v33 = vld [vmem:[%s11476_s5 + $0x88] sm:$0xff]   ;;  %v9195_v62 = vld [vmem:[%s11476_s5 + $0x98] sm:$0xff]   ;;  %v9200_v19 = vld [vmem:[%s11476_s5 + $0xb0] sm:$0xff]  }
 0x4e9   : > { %v6227_v2 = vsel %vm2810_vm5, %v6185_v46, %v6226_v27  ;;  %v6167_v43 = vmax.f32 %v11098_v53, %v6166_v32  ;;  %v6170_v0 = vmax.f32 %v11104_v9, %v6169_v59  ;;  %v6174_v60 = vsel %vm6140_vm11, %v11110_v25, -inf  ;;  %v9172_v9 = vld [vmem:[#allocation3 + $0x9] ss:$16 sps:$4 sm:$0xff]   ;;  %v9204_v49 = vld [vmem:[%s11476_s5 + $0xc0] sm:$0xff]   ;;  %v9206_v22 = vld [vmem:[%s11476_s5 + $0xd0] sm:$0xff]  }
 0x4ea   : > { %v6228_v4 = vsel %vm2812_vm6, %v6188_v57, %v6227_v2  ;;  %v6172_v52 = vsel %vm6140_vm11, %v6076_v61, -inf  ;;  %v6175_v21 = vsel %vm6140_vm11, %v6083_v29, -inf  ;;  %v9196_v13 = vld [vmem:[#allocation3 + $0x18] ss:$16 sps:$4 sm:$0xff]   ;;  %v9210_v59 = vld [vmem:[%s11476_s5 + $0xe0] sm:$0xff]   ;;  %v9212_v61 = vld [vmem:[%s11476_s5 + $0xf0] sm:$0xff]  }
 0x4eb   : > { %6238 = vst.msk [vmem:[#allocation3 + $0x48] sm:$0xf] %vm6234_vm14, %v6228_v4  ;;  %v6173_v7 = vmax.f32 %v6171_v48, %v6172_v52  ;;  %v6176_v40 = vmax.f32 %v6174_v60, %v6175_v21  ;;  %v6223_v16 = vsel %vm2808_vm4, %v6170_v0, %v6167_v43  ;;  %v9199_v30 = vld [vmem:[%s11476_s5 + $0xa8] sm:$0xff]   ;;  %v9201_v18 = vld [vmem:[%s11476_s5 + $0xb8] sm:$0xff]   ;;  %v9216_v43 = vld [vmem:[%s11476_s5 + $0x100] sm:$0xff]  }
 0x4ec   : > { %v9202_v11 = vld [vmem:[#allocation3 + $0x19] ss:$16 sps:$4 sm:$0xff]   ;;  %v9218_v4 = vld [vmem:[%s11476_s5 + $0x110] sm:$0xff]  }
 0x4ed   : > { %v6224_v20 = vsel %vm2810_vm5, %v6173_v7, %v6223_v16  ;;  %v9205_v63 = vld [vmem:[%s11476_s5 + $0xc8] sm:$0xff]   ;;  %v9207_v46 = vld [vmem:[%s11476_s5 + $0xd8] sm:$0xff]  }
 0x4ee   : > { %v6225_v53 = vsel %vm2812_vm6, %v6176_v40, %v6224_v20  ;;  %v9211_v27 = vld [vmem:[%s11476_s5 + $0xe8] sm:$0xff]   ;;  %v9213_v29 = vld [vmem:[%s11476_s5 + $0xf8] sm:$0xff]  }
 0x4ef   : > { %6237 = vst.msk [vmem:[#allocation3 + $0x38] sm:$0xf] %vm6234_vm14, %v6225_v53  ;;  %v9217_v60 = vld [vmem:[%s11476_s5 + $0x108] sm:$0xff]   ;;  %v9219_v52 = vld [vmem:[%s11476_s5 + $0x118] sm:$0xff]  }
 0x4f2   : > { %v9209_v32 = vld [vmem:[#allocation3 + $0x47] ss:$16 sps:$4 sm:$0xff]  }
 0x4f3   : > { %v9215_v2 = vld [vmem:[#allocation3 + $0x48] ss:$16 sps:$4 sm:$0xff]  }
 0x4f4   : > { %v9221_v7 = vld [vmem:[#allocation3 + $0x49] ss:$16 sps:$4 sm:$0xff]  }
 0x4f6   : > { %v9173_v25 = vld [vmem:[#allocation3 + $0x29] ss:$16 sps:$4 sm:$0xff]  }
 0x4f7   : > { %v6294_v37 = vpack.c.bf16 %v9173_v25, %v9172_v9  ;;  %v9179_v3 = vld [vmem:[#allocation3 + $0x27] ss:$16 sps:$4 sm:$0xff]  }
 0x4f8   : > { %v6251_v51 = vpack.c.bf16 %v9179_v3, %v9178_v38  ;;  %v9185_v41 = vld [vmem:[#allocation3 + $0x37] ss:$16 sps:$4 sm:$0xff]  }
 0x4f9   : > { %8663 = vmatmul.mubr.msk.bf16.vlgmr.msra.gmra.mrb[64].mxu0 %vm6140_vm11, %v6294_v37  ;;  %v6452_v17 = vpack.c.bf16 %v9185_v41, %v9184_v8  ;;  %v9191_v14 = vld [vmem:[#allocation3 + $0x28] ss:$16 sps:$4 sm:$0xff]  }
 0x4fa   : > { %8667 = vmatpush3.bf16.msra.mxu0 %v9174_v12  ;;  %8674 = vmatprep.mubr.msk.bf16.mxu0 %vm9312_vm12, %v9310_v47  ;;  %v6272_v5 = vpack.c.bf16 %v9191_v14, %v9190_v26  ;;  %v9197_v39 = vld [vmem:[#allocation3 + $0x38] ss:$16 sps:$4 sm:$0xff]  }
 0x4fb   : > { %8668 = vmatprep.subr.bf16.mxu0 %v9310_v47  ;;  %v6610_v44 = vpack.c.bf16 %v9197_v39, %v9196_v13  ;;  %v9203_v34 = vld [vmem:[#allocation3 + $0x39] ss:$16 sps:$4 sm:$0xff]  }
 0x4fc   : > { %v6702_v42 = vpack.c.bf16 %v9203_v34, %v9202_v11  ;;  %v9208_v1 = vld [vmem:[#allocation3 + $0x27] ss:$16 sps:$4 sm:$0xff]  }
 0x4fd   : > { %v6795_v57 = vpack.c.bf16 %v9209_v32, %v9208_v1  ;;  %v9214_v48 = vld [vmem:[#allocation3 + $0x28] ss:$16 sps:$4 sm:$0xff]  }
 0x4fe   : > { %8669 = vmatpush3.bf16.msra.mxu0 %v9175_v24  ;;  %v6887_v0 = vpack.c.bf16 %v9215_v2, %v9214_v48  ;;  %v9220_v21 = vld [vmem:[#allocation3 + $0x29] ss:$16 sps:$4 sm:$0xff]  }
 0x4ff   : > { %8670 = vmatprep.subr.bf16.mxu0 %v9310_v47  ;;  %v6979_v40 = vpack.c.bf16 %v9221_v7, %v9220_v21  ;;  %v9225_v41 = vld [vmem:[%s11478_s7 + $0x38] sm:$0xff]  }
 0x502   : > { %8671 = vmatpush3.bf16.msra.mxu0 %v9176_v35 }
 0x503   : > { %8672 = vmatprep.subr.bf16.mxu0 %v9310_v47 }
 0x506   : > { %8673 = vmatpush3.bf16.msra.mxu0 %v9177_v23 }
 0x507   : > { %8678 = vmatprep.subr.bf16.mxu0 %v9310_v47 }
 0x509   : > { %8675 = vmatmul.mubr.msk.bf16.vlgmr.msra.gmra.mrb[68].mxu0 %vm6140_vm11, %v6251_v51 }
 0x50a   : > { %8679 = vmatpush3.bf16.msra.mxu0 %v9180_v55  ;;  %8686 = vmatprep.mubr.msk.bf16.mxu0 %vm9312_vm12, %v9310_v47 }
 0x50b   : > { %8680 = vmatprep.subr.bf16.mxu0 %v9310_v47 }
 0x50e   : > { %8681 = vmatpush3.bf16.msra.mxu0 %v9181_v50  ;;  %v9222_v50 = vld [vmem:[%s11478_s7 + $0x20] sm:$0xff]  }
 0x50f   : > { %8682 = vmatprep.subr.bf16.mxu0 %v9310_v47 }
 0x512   : > { %8683 = vmatpush3.bf16.msra.mxu0 %v9182_v31  ;;  %v9223_v31 = vld [vmem:[%s11478_s7 + $0x28] sm:$0xff]  }
 0x513   : > { %8684 = vmatprep.subr.bf16.mxu0 %v9310_v47 }
 0x516   : > { %8685 = vmatpush3.bf16.msra.mxu0 %v9183_v28  ;;  %v9224_v28 = vld [vmem:[%s11478_s7 + $0x30] sm:$0xff]  }
 0x517   : > { %8690 = vmatprep.subr.bf16.mxu0 %v9310_v47 }
 0x519   : > { %8687 = vmatmul.mubr.msk.bf16.vlgmr.msra.gmra.mrb[72].mxu0 %vm6140_vm11, %v6452_v17 }
 0x51a   : > { %8691 = vmatpush3.bf16.msra.mxu0 %v9186_v54  ;;  %8698 = vmatprep.mubr.msk.bf16.mxu0 %vm9312_vm12, %v9310_v47 }
 0x51b   : > { %8692 = vmatprep.subr.bf16.mxu0 %v9310_v47 }
 0x51e   : > { %8693 = vmatpush3.bf16.msra.mxu0 %v9187_v45 }
 0x51f   : > { %8694 = vmatprep.subr.bf16.mxu0 %v9310_v47 }
 0x522   : > { %8695 = vmatpush3.bf16.msra.mxu0 %v9188_v15 }
 0x523   : > { %8696 = vmatprep.subr.bf16.mxu0 %v9310_v47 }
 0x526   : > { %8697 = vmatpush3.bf16.msra.mxu0 %v9189_v10 }
 0x527   : > { %8702 = vmatprep.subr.bf16.mxu0 %v9310_v47 }
 0x529   : > { %8699 = vmatmul.mubr.msk.bf16.vlgmr.msra.gmra.mrb[76].mxu0 %vm6140_vm11, %v6272_v5 }
 0x52a   : > { %8703 = vmatpush3.bf16.msra.mxu0 %v9192_v6  ;;  %8710 = vmatprep.mubr.msk.bf16.mxu0 %vm9312_vm12, %v9310_v47 }
 0x52b   : > { %8704 = vmatprep.subr.bf16.mxu0 %v9310_v47 }
 0x52e   : > { %8705 = vmatpush3.bf16.msra.mxu0 %v9193_v33 }
 0x52f   : > { %8706 = vmatprep.subr.bf16.mxu0 %v9310_v47 }
 0x532   : > { %8707 = vmatpush3.bf16.msra.mxu0 %v9194_v36 }
 0x533   : > { %8708 = vmatprep.subr.bf16.mxu0 %v9310_v47 }
 0x536   : > { %8709 = vmatpush3.bf16.msra.mxu0 %v9195_v62 }
 0x537   : > { %8714 = vmatprep.subr.bf16.mxu0 %v9310_v47 }
 0x539   : > { %8711 = vmatmul.mubr.msk.bf16.vlgmr.msra.gmra.mrb[80].mxu0 %vm6140_vm11, %v6610_v44 }
 0x53a   : > { %8715 = vmatpush3.bf16.msra.mxu0 %v9198_v58  ;;  %8722 = vmatprep.mubr.msk.bf16.mxu0 %vm9312_vm12, %v9310_v47 }
 0x53b   : > { %8716 = vmatprep.subr.bf16.mxu0 %v9310_v47 }
 0x53e   : > { %8717 = vmatpush3.bf16.msra.mxu0 %v9199_v30 }
 0x53f   : > { %8718 = vmatprep.subr.bf16.mxu0 %v9310_v47 }
 0x542   : > { %8719 = vmatpush3.bf16.msra.mxu0 %v9200_v19 }
 0x543   : > { %8720 = vmatprep.subr.bf16.mxu0 %v9310_v47 }
 0x546   : > { %8721 = vmatpush3.bf16.msra.mxu0 %v9201_v18 }
 0x547   : > { %8726 = vmatprep.subr.bf16.mxu0 %v9310_v47 }
 0x549   : > { %8723 = vmatmul.mubr.msk.bf16.vlgmr.msra.gmra.mrb[84].mxu0 %vm6140_vm11, %v6702_v42 }
 0x54a   : > { %8727 = vmatpush3.bf16.msra.mxu0 %v9204_v49  ;;  %8734 = vmatprep.mubr.msk.bf16.mxu0 %vm9312_vm12, %v9310_v47 }
 0x54b   : > { %8728 = vmatprep.subr.bf16.mxu0 %v9310_v47 }
 0x54e   : > { %8729 = vmatpush3.bf16.msra.mxu0 %v9205_v63 }
 0x54f   : > { %8730 = vmatprep.subr.bf16.mxu0 %v9310_v47 }
 0x552   : > { %8731 = vmatpush3.bf16.msra.mxu0 %v9206_v22 }
 0x553   : > { %8732 = vmatprep.subr.bf16.mxu0 %v9310_v47 }
 0x556   : > { %8733 = vmatpush3.bf16.msra.mxu0 %v9207_v46 }
 0x557   : > { %8738 = vmatprep.subr.bf16.mxu0 %v9310_v47 }
 0x559   : > { %8735 = vmatmul.mubr.msk.bf16.vlgmr.msra.gmra.mrb[88].mxu0 %vm6140_vm11, %v6795_v57 }
 0x55a   : > { %8739 = vmatpush3.bf16.msra.mxu0 %v9210_v59  ;;  %8746 = vmatprep.mubr.msk.bf16.mxu0 %vm9312_vm12, %v9310_v47 }
 0x55b   : > { %8740 = vmatprep.subr.bf16.mxu0 %v9310_v47 }
 0x55e   : > { %8741 = vmatpush3.bf16.msra.mxu0 %v9211_v27 }
 0x55f   : > { %8742 = vmatprep.subr.bf16.mxu0 %v9310_v47 }
 0x562   : > { %8743 = vmatpush3.bf16.msra.mxu0 %v9212_v61 }
 0x563   : > { %8744 = vmatprep.subr.bf16.mxu0 %v9310_v47 }
 0x566   : > { %8745 = vmatpush3.bf16.msra.mxu0 %v9213_v29  ;;  %v8080_v29 = vld [vmem:[%s11477_s6] ss:$0 sm:$0xff] }
 0x567   : > { %8750 = vmatprep.subr.bf16.mxu0 %v9310_v47 }
 0x569   : > { %8747 = vmatmul.mubr.msk.bf16.vlgmr.msra.gmra.mrb[92].mxu0 %vm6140_vm11, %v6887_v0 }
 0x56a   : > { %8751 = vmatpush3.bf16.msra.mxu0 %v9216_v43  ;;  %8758 = vmatprep.mubr.msk.bf16.mxu0 %vm9312_vm12, %v9310_v47 }
 0x56b   : > { %8752 = vmatprep.subr.bf16.mxu0 %v9310_v47 }
 0x56e   : > { %8753 = vmatpush3.bf16.msra.mxu0 %v9217_v60 }
 0x56f   : > { %8754 = vmatprep.subr.bf16.mxu0 %v9310_v47 }
 0x572   : > { %8755 = vmatpush3.bf16.msra.mxu0 %v9218_v4 }
 0x573   : > { %8756 = vmatprep.subr.bf16.mxu0 %v9310_v47 }
 0x576   : > { %8757 = vmatpush3.bf16.msra.mxu0 %v9219_v52 }
 0x577   : > { %8762 = vmatprep.subr.bf16.mxu0 %v9310_v47 }
 0x579   : > { %8759 = vmatmul.mubr.msk.bf16.vlgmr.msra.gmra.mrb[96].mxu0 %vm6140_vm11, %v6979_v40 }
 0x57a   : > { %8770 = vmatprep.mubr.msk.bf16.mxu0 %vm9312_vm12, %v9310_v47  ;;  %8763 = vmatpush3.bf16.msra.mxu0 %v9222_v50 }
 0x57b   : > { %8764 = vmatprep.subr.bf16.mxu0 %v9310_v47 }
 0x57e   : > { %8765 = vmatpush3.bf16.msra.mxu0 %v9223_v31 }
 0x57f   : > { %8766 = vmatprep.subr.bf16.mxu0 %v9310_v47 }
 0x582   : > { %8767 = vmatpush3.bf16.msra.mxu0 %v9224_v28 }
 0x583   : > { %8768 = vmatprep.subr.bf16.mxu0 %v9310_v47 }
 0x586   : > { %8769 = vmatpush3.bf16.msra.mxu0 %v9225_v41 }
 0x587   : > { %8774 = vmatprep.subr.bf16.mxu0 %v9310_v47 }
 0x5cc   : > { %v6365_v16 = vpop.f32.mrb[64].mxu0 }
 0x5cd   : > { %v8664_v20 = vpop.f32.mrb[65].mxu0 }
 0x5ce   : > { %v6368_v53 = vpop.f32.mrb[66].mxu0 }
 0x5cf   : > { %v8665_v9 = vpop.f32.mrb[67].mxu0 }
 0x5dc   : > { %v6433_v25 = vpop.f32.mrb[68].mxu0 }
 0x5dd   : > { %v6434_v12 = vadd.f32 %v6433_v25, %v6365_v16  ;;  %v8676_v37 = vpop.f32.mrb[69].mxu0 }
 0x5de   : > { %v6436_v24 = vpop.f32.mrb[70].mxu0 }
 0x5df   : > { %v6437_v35 = vadd.f32 %v6436_v24, %v6368_v53  ;;  %v8677_v23 = vpop.f32.mrb[71].mxu0 }
 0x5ec   : > { %v6523_v3 = vpop.f32.mrb[72].mxu0 }
 0x5ed   : > { %v8688_v38 = vpop.f32.mrb[73].mxu0 }
 0x5ee   : > { %v6526_v55 = vpop.f32.mrb[74].mxu0 }
 0x5ef   : > { %v8689_v51 = vpop.f32.mrb[75].mxu0 }
 0x5fc   : > { %v6591_v8 = vpop.f32.mrb[76].mxu0 }
 0x5fd   : > { %v6592_v54 = vadd.f32 %v6591_v8, %v6523_v3  ;;  %v8700_v17 = vpop.f32.mrb[77].mxu0 }
 0x5fe   : > { %v6594_v45 = vpop.f32.mrb[78].mxu0 }
 0x5ff   : > { %v6595_v15 = vadd.f32 %v6594_v45, %v6526_v55  ;;  %v8701_v10 = vpop.f32.mrb[79].mxu0 }
 0x60c   : > { %v6681_v14 = vpop.f32.mrb[80].mxu0 }
 0x60d   : > { %v6688_v26 = vadd.f32 %v6681_v14, %v6434_v12  ;;  %v8712_v6 = vpop.f32.mrb[81].mxu0 }
 0x60e   : > { %v6684_v5 = vpop.f32.mrb[82].mxu0 }
 0x60f   : > { %v6689_v33 = vadd.f32 %v6684_v5, %v6437_v35  ;;  %v8713_v36 = vpop.f32.mrb[83].mxu0 }
 0x61c   : > { %v6773_v62 = vpop.f32.mrb[84].mxu0 }
 0x61d   : > { %v6780_v39 = vadd.f32 %v6773_v62, %v6592_v54  ;;  %v8724_v13 = vpop.f32.mrb[85].mxu0 }
 0x61e   : > { %v6776_v58 = vpop.f32.mrb[86].mxu0 }
 0x61f   : > { %v6781_v44 = vadd.f32 %v6776_v58, %v6595_v15  ;;  %v8725_v30 = vpop.f32.mrb[87].mxu0 }
 0x62c   : > { %v6866_v19 = vpop.f32.mrb[88].mxu0 }
 0x62d   : > { %v6873_v18 = vadd.f32 %v6866_v19, %v6688_v26  ;;  %v8736_v34 = vpop.f32.mrb[89].mxu0 }
 0x62e   : > { %v6869_v11 = vpop.f32.mrb[90].mxu0 }
 0x62f   : > { %v6874_v49 = vadd.f32 %v6869_v11, %v6689_v33  ;;  %v8737_v42 = vpop.f32.mrb[91].mxu0 }
 0x63c   : > { %v6958_v63 = vpop.f32.mrb[92].mxu0 }
 0x63d   : > { %v6965_v22 = vadd.f32 %v6958_v63, %v6780_v39  ;;  %v8748_v46 = vpop.f32.mrb[93].mxu0 }
 0x63e   : > { %v6961_v1 = vpop.f32.mrb[94].mxu0 }
 0x63f   : > { %v6966_v32 = vadd.f32 %v6961_v1, %v6781_v44  ;;  %v8749_v59 = vpop.f32.mrb[95].mxu0 }
 0x64c   : > { %v7050_v57 = vpop.f32.mrb[96].mxu0 }
 0x64d   : > { %v7057_v27 = vadd.f32 %v7050_v57, %v6873_v18  ;;  %v8760_v61 = vpop.f32.mrb[97].mxu0 }
 0x64e   : > { %v7053_v48 = vpop.f32.mrb[98].mxu0 }
 0x64f   : > { %v7059_v2 = vadd.f32 %v7057_v27, %v6965_v22  ;;  %v7058_v43 = vadd.f32 %v7053_v48, %v6874_v49  ;;  %v8761_v0 = vpop.f32.mrb[99].mxu0 }
 0x651   : > { %v7068_v60 = vadd.f32 %v8080_v29, %v7059_v2  ;;  %v7060_v4 = vadd.f32 %v7058_v43, %v6966_v32 }
 0x653   : > { %v7070_v52 = vmax.f32 %v7068_v60, 0.0  ;;  %v7069_v21 = vadd.f32 %v8080_v29, %v7060_v4 }
 0x655   : > { %v7074_v7 = vcombine.high %v7070_v52, %v7070_v52  ;;  %v7081_v40 = vrot.slane %v7070_v52, %v9595_v56  ;;  %v7071_v16 = vmax.f32 %v7069_v21, 0.0 }
 0x657   : > { %v7088_v20 = vrot.slane %v7074_v7, %v9595_v56  ;;  %v7089_v53 = vcombine.high %v7081_v40, %v7081_v40  ;;  %v7116_v9 = vsel %vm5915_vm13, %v7081_v40, -inf  ;;  %v7091_v25 = vcombine.high %v7071_v16, %v7071_v16 }
 0x658   : > { %v7117_v12 = vrot.slane %v7116_v9, 4  ;;  %v7098_v37 = vrot.slane %v7071_v16, %v9595_v56 }
 0x659   : > { %v7090_v24 = vcombine.high %v7088_v20, %v7088_v20  ;;  %v7123_v35 = vsel %vm5915_vm13, %v7089_v53, -inf  ;;  %v7130_v23 = vsel %vm5915_vm13, %v7088_v20, -inf  ;;  %v7105_v3 = vrot.slane %v7091_v25, %v9595_v56 }
 0x65a   : > { %v7118_v38 = vmax.f32 %v7116_v9, %v7117_v12  ;;  %v7124_v55 = vrot.slane %v7123_v35, 4  ;;  %v7131_v51 = vrot.slane %v7130_v23, 4  ;;  %v7106_v50 = vcombine.high %v7098_v37, %v7098_v37 }
 0x65b   : > { %v7137_v31 = vsel %vm5915_vm13, %v7090_v24, -inf  ;;  %v7107_v28 = vcombine.high %v7105_v3, %v7105_v3  ;;  %v7144_v41 = vsel %vm5915_vm13, %v7098_v37, -inf  ;;  %v7158_v8 = vsel %vm5915_vm13, %v7105_v3, -inf }
 0x65c   : > { %v7119_v54 = vrot.slane %v7118_v38, 2  ;;  %v7125_v17 = vmax.f32 %v7123_v35, %v7124_v55  ;;  %v7132_v45 = vmax.f32 %v7130_v23, %v7131_v51  ;;  %v7138_v15 = vrot.slane %v7137_v31, 4 }
 0x65d   : > { %v7145_v10 = vrot.slane %v7144_v41, 4  ;;  %v7151_v14 = vsel %vm5915_vm13, %v7106_v50, -inf  ;;  %v7159_v26 = vrot.slane %v7158_v8, 4  ;;  %v7165_v56 = vsel %vm5915_vm13, %v7107_v28, -inf }
 0x65e   : > { %v7120_v6 = vmax.f32 %v7118_v38, %v7119_v54  ;;  %v7126_v5 = vrot.slane %v7125_v17, 2  ;;  %v7133_v33 = vrot.slane %v7132_v45, 2  ;;  %v7139_v36 = vmax.f32 %v7137_v31, %v7138_v15  ;;  %v9229_v15 = vld [vmem:[%s11478_s7 + $0x18] sm:$0xff]  }
 0x65f   : > { %v7146_v62 = vmax.f32 %v7144_v41, %v7145_v10  ;;  %v7152_v39 = vrot.slane %v7151_v14, 4  ;;  %v7160_v13 = vmax.f32 %v7158_v8, %v7159_v26  ;;  %v7166_v58 = vrot.slane %v7165_v56, 4  ;;  %v9226_v8 = vld [vmem:[%s11478_s7] sm:$0xff]  }
 0x660   : > { %v7121_v44 = vrot.slane %v7120_v6, 1  ;;  %v7127_v30 = vmax.f32 %v7125_v17, %v7126_v5  ;;  %v7134_v19 = vmax.f32 %v7132_v45, %v7133_v33  ;;  %v7140_v18 = vrot.slane %v7139_v36, 2  ;;  %v9227_v17 = vld [vmem:[%s11478_s7 + $0x8] sm:$0xff]   ;;  %v9228_v45 = vld [vmem:[%s11478_s7 + $0x10] sm:$0xff]   ;;  %v9233_v5 = vld [vmem:[%s11478_s7 + $0x58] sm:$0xff]  }
 0x661   : > { %v7147_v34 = vrot.slane %v7146_v62, 2  ;;  %v7153_v11 = vmax.f32 %v7151_v14, %v7152_v39  ;;  %v7161_v49 = vrot.slane %v7160_v13, 2  ;;  %v7167_v42 = vmax.f32 %v7165_v56, %v7166_v58  ;;  %v9230_v14 = vld [vmem:[%s11478_s7 + $0x40] sm:$0xff]   ;;  %v9231_v56 = vld [vmem:[%s11478_s7 + $0x48] sm:$0xff]   ;;  %v9237_v58 = vld [vmem:[%s11478_s7 + $0x78] sm:$0xff]  }
 0x662   : > { %v7122_v63 = vmax.f32 %v7120_v6, %v7121_v44  ;;  %v7128_v22 = vrot.slane %v7127_v30, 1  ;;  %v7135_v46 = vrot.slane %v7134_v19, 1  ;;  %v7141_v1 = vmax.f32 %v7139_v36, %v7140_v18  ;;  %v9232_v6 = vld [vmem:[%s11478_s7 + $0x50] sm:$0xff]   ;;  %v9234_v36 = vld [vmem:[%s11478_s7 + $0x60] sm:$0xff]   ;;  %v9235_v39 = vld [vmem:[%s11478_s7 + $0x68] sm:$0xff]  }
 0x663   : > { %v7148_v32 = vmax.f32 %v7146_v62, %v7147_v34  ;;  %v7154_v59 = vrot.slane %v7153_v11, 2  ;;  %v7162_v57 = vmax.f32 %v7160_v13, %v7161_v49  ;;  %v7168_v27 = vrot.slane %v7167_v42, 2  ;;  %v9236_v13 = vld [vmem:[%s11478_s7 + $0x70] sm:$0xff]   ;;  %v9239_v18 = vld [vmem:[%s11480_s9 + $0x8] sm:$0xff]  }
 0x664   : > { %v7129_v61 = vmax.f32 %v7127_v30, %v7128_v22  ;;  %v7136_v29 = vmax.f32 %v7134_v19, %v7135_v46  ;;  %v7142_v48 = vrot.slane %v7141_v1, 1  ;;  %v7172_v21 = vsel %vm6140_vm11, %v7122_v63, -inf  ;;  %v9238_v19 = vld [vmem:[%s11480_s9] sm:$0xff]   ;;  %v9240_v34 = vld [vmem:[%s11480_s9 + $0x10] sm:$0xff]  }
 0x665   : > { %v7149_v2 = vrot.slane %v7148_v32, 1  ;;  %v7155_v43 = vmax.f32 %v7153_v11, %v7154_v59  ;;  %v7163_v0 = vrot.slane %v7162_v57, 1  ;;  %v7169_v60 = vmax.f32 %v7167_v42, %v7168_v27  ;;  %v9241_v11 = vld [vmem:[%s11480_s9 + $0x18] sm:$0xff]  }
 0x666   : > { %v7143_v4 = vmax.f32 %v7141_v1, %v7142_v48  ;;  %v7173_v52 = vsel %vm6140_vm11, %v7136_v29, -inf  ;;  %v7175_v53 = vsel %vm6140_vm11, %v7129_v61, -inf }
 0x667   : > { %v7150_v7 = vmax.f32 %v7148_v32, %v7149_v2  ;;  %v7156_v40 = vrot.slane %v7155_v43, 1  ;;  %v7164_v16 = vmax.f32 %v7162_v57, %v7163_v0  ;;  %v7174_v20 = vmax.f32 %v7172_v21, %v7173_v52 }
 0x668   : > { %v7176_v9 = vsel %vm6140_vm11, %v7143_v4, -inf  ;;  %v7170_v25 = vrot.slane %v7169_v60, 1 }
 0x669   : > { %v7177_v12 = vmax.f32 %v7175_v53, %v7176_v9  ;;  %v7157_v37 = vmax.f32 %v7155_v43, %v7156_v40  ;;  %v7178_v24 = vsel %vm6140_vm11, %v7150_v7, -inf  ;;  %v7179_v35 = vsel %vm6140_vm11, %v7164_v16, -inf  ;;  %v7518_v16 = vld [vmem:[%s11481_s10] sm:$0x1] }
 0x66a   : > { %v7171_v23 = vmax.f32 %v7169_v60, %v7170_v25  ;;  %v7180_v3 = vmax.f32 %v7178_v24, %v7179_v35 }
 0x66b   : > { %v7188_v38 = vsel %vm2808_vm4, %v7177_v12, %v7174_v20  ;;  %v7181_v55 = vsel %vm6140_vm11, %v7157_v37, -inf }
 0x66c   : > { %v7182_v51 = vsel %vm6140_vm11, %v7171_v23, -inf  ;;  %v7189_v50 = vsel %vm2810_vm5, %v7180_v3, %v7188_v38 }
 0x66d   : > { %v7183_v31 = vmax.f32 %v7181_v55, %v7182_v51 }
 0x66f   : > { %v7190_v28 = vsel %vm2812_vm6, %v7183_v31, %v7189_v50 }
 0x670   : > { %7192 = vst.msk [vmem:[#allocation4] sm:$0xf] %vm6234_vm14, %v7190_v28 }
 0x677   : > { %v7203_v41 = vld [vmem:[#allocation4 + $0x1] sm:$0x1]  ;;  %v7193_v10 = vld [vmem:[#allocation4] sm:$0x1]  ;;  %v7348_v33 = vld [vmem:[#allocation4 + $0x2] sm:$0x1] }
 0x678   : > { %v7204_v54 = vpack.c.bf16 %v7203_v41, %v7203_v41  ;;  %v7194_v26 = vpack.c.bf16 %v7193_v10, %v7193_v10  ;;  %v7349_v62 = vpack.c.bf16 %v7348_v33, %v7348_v33  ;;  %v7427_v44 = vld [vmem:[#allocation4 + $0x3] sm:$0x1] }
 0x679   : > { %v7428_v30 = vpack.c.bf16 %v7427_v44, %v7427_v44 }
 0x67a   : > { %8771 = vmatmul.mubr.msk.bf16.vlgmr.msra.gmra.mrb[100].mxu0 %vm6140_vm11, %v7204_v54 }
 0x67b   : > { %8775 = vmatpush3.bf16.msra.mxu0 %v9226_v8  ;;  %8782 = vmatprep.mubr.msk.bf16.mxu0 %vm9312_vm12, %v9310_v47 }
 0x67c   : > { %8776 = vmatprep.subr.bf16.mxu0 %v9310_v47 }
 0x67f   : > { %8777 = vmatpush3.bf16.msra.mxu0 %v9227_v17 }
 0x680   : > { %8778 = vmatprep.subr.bf16.mxu0 %v9310_v47 }
 0x683   : > { %8779 = vmatpush3.bf16.msra.mxu0 %v9228_v45 }
 0x684   : > { %8780 = vmatprep.subr.bf16.mxu0 %v9310_v47 }
 0x687   : > { %8781 = vmatpush3.bf16.msra.mxu0 %v9229_v15 }
 0x688   : > { %8786 = vmatprep.subr.bf16.mxu0 %v9310_v47 }
 0x68a   : > { %8783 = vmatmul.mubr.msk.bf16.vlgmr.msra.gmra.mrb[104].mxu0 %vm6140_vm11, %v7194_v26 }
 0x68b   : > { %8787 = vmatpush3.bf16.msra.mxu0 %v9230_v14  ;;  %8794 = vmatprep.mubr.msk.bf16.mxu0 %vm9312_vm12, %v9310_v47 }
 0x68c   : > { %8788 = vmatprep.subr.bf16.mxu0 %v9310_v47 }
 0x68f   : > { %8789 = vmatpush3.bf16.msra.mxu0 %v9231_v56 }
 0x690   : > { %8790 = vmatprep.subr.bf16.mxu0 %v9310_v47 }
 0x693   : > { %8791 = vmatpush3.bf16.msra.mxu0 %v9232_v6 }
 0x694   : > { %8792 = vmatprep.subr.bf16.mxu0 %v9310_v47 }
 0x697   : > { %8793 = vmatpush3.bf16.msra.mxu0 %v9233_v5 }
 0x698   : > { %8798 = vmatprep.subr.bf16.mxu0 %v9310_v47 }
 0x69a   : > { %8795 = vmatmul.mubr.msk.bf16.vlgmr.msra.gmra.mrb[108].mxu0 %vm6140_vm11, %v7349_v62 }
 0x69b   : > { %8799 = vmatpush3.bf16.msra.mxu0 %v9234_v36  ;;  %8806 = vmatprep.mubr.msk.bf16.mxu0 %vm9312_vm12, %v9310_v47 }
 0x69c   : > { %8800 = vmatprep.subr.bf16.mxu0 %v9310_v47 }
 0x69f   : > { %8801 = vmatpush3.bf16.msra.mxu0 %v9235_v39 }
 0x6a0   : > { %8802 = vmatprep.subr.bf16.mxu0 %v9310_v47 }
 0x6a3   : > { %8803 = vmatpush3.bf16.msra.mxu0 %v9236_v13 }
 0x6a4   : > { %8804 = vmatprep.subr.bf16.mxu0 %v9310_v47 }
 0x6a7   : > { %8805 = vmatpush3.bf16.msra.mxu0 %v9237_v58 }
 0x6a8   : > { %8810 = vmatprep.subr.bf16.mxu0 %v9310_v47 }
 0x6aa   : > { %8807 = vmatmul.mubr.msk.bf16.vlgmr.msra.gmra.mrb[112].mxu0 %vm6140_vm11, %v7428_v30 }
 0x6ab   : > { %8818 = vmatprep.mubr.msk.bf16.mxu0 %vm9312_vm12, %v9310_v47  ;;  %8811 = vmatpush3.bf16.msra.mxu0 %v9238_v19 }
 0x6ac   : > { %8812 = vmatprep.subr.bf16.mxu0 %v9310_v47 }
 0x6af   : > { %8813 = vmatpush3.bf16.msra.mxu0 %v9239_v18 }
 0x6b0   : > { %8814 = vmatprep.subr.bf16.mxu0 %v9310_v47 }
 0x6b3   : > { %8815 = vmatpush3.bf16.msra.mxu0 %v9240_v34 }
 0x6b4   : > { %8816 = vmatprep.subr.bf16.mxu0 %v9310_v47  ;;  %v7506_v47 = vld [vmem:[%s11479_s8] sm:$0x1] }
 0x6b7   : > { %8817 = vmatpush3.bf16.msra.mxu0 %v9241_v11 }
 0x74d   : > { %v7275_v49 = vpop.f32.mrb[100].mxu0 }
 0x74e   : > { %v8772_v42 = vpop.f32.mrb[101].mxu0 }
 0x74f   : > { %v7278_v63 = vpop.f32.mrb[102].mxu0 }
 0x750   : > { %v8773_v22 = vpop.f32.mrb[103].mxu0 }
 0x75d   : > { %v7342_v46 = vpop.f32.mrb[104].mxu0 }
 0x75e   : > { %v7343_v1 = vadd.f32 %v7342_v46, %v7275_v49  ;;  %v8784_v32 = vpop.f32.mrb[105].mxu0 }
 0x75f   : > { %v7345_v59 = vpop.f32.mrb[106].mxu0 }
 0x760   : > { %v8785_v57 = vpop.f32.mrb[107].mxu0 }
 0x76d   : > { %v7420_v27 = vpop.f32.mrb[108].mxu0 }
 0x76e   : > { %v7426_v61 = vadd.f32 %v7420_v27, %v7343_v1  ;;  %v8796_v29 = vpop.f32.mrb[109].mxu0 }
 0x76f   : > { %v7423_v48 = vpop.f32.mrb[110].mxu0 }
 0x770   : > { %v8797_v2 = vpop.f32.mrb[111].mxu0 }
 0x77d   : > { %v7499_v43 = vpop.f32.mrb[112].mxu0 }
 0x77e   : > { %v7505_v0 = vadd.f32 %v7499_v43, %v7426_v61  ;;  %v8808_v60 = vpop.f32.mrb[113].mxu0 }
 0x77f   : > { %v7502_v4 = vpop.f32.mrb[114].mxu0 }
 0x780   : > { %v7507_v52 = vadd.f32 %v7506_v47, %v7505_v0  ;;  %v8809_v21 = vpop.f32.mrb[115].mxu0 }
 0x782   : > { %v7508_v7 = vmax.f32 %v7507_v52, 0.0 }
 0x784   : > { %v7509_v40 = vpack.c.bf16 %v7508_v7, %v7508_v7 }
 0x786   : > { %8819 = vmatmul.mubr.msk.bf16.vlgmr.msra.gmra.mrb[116].mxu0 %vm6140_vm11, %v7509_v40 }
 0x859   : > { %v7580_v20 = vpop.f32.mrb[116].mxu0 }
 0x85a   : > { %v7581_v53 = vadd.f32 %v7580_v20, %v7518_v16  ;;  %v8820_v9 = vpop.f32.mrb[117].mxu0 }
 0x85b   : > { %v7583_v25 = vpop.f32.mrb[118].mxu0 }
 0x85c   : > { %v8821_v12 = vpop.f32.mrb[119].mxu0  ;;  %7587 = vst.msk [vmem:[%s378_s12] sm:$0x1] %vm7586_vm15, %v7581_v53 }
 0x85d   : > { %9258 = shalt.err (!%p9255_p3)
}
 0x85e   : > { %s9259_s24 = scalar_lea.hbm %s11429_s16, 16  ;;  %s9263_s14 = scalar_lea.hbm %s11482_s11, 32 }
 0x85f   : > { %p9260_p4 = scmp.ne.s32.totalorder %s11429_s16, %s9259_s24  ;;  %p9264_p9 = scmp.lt.u32.totalorder %s11429_s16, %s11482_s11 }
 0x860   : > { %p9265_p10 = scmp.lt.u32.totalorder %s9263_s14, %s9259_s24  ;;  %p9267_p12 = scmp.lt.u32.totalorder %s9259_s24, %s11429_s16 }
 0x861   : > { %p9261_p7 = pnand %p9260_p4, %p9412_p5 }
 0x862   : > { %p9266_p11 = por %p9265_p10, %p9264_p9 }
 0x863   : > { %p9262_p8 = pneg %p9261_p7 }
 0x864   : > { %p9268_p13 = por %p9267_p12, %p9266_p11 }
 0x866   : > { %p9269_p0 = pnand %p9268_p13, %p9262_p8 }
 0x868   : > { %9272 = shalt.err (!%p9269_p0)
}
 0x869   : > { %9014 = dma.vmem_to_hbm [thread:$0]  (%p9412_p5), %s11431_s13, 16, %s11429_s16, %s7589_s21  }
 0x86a PF: > { %p9020_p1 = scmp.ge.s32.totalorder %s9307_s20, 2  ;;  %s7613_s22 = sand.u32 1, %s9295_s17  }
 0x86b   : > { %s7614_s15 = scalar_lea.sflag [#allocation6], %s7613_s22 }
 0x86c   : > { %p9017_p2 = pnand %p9020_p1, %p9416_p6 }
 0x86e   : > { %9290 = dma.done.wait (!%p9017_p2), %s7614_s15, 16  }
 0x86f   : > { %9292 = vsyncadd (!%p9017_p2), %s7614_s15, 4294967280  ;;  %p21_p3 = scmp.ge.s32.totalorder %s9399_s23, 4   ;;  %s11485_s17 = smov %s9299_s18 }
 0x870   : > { %s11486_s18 = smov %s9303_s19  ;;  %s11487_s19 = smov %s9410_s26 }
 0x871   : > { %s11488_s20 = smov %s9399_s23  ;;  %23 = sbr.rel (!%p21_p3) target bundleno = 3 (0x3), region = 140 }
 0x878   :  { %7618 = vsyncpa [#allocation6], 1 }
 0x879   :  { %7620 = vsyncpa [#allocation6 + $0x1], 1 }

</bundles_post_ra>
